<compile_context>
chip_gen: v7x
topology: tpu7x:2x2x1
jax: 0.10.0
libtpu: 0.0.40
codegen_flags: <defaults>
</compile_context>

<pallas_src>
import jax
import jax.numpy as jnp
from jax import lax
from jax.experimental import pallas as pl
from jax.experimental.pallas import tpu as pltpu

_LANES = 128          # batch chunk per grid step (lane width)
_MAX_UNROLL_N = 16    # above this, fall back to a fori_loop solver
_T_TILE_MAX = 256     # x / out tile along T (bounds VMEM, gives pipeline depth)


def _thin_plate(r2):
    # scipy 'thin_plate': phi(r) = r^2*log(r) = 0.5*r^2*log(r^2), phi(0) = 0.
    safe = jnp.where(r2 > 0, r2, 1.0)
    return jnp.where(r2 > 0, 0.5 * r2 * jnp.log(safe), 0.0)


def _solve_unrolled(A, b):
    """Gauss-Jordan w/ per-lane partial pivoting, statically unrolled over k.

    A: (n, n, BB), b: (n, 1, BB); batch on the lane axis.  Returns the list of
    n per-row (1, 1, BB) solution values of A w = b.  The matrix is a Python
    list of per-row (1, n, BB) values so the static row k is updated by plain
    rebinding; only the data-dependent pivot row (different per lane) needs
    masked selects, restricted to the static suffix rows k..n-1.
    """
    n = A.shape[0]
    A_rows = [A[i:i + 1] for i in range(n)]          # (1, n, BB) each
    b_rows = [b[i:i + 1] for i in range(n)]          # (1, 1, BB) each

    for k in range(n):
        m = n - k
        # Column k of the suffix rows (static slices).
        colk = [A_rows[k + j][:, k:k + 1, :] for j in range(m)]   # (1,1,BB)

        if m > 1:
            # Per-lane partial pivot: first suffix row with max |A[., k]|.
            absv = [jnp.abs(c) for c in colk]
            maxv = absv[0]
            for j in range(1, m):
                maxv = jnp.maximum(maxv, absv[j])
            sel = []                        # sel[j-1] <-> "tail row k+j is pivot"
            rowp_A, rowp_b = A_rows[k], b_rows[k]
            taken = absv[0] == maxv         # row k claims ties first
            for j in range(1, m):
                is_pj = (absv[j] == maxv) & jnp.logical_not(taken)
                taken = taken | is_pj
                sel.append(is_pj)
                rowp_A = jnp.where(is_pj, A_rows[k + j], rowp_A)
                rowp_b = jnp.where(is_pj, b_rows[k + j], rowp_b)
        else:
            rowp_A, rowp_b = A_rows[k], b_rows[k]

        inv = 1.0 / rowp_A[:, k:k + 1, :]              # exact divide
        pivA = rowp_A * inv                            # normalized pivot row
        pivb = rowp_b * inv

        if m > 1:
            # Old row k, already eliminated -- this is what lands at the pivot
            # row's position after the (per-lane) swap.
            swA = A_rows[k] - colk[0] * pivA
            swb = b_rows[k] - colk[0] * pivb
            for j in range(1, m):
                elimA = A_rows[k + j] - colk[j] * pivA
                elimb = b_rows[k + j] - colk[j] * pivb
                A_rows[k + j] = jnp.where(sel[j - 1], swA, elimA)
                b_rows[k + j] = jnp.where(sel[j - 1], swb, elimb)
        # Already-pivoted prefix rows: eliminate column k only (never swapped).
        for i in range(k):
            f = A_rows[i][:, k:k + 1, :]
            A_rows[i] = A_rows[i] - f * pivA
            b_rows[i] = b_rows[i] - f * pivb
        A_rows[k] = pivA
        b_rows[k] = pivb

    return b_rows


def _solve_looped(A, b):
    """fori_loop fallback for large n (bounds code size / vreg pressure)."""
    n = A.shape[0]
    rows = lax.broadcasted_iota(jnp.int32, (n, 1, 1), 0)
    cols = lax.broadcasted_iota(jnp.int32, (1, n, 1), 1)

    def body(k, carry):
        A, b = carry
        colk = jnp.sum(jnp.where(cols == k, A, 0.0), axis=1, keepdims=True)
        absc = jnp.where(rows >= k, jnp.abs(colk), -1.0)
        maxv = jnp.max(absc, axis=0, keepdims=True)
        p = jnp.min(jnp.where(absc == maxv, rows, n), axis=0, keepdims=True)
        is_p = rows == p                                # (n,1,BB)
        is_k = rows == k                                # (n,1,1)
        is_pf = is_p.astype(A.dtype)
        is_kf = is_k.astype(A.dtype)
        rowp_A = jnp.sum(is_pf * A, axis=0, keepdims=True)
        rowp_b = jnp.sum(is_pf * b, axis=0, keepdims=True)
        rowk_A = jnp.sum(is_kf * A, axis=0, keepdims=True)
        rowk_b = jnp.sum(is_kf * b, axis=0, keepdims=True)
        colk_k = jnp.sum(is_kf * colk, axis=0, keepdims=True)
        piv = jnp.sum(is_pf * colk, axis=0, keepdims=True)
        inv = 1.0 / piv
        pivA = rowp_A * inv
        pivb = rowp_b * inv
        fac = jnp.where(is_k, 0.0, jnp.where(is_p, colk_k, colk))
        A_sw = jnp.where(is_p, rowk_A, A)
        b_sw = jnp.where(is_p, rowk_b, b)
        A = jnp.where(is_k, pivA, A_sw - fac * pivA)
        b = jnp.where(is_k, pivb, b_sw - fac * pivb)
        return A, b

    _, b = lax.fori_loop(0, n, body, (A, b))
    return b


def _rbf_kernel(cc_ref, cr_ref, x_ref, out_ref, w_ref):
    # cc_ref : (N, 2, BB) station coords, column form (cc[:,0]=x, cc[:,1]=y)
    # cr_ref : (2, N, BB) station coords, row form
    # x_ref  : (N, Tt, BB) station values for this T tile
    # out_ref: (Tt, BB)    interpolated values at (0, 0)
    # w_ref  : (N, 1, BB)  VMEM scratch caching the interpolation weights
    n = cc_ref.shape[0]

    @pl.when(pl.program_id(1) == 0)     # solve once per batch chunk
    def _solve():
        cc = cc_ref[...]
        cr = cr_ref[...]
        lxc = cc[:, 0:1, :]             # (N, 1, BB)
        lyc = cc[:, 1:2, :]
        lxr = cr[0:1, :, :]             # (1, N, BB)
        lyr = cr[1:2, :, :]
        dx = lxc - lxr                  # (N, N, BB)
        dy = lyc - lyr
        A = _thin_plate(dx * dx + dy * dy)         # interpolation matrices
        b = _thin_plate(lxc * lxc + lyc * lyc)     # (N, 1, BB) phi(||p - 0||)
        if n <= _MAX_UNROLL_N:
            w_rows = _solve_unrolled(A, b)
            for i in range(n):
                w_ref[i:i + 1] = w_rows[i]
        else:
            w_ref[...] = _solve_looped(A, b)

    # out[t, c] = sum_n w[n, c] * x[n, t, c]
    out_ref[...] = jnp.sum(w_ref[...] * x_ref[...], axis=0)


def rbf_forward(xs, x, lrain=None, nrain=None, valid=None):
    """Pallas equivalent of RBF.forward.  lrain/nrain/valid are unused."""
    xs = jnp.asarray(xs, jnp.float32)
    x = jnp.asarray(x, jnp.float32)
    B, N, _ = xs.shape
    T = x.shape[2]
    if N <= 1:
        # Reference returns the single station value directly when N == 1.
        return x[:, 0, :]

    # Batch goes on the lane axis; always pad to a multiple of 128 so output
    # stores are lane-dense (unmasked vst instead of masked vst.msk).
    BB = _LANES
    Bp = pl.cdiv(B, BB) * BB

    # T tiling: one tile if T is small, else 256-wide tiles.  Keeps the
    # double-buffered x block well under the scoped VMEM limit on all chips
    # (incl. v7x's 64 MiB) and gives the pipeline >= 2 steps to hide the
    # x DMA behind the long VPU solve.
    if T <= _T_TILE_MAX:
        Tt, Tp = T, T
    else:
        Tt = _T_TILE_MAX
        Tp = pl.cdiv(T, Tt) * Tt

    lx = xs[:, :, 1]          # (B, N)
    ly = xs[:, :, 2]
    xv = x
    if Bp != B:
        pad = Bp - B
        # Replicate the last valid batch's coordinates so padded systems stay
        # well-conditioned (no inf/nan); padded values are zeros and those
        # lanes are sliced off before returning.  (If that last batch is
        # itself degenerate the padded lanes may be nan -- harmless.)
        lx = jnp.concatenate([lx, jnp.broadcast_to(lx[-1:], (pad, N))], axis=0)
        ly = jnp.concatenate([ly, jnp.broadcast_to(ly[-1:], (pad, N))], axis=0)
        xv = jnp.concatenate([xv, jnp.zeros((pad, N, T), xv.dtype)], axis=0)
    if Tp != T:
        xv = jnp.concatenate([xv, jnp.zeros((Bp, N, Tp - T), xv.dtype)], axis=2)

    coords_col = jnp.stack([lx.T, ly.T], axis=1)    # (N, 2, Bp)
    coords_row = jnp.stack([lx.T, ly.T], axis=0)    # (2, N, Bp)
    # TODO(synk): if the caller can provide x as (N, T, B) and accept (T, B)
    # output, these two full HBM transpose passes disappear.
    x_t = jnp.transpose(xv, (1, 2, 0))              # (N, Tp, Bp)

    out_tb = pl.pallas_call(
        _rbf_kernel,
        out_shape=jax.ShapeDtypeStruct((Tp, Bp), jnp.float32),
        grid_spec=pltpu.PrefetchScalarGridSpec(
            num_scalar_prefetch=0,
            grid=(Bp // BB, Tp // Tt),
            in_specs=[
                pl.BlockSpec((N, 2, BB), lambda g, t: (0, 0, g)),
                pl.BlockSpec((2, N, BB), lambda g, t: (0, 0, g)),
                pl.BlockSpec((N, Tt, BB), lambda g, t: (0, t, g)),
            ],
            out_specs=pl.BlockSpec((Tt, BB), lambda g, t: (t, g)),
            scratch_shapes=[pltpu.VMEM((N, 1, BB), jnp.float32)],
        ),
        compiler_params=pltpu.CompilerParams(
            dimension_semantics=("parallel", "arbitrary")),
    )(coords_col, coords_row, x_t)

    return jnp.transpose(out_tb)[:B, :T]            # (B, T)


def _ref_forward(xs, x):
    # Plain-JAX reference (same math) used only as a sanity check.
    lx = xs[:, :, 1]
    ly = xs[:, :, 2]
    dx = lx[:, :, None] - lx[:, None, :]
    dy = ly[:, :, None] - ly[:, None, :]
    A = _thin_plate(dx * dx + dy * dy)                 # (B, N, N)
    phi0 = _thin_plate(lx * lx + ly * ly)[..., None]   # (B, N, 1)
    w = jnp.linalg.solve(A, phi0)                      # (B, N, 1)
    return jnp.sum(w * x, axis=1)                      # (B, T)


if __name__ == "__main__":
    key = jax.random.PRNGKey(0)
    k1, k2, k3, k4, k5, k6 = jax.random.split(key, 6)

    # Primary check -- shapes implied by the module: xs (B,N,3), x (B,N,T).
    B, N, T = 2, 8, 8
    xs = jax.random.uniform(k1, (B, N, 3), jnp.float32, minval=-1.0, maxval=1.0)
    x = jax.random.normal(k2, (B, N, T), jnp.float32)
    lrain = jnp.zeros((B, N, T), jnp.float32)
    nrain = jnp.zeros((B, N, T), jnp.float32)
    valid = jnp.ones((B, N), jnp.float32)

    out = rbf_forward(xs, x, lrain, nrain, valid)
    jax.block_until_ready(out)
    ref = _ref_forward(xs, x)
    assert out.shape == (B, T)
    assert jnp.allclose(out, ref, rtol=1e-2, atol=1e-3)

    # Secondary check -- non-tile-aligned N / T.
    B2, N2, T2 = 3, 6, 5
    xs2 = jax.random.uniform(k3, (B2, N2, 3), jnp.float32, minval=-1.0, maxval=1.0)
    x2 = jax.random.normal(k4, (B2, N2, T2), jnp.float32)
    out2 = rbf_forward(xs2, x2)
    jax.block_until_ready(out2)
    ref2 = _ref_forward(xs2, x2)
    assert out2.shape == (B2, T2)
    assert jnp.allclose(out2, ref2, rtol=1e-2, atol=1e-3)

    # Tertiary check -- T > tile size exercises the T grid axis + cached
    # weights (systems solved once at t == 0, reused for later T tiles).
    B3, N3, T3 = 2, 8, 300
    xs3 = jax.random.uniform(k5, (B3, N3, 3), jnp.float32, minval=-1.0, maxval=1.0)
    x3 = jax.random.normal(k6, (B3, N3, T3), jnp.float32)
    out3 = rbf_forward(xs3, x3)
    jax.block_until_ready(out3)
    ref3 = _ref_forward(xs3, x3)
    assert out3.shape == (B3, T3)
    assert jnp.allclose(out3, ref3, rtol=1e-2, atol=1e-3)

    print("KERNEL_OK")
</pallas_src>

<mosaic_0001>
module attributes {stable_mosaic.version = 11 : i64} {
  func.func @_rbf_kernel(%arg0: i32, %arg1: i32, %arg2: memref<8x2x128xf32, #tpu.memory_space<vmem>>, %arg3: memref<2x8x128xf32, #tpu.memory_space<vmem>>, %arg4: memref<8x8x128xf32, #tpu.memory_space<vmem>>, %arg5: memref<8x128xf32, #tpu.memory_space<vmem>>, %arg6: memref<8x1x128xf32, #tpu.memory_space<vmem>>) attributes {dimension_semantics = [#tpu.dimension_semantics<parallel>, #tpu.dimension_semantics<arbitrary>], iteration_bounds = array<i64: 1, 1>, scalar_prefetch = 0 : i64, scratch_operands = 1 : i64, tpu.core_type = #tpu.core_type<tc>, window_params = [{transform_indices = @transform_0, window_bounds = array<i64: 8, 2, 128>}, {transform_indices = @transform_1, window_bounds = array<i64: 2, 8, 128>}, {transform_indices = @transform_2, window_bounds = array<i64: 8, 8, 128>}, {transform_indices = @transform_3, window_bounds = array<i64: 8, 128>}]} {
    %c0_i32 = arith.constant 0 : i32
    %0 = arith.cmpi eq, %arg1, %c0_i32 : i32
    %1 = arith.extui %0 : i1 to i32
    %c0_i32_0 = arith.constant 0 : i32
    %2 = arith.cmpi ne, %1, %c0_i32_0 : i32
    scf.if %2 {
      %c0_8 = arith.constant 0 : index
      %c0_9 = arith.constant 0 : index
      %c0_10 = arith.constant 0 : index
      %9 = vector.load %arg2[%c0_8, %c0_9, %c0_10] : memref<8x2x128xf32, #tpu.memory_space<vmem>>, vector<8x2x128xf32>
      %c0_11 = arith.constant 0 : index
      %c0_12 = arith.constant 0 : index
      %c0_13 = arith.constant 0 : index
      %10 = vector.load %arg3[%c0_11, %c0_12, %c0_13] : memref<2x8x128xf32, #tpu.memory_space<vmem>>, vector<2x8x128xf32>
      %11 = vector.extract_strided_slice %9 {offsets = [0, 0, 0], sizes = [8, 1, 128], strides = [1, 1, 1]} : vector<8x2x128xf32> to vector<8x1x128xf32>
      %12 = vector.extract_strided_slice %9 {offsets = [0, 1, 0], sizes = [8, 1, 128], strides = [1, 1, 1]} : vector<8x2x128xf32> to vector<8x1x128xf32>
      %13 = vector.extract_strided_slice %10 {offsets = [0, 0, 0], sizes = [1, 8, 128], strides = [1, 1, 1]} : vector<2x8x128xf32> to vector<1x8x128xf32>
      %14 = vector.extract_strided_slice %10 {offsets = [1, 0, 0], sizes = [1, 8, 128], strides = [1, 1, 1]} : vector<2x8x128xf32> to vector<1x8x128xf32>
      %15 = vector.broadcast %11 : vector<8x1x128xf32> to vector<8x8x128xf32>
      %16 = vector.broadcast %13 : vector<1x8x128xf32> to vector<8x8x128xf32>
      %17 = arith.subf %15, %16 : vector<8x8x128xf32>
      %18 = vector.broadcast %12 : vector<8x1x128xf32> to vector<8x8x128xf32>
      %19 = vector.broadcast %14 : vector<1x8x128xf32> to vector<8x8x128xf32>
      %20 = arith.subf %18, %19 : vector<8x8x128xf32>
      %21 = arith.mulf %17, %17 : vector<8x8x128xf32>
      %22 = arith.mulf %20, %20 : vector<8x8x128xf32>
      %23 = arith.addf %21, %22 : vector<8x8x128xf32>
      %cst_14 = arith.constant 0.000000e+00 : f32
      %24 = vector.broadcast %cst_14 : f32 to vector<8x8x128xf32>
      %25 = arith.cmpf ogt, %23, %24 : vector<8x8x128xf32>
      %cst_15 = arith.constant 1.000000e+00 : f32
      %26 = vector.broadcast %cst_15 : f32 to vector<8x8x128xf32>
      %27 = arith.select %25, %23, %26 : vector<8x8x128xi1>, vector<8x8x128xf32>
      %cst_16 = arith.constant 0.000000e+00 : f32
      %28 = vector.broadcast %cst_16 : f32 to vector<8x8x128xf32>
      %29 = arith.cmpf ogt, %23, %28 : vector<8x8x128xf32>
      %cst_17 = arith.constant 5.000000e-01 : f32
      %30 = vector.broadcast %cst_17 : f32 to vector<8x8x128xf32>
      %31 = arith.mulf %30, %23 : vector<8x8x128xf32>
      %32 = math.log %27 : vector<8x8x128xf32>
      %33 = arith.mulf %31, %32 : vector<8x8x128xf32>
      %cst_18 = arith.constant 0.000000e+00 : f32
      %34 = vector.broadcast %cst_18 : f32 to vector<8x8x128xf32>
      %35 = arith.select %29, %33, %34 : vector<8x8x128xi1>, vector<8x8x128xf32>
      %36 = arith.mulf %11, %11 : vector<8x1x128xf32>
      %37 = arith.mulf %12, %12 : vector<8x1x128xf32>
      %38 = arith.addf %36, %37 : vector<8x1x128xf32>
      %cst_19 = arith.constant 0.000000e+00 : f32
      %39 = vector.broadcast %cst_19 : f32 to vector<8x1x128xf32>
      %40 = arith.cmpf ogt, %38, %39 : vector<8x1x128xf32>
      %cst_20 = arith.constant 1.000000e+00 : f32
      %41 = vector.broadcast %cst_20 : f32 to vector<8x1x128xf32>
      %42 = arith.select %40, %38, %41 : vector<8x1x128xi1>, vector<8x1x128xf32>
      %cst_21 = arith.constant 0.000000e+00 : f32
      %43 = vector.broadcast %cst_21 : f32 to vector<8x1x128xf32>
      %44 = arith.cmpf ogt, %38, %43 : vector<8x1x128xf32>
      %cst_22 = arith.constant 5.000000e-01 : f32
      %45 = vector.broadcast %cst_22 : f32 to vector<8x1x128xf32>
      %46 = arith.mulf %45, %38 : vector<8x1x128xf32>
      %47 = math.log %42 : vector<8x1x128xf32>
      %48 = arith.mulf %46, %47 : vector<8x1x128xf32>
      %cst_23 = arith.constant 0.000000e+00 : f32
      %49 = vector.broadcast %cst_23 : f32 to vector<8x1x128xf32>
      %50 = arith.select %44, %48, %49 : vector<8x1x128xi1>, vector<8x1x128xf32>
      %51 = vector.extract_strided_slice %35 {offsets = [0, 0, 0], sizes = [1, 8, 128], strides = [1, 1, 1]} : vector<8x8x128xf32> to vector<1x8x128xf32>
      %52 = vector.extract_strided_slice %35 {offsets = [1, 0, 0], sizes = [1, 8, 128], strides = [1, 1, 1]} : vector<8x8x128xf32> to vector<1x8x128xf32>
      %53 = vector.extract_strided_slice %35 {offsets = [2, 0, 0], sizes = [1, 8, 128], strides = [1, 1, 1]} : vector<8x8x128xf32> to vector<1x8x128xf32>
      %54 = vector.extract_strided_slice %35 {offsets = [3, 0, 0], sizes = [1, 8, 128], strides = [1, 1, 1]} : vector<8x8x128xf32> to vector<1x8x128xf32>
      %55 = vector.extract_strided_slice %35 {offsets = [4, 0, 0], sizes = [1, 8, 128], strides = [1, 1, 1]} : vector<8x8x128xf32> to vector<1x8x128xf32>
      %56 = vector.extract_strided_slice %35 {offsets = [5, 0, 0], sizes = [1, 8, 128], strides = [1, 1, 1]} : vector<8x8x128xf32> to vector<1x8x128xf32>
      %57 = vector.extract_strided_slice %35 {offsets = [6, 0, 0], sizes = [1, 8, 128], strides = [1, 1, 1]} : vector<8x8x128xf32> to vector<1x8x128xf32>
      %58 = vector.extract_strided_slice %35 {offsets = [7, 0, 0], sizes = [1, 8, 128], strides = [1, 1, 1]} : vector<8x8x128xf32> to vector<1x8x128xf32>
      %59 = vector.extract_strided_slice %50 {offsets = [0, 0, 0], sizes = [1, 1, 128], strides = [1, 1, 1]} : vector<8x1x128xf32> to vector<1x1x128xf32>
      %60 = vector.extract_strided_slice %50 {offsets = [1, 0, 0], sizes = [1, 1, 128], strides = [1, 1, 1]} : vector<8x1x128xf32> to vector<1x1x128xf32>
      %61 = vector.extract_strided_slice %50 {offsets = [2, 0, 0], sizes = [1, 1, 128], strides = [1, 1, 1]} : vector<8x1x128xf32> to vector<1x1x128xf32>
      %62 = vector.extract_strided_slice %50 {offsets = [3, 0, 0], sizes = [1, 1, 128], strides = [1, 1, 1]} : vector<8x1x128xf32> to vector<1x1x128xf32>
      %63 = vector.extract_strided_slice %50 {offsets = [4, 0, 0], sizes = [1, 1, 128], strides = [1, 1, 1]} : vector<8x1x128xf32> to vector<1x1x128xf32>
      %64 = vector.extract_strided_slice %50 {offsets = [5, 0, 0], sizes = [1, 1, 128], strides = [1, 1, 1]} : vector<8x1x128xf32> to vector<1x1x128xf32>
      %65 = vector.extract_strided_slice %50 {offsets = [6, 0, 0], sizes = [1, 1, 128], strides = [1, 1, 1]} : vector<8x1x128xf32> to vector<1x1x128xf32>
      %66 = vector.extract_strided_slice %50 {offsets = [7, 0, 0], sizes = [1, 1, 128], strides = [1, 1, 1]} : vector<8x1x128xf32> to vector<1x1x128xf32>
      %67 = vector.extract_strided_slice %51 {offsets = [0, 0, 0], sizes = [1, 1, 128], strides = [1, 1, 1]} : vector<1x8x128xf32> to vector<1x1x128xf32>
      %68 = vector.extract_strided_slice %52 {offsets = [0, 0, 0], sizes = [1, 1, 128], strides = [1, 1, 1]} : vector<1x8x128xf32> to vector<1x1x128xf32>
      %69 = vector.extract_strided_slice %53 {offsets = [0, 0, 0], sizes = [1, 1, 128], strides = [1, 1, 1]} : vector<1x8x128xf32> to vector<1x1x128xf32>
      %70 = vector.extract_strided_slice %54 {offsets = [0, 0, 0], sizes = [1, 1, 128], strides = [1, 1, 1]} : vector<1x8x128xf32> to vector<1x1x128xf32>
      %71 = vector.extract_strided_slice %55 {offsets = [0, 0, 0], sizes = [1, 1, 128], strides = [1, 1, 1]} : vector<1x8x128xf32> to vector<1x1x128xf32>
      %72 = vector.extract_strided_slice %56 {offsets = [0, 0, 0], sizes = [1, 1, 128], strides = [1, 1, 1]} : vector<1x8x128xf32> to vector<1x1x128xf32>
      %73 = vector.extract_strided_slice %57 {offsets = [0, 0, 0], sizes = [1, 1, 128], strides = [1, 1, 1]} : vector<1x8x128xf32> to vector<1x1x128xf32>
      %74 = vector.extract_strided_slice %58 {offsets = [0, 0, 0], sizes = [1, 1, 128], strides = [1, 1, 1]} : vector<1x8x128xf32> to vector<1x1x128xf32>
      %75 = math.absf %67 : vector<1x1x128xf32>
      %76 = math.absf %68 : vector<1x1x128xf32>
      %77 = math.absf %69 : vector<1x1x128xf32>
      %78 = math.absf %70 : vector<1x1x128xf32>
      %79 = math.absf %71 : vector<1x1x128xf32>
      %80 = math.absf %72 : vector<1x1x128xf32>
      %81 = math.absf %73 : vector<1x1x128xf32>
      %82 = math.absf %74 : vector<1x1x128xf32>
      %83 = arith.maximumf %75, %76 : vector<1x1x128xf32>
      %84 = arith.maximumf %83, %77 : vector<1x1x128xf32>
      %85 = arith.maximumf %84, %78 : vector<1x1x128xf32>
      %86 = arith.maximumf %85, %79 : vector<1x1x128xf32>
      %87 = arith.maximumf %86, %80 : vector<1x1x128xf32>
      %88 = arith.maximumf %87, %81 : vector<1x1x128xf32>
      %89 = arith.maximumf %88, %82 : vector<1x1x128xf32>
      %90 = arith.cmpf oeq, %75, %89 : vector<1x1x128xf32>
      %91 = arith.cmpf oeq, %76, %89 : vector<1x1x128xf32>
      %cst_24 = arith.constant dense<true> : vector<1x1x128xi1>
      %92 = arith.xori %90, %cst_24 : vector<1x1x128xi1>
      %93 = arith.andi %91, %92 : vector<1x1x128xi1>
      %94 = arith.ori %90, %93 : vector<1x1x128xi1>
      %95 = vector.shape_cast %93 : vector<1x1x128xi1> to vector<1x1x128xi1>
      %96 = vector.broadcast %95 : vector<1x1x128xi1> to vector<1x8x128xi1>
      %97 = arith.select %96, %52, %51 : vector<1x8x128xi1>, vector<1x8x128xf32>
      %98 = arith.select %93, %60, %59 : vector<1x1x128xi1>, vector<1x1x128xf32>
      %99 = arith.cmpf oeq, %77, %89 : vector<1x1x128xf32>
      %cst_25 = arith.constant dense<true> : vector<1x1x128xi1>
      %100 = arith.xori %94, %cst_25 : vector<1x1x128xi1>
      %101 = arith.andi %99, %100 : vector<1x1x128xi1>
      %102 = arith.ori %94, %101 : vector<1x1x128xi1>
      %103 = vector.shape_cast %101 : vector<1x1x128xi1> to vector<1x1x128xi1>
      %104 = vector.broadcast %103 : vector<1x1x128xi1> to vector<1x8x128xi1>
      %105 = arith.select %104, %53, %97 : vector<1x8x128xi1>, vector<1x8x128xf32>
      %106 = arith.select %101, %61, %98 : vector<1x1x128xi1>, vector<1x1x128xf32>
      %107 = arith.cmpf oeq, %78, %89 : vector<1x1x128xf32>
      %cst_26 = arith.constant dense<true> : vector<1x1x128xi1>
      %108 = arith.xori %102, %cst_26 : vector<1x1x128xi1>
      %109 = arith.andi %107, %108 : vector<1x1x128xi1>
      %110 = arith.ori %102, %109 : vector<1x1x128xi1>
      %111 = vector.shape_cast %109 : vector<1x1x128xi1> to vector<1x1x128xi1>
      %112 = vector.broadcast %111 : vector<1x1x128xi1> to vector<1x8x128xi1>
      %113 = arith.select %112, %54, %105 : vector<1x8x128xi1>, vector<1x8x128xf32>
      %114 = arith.select %109, %62, %106 : vector<1x1x128xi1>, vector<1x1x128xf32>
      %115 = arith.cmpf oeq, %79, %89 : vector<1x1x128xf32>
      %cst_27 = arith.constant dense<true> : vector<1x1x128xi1>
      %116 = arith.xori %110, %cst_27 : vector<1x1x128xi1>
      %117 = arith.andi %115, %116 : vector<1x1x128xi1>
      %118 = arith.ori %110, %117 : vector<1x1x128xi1>
      %119 = vector.shape_cast %117 : vector<1x1x128xi1> to vector<1x1x128xi1>
      %120 = vector.broadcast %119 : vector<1x1x128xi1> to vector<1x8x128xi1>
      %121 = arith.select %120, %55, %113 : vector<1x8x128xi1>, vector<1x8x128xf32>
      %122 = arith.select %117, %63, %114 : vector<1x1x128xi1>, vector<1x1x128xf32>
      %123 = arith.cmpf oeq, %80, %89 : vector<1x1x128xf32>
      %cst_28 = arith.constant dense<true> : vector<1x1x128xi1>
      %124 = arith.xori %118, %cst_28 : vector<1x1x128xi1>
      %125 = arith.andi %123, %124 : vector<1x1x128xi1>
      %126 = arith.ori %118, %125 : vector<1x1x128xi1>
      %127 = vector.shape_cast %125 : vector<1x1x128xi1> to vector<1x1x128xi1>
      %128 = vector.broadcast %127 : vector<1x1x128xi1> to vector<1x8x128xi1>
      %129 = arith.select %128, %56, %121 : vector<1x8x128xi1>, vector<1x8x128xf32>
      %130 = arith.select %125, %64, %122 : vector<1x1x128xi1>, vector<1x1x128xf32>
      %131 = arith.cmpf oeq, %81, %89 : vector<1x1x128xf32>
      %cst_29 = arith.constant dense<true> : vector<1x1x128xi1>
      %132 = arith.xori %126, %cst_29 : vector<1x1x128xi1>
      %133 = arith.andi %131, %132 : vector<1x1x128xi1>
      %134 = arith.ori %126, %133 : vector<1x1x128xi1>
      %135 = vector.shape_cast %133 : vector<1x1x128xi1> to vector<1x1x128xi1>
      %136 = vector.broadcast %135 : vector<1x1x128xi1> to vector<1x8x128xi1>
      %137 = arith.select %136, %57, %129 : vector<1x8x128xi1>, vector<1x8x128xf32>
      %138 = arith.select %133, %65, %130 : vector<1x1x128xi1>, vector<1x1x128xf32>
      %139 = arith.cmpf oeq, %82, %89 : vector<1x1x128xf32>
      %cst_30 = arith.constant dense<true> : vector<1x1x128xi1>
      %140 = arith.xori %134, %cst_30 : vector<1x1x128xi1>
      %141 = arith.andi %139, %140 : vector<1x1x128xi1>
      %142 = vector.shape_cast %141 : vector<1x1x128xi1> to vector<1x1x128xi1>
      %143 = vector.broadcast %142 : vector<1x1x128xi1> to vector<1x8x128xi1>
      %144 = arith.select %143, %58, %137 : vector<1x8x128xi1>, vector<1x8x128xf32>
      %145 = arith.select %141, %66, %138 : vector<1x1x128xi1>, vector<1x1x128xf32>
      %146 = vector.extract_strided_slice %144 {offsets = [0, 0, 0], sizes = [1, 1, 128], strides = [1, 1, 1]} : vector<1x8x128xf32> to vector<1x1x128xf32>
      %cst_31 = arith.constant 1.000000e+00 : f32
      %147 = vector.broadcast %cst_31 : f32 to vector<1x1x128xf32>
      %148 = arith.divf %147, %146 : vector<1x1x128xf32>
      %149 = vector.broadcast %148 : vector<1x1x128xf32> to vector<1x8x128xf32>
      %150 = arith.mulf %144, %149 : vector<1x8x128xf32>
      %151 = arith.mulf %145, %148 : vector<1x1x128xf32>
      %152 = vector.broadcast %67 : vector<1x1x128xf32> to vector<1x8x128xf32>
      %153 = arith.mulf %152, %150 : vector<1x8x128xf32>
      %154 = arith.subf %51, %153 : vector<1x8x128xf32>
      %155 = arith.mulf %67, %151 : vector<1x1x128xf32>
      %156 = arith.subf %59, %155 : vector<1x1x128xf32>
      %157 = vector.broadcast %68 : vector<1x1x128xf32> to vector<1x8x128xf32>
      %158 = arith.mulf %157, %150 : vector<1x8x128xf32>
      %159 = arith.subf %52, %158 : vector<1x8x128xf32>
      %160 = arith.mulf %68, %151 : vector<1x1x128xf32>
      %161 = arith.subf %60, %160 : vector<1x1x128xf32>
      %162 = vector.shape_cast %93 : vector<1x1x128xi1> to vector<1x1x128xi1>
      %163 = vector.broadcast %162 : vector<1x1x128xi1> to vector<1x8x128xi1>
      %164 = arith.select %163, %154, %159 : vector<1x8x128xi1>, vector<1x8x128xf32>
      %165 = arith.select %93, %156, %161 : vector<1x1x128xi1>, vector<1x1x128xf32>
      %166 = vector.broadcast %69 : vector<1x1x128xf32> to vector<1x8x128xf32>
      %167 = arith.mulf %166, %150 : vector<1x8x128xf32>
      %168 = arith.subf %53, %167 : vector<1x8x128xf32>
      %169 = arith.mulf %69, %151 : vector<1x1x128xf32>
      %170 = arith.subf %61, %169 : vector<1x1x128xf32>
      %171 = vector.shape_cast %101 : vector<1x1x128xi1> to vector<1x1x128xi1>
      %172 = vector.broadcast %171 : vector<1x1x128xi1> to vector<1x8x128xi1>
      %173 = arith.select %172, %154, %168 : vector<1x8x128xi1>, vector<1x8x128xf32>
      %174 = arith.select %101, %156, %170 : vector<1x1x128xi1>, vector<1x1x128xf32>
      %175 = vector.broadcast %70 : vector<1x1x128xf32> to vector<1x8x128xf32>
      %176 = arith.mulf %175, %150 : vector<1x8x128xf32>
      %177 = arith.subf %54, %176 : vector<1x8x128xf32>
      %178 = arith.mulf %70, %151 : vector<1x1x128xf32>
      %179 = arith.subf %62, %178 : vector<1x1x128xf32>
      %180 = vector.shape_cast %109 : vector<1x1x128xi1> to vector<1x1x128xi1>
      %181 = vector.broadcast %180 : vector<1x1x128xi1> to vector<1x8x128xi1>
      %182 = arith.select %181, %154, %177 : vector<1x8x128xi1>, vector<1x8x128xf32>
      %183 = arith.select %109, %156, %179 : vector<1x1x128xi1>, vector<1x1x128xf32>
      %184 = vector.broadcast %71 : vector<1x1x128xf32> to vector<1x8x128xf32>
      %185 = arith.mulf %184, %150 : vector<1x8x128xf32>
      %186 = arith.subf %55, %185 : vector<1x8x128xf32>
      %187 = arith.mulf %71, %151 : vector<1x1x128xf32>
      %188 = arith.subf %63, %187 : vector<1x1x128xf32>
      %189 = vector.shape_cast %117 : vector<1x1x128xi1> to vector<1x1x128xi1>
      %190 = vector.broadcast %189 : vector<1x1x128xi1> to vector<1x8x128xi1>
      %191 = arith.select %190, %154, %186 : vector<1x8x128xi1>, vector<1x8x128xf32>
      %192 = arith.select %117, %156, %188 : vector<1x1x128xi1>, vector<1x1x128xf32>
      %193 = vector.broadcast %72 : vector<1x1x128xf32> to vector<1x8x128xf32>
      %194 = arith.mulf %193, %150 : vector<1x8x128xf32>
      %195 = arith.subf %56, %194 : vector<1x8x128xf32>
      %196 = arith.mulf %72, %151 : vector<1x1x128xf32>
      %197 = arith.subf %64, %196 : vector<1x1x128xf32>
      %198 = vector.shape_cast %125 : vector<1x1x128xi1> to vector<1x1x128xi1>
      %199 = vector.broadcast %198 : vector<1x1x128xi1> to vector<1x8x128xi1>
      %200 = arith.select %199, %154, %195 : vector<1x8x128xi1>, vector<1x8x128xf32>
      %201 = arith.select %125, %156, %197 : vector<1x1x128xi1>, vector<1x1x128xf32>
      %202 = vector.broadcast %73 : vector<1x1x128xf32> to vector<1x8x128xf32>
      %203 = arith.mulf %202, %150 : vector<1x8x128xf32>
      %204 = arith.subf %57, %203 : vector<1x8x128xf32>
      %205 = arith.mulf %73, %151 : vector<1x1x128xf32>
      %206 = arith.subf %65, %205 : vector<1x1x128xf32>
      %207 = vector.shape_cast %133 : vector<1x1x128xi1> to vector<1x1x128xi1>
      %208 = vector.broadcast %207 : vector<1x1x128xi1> to vector<1x8x128xi1>
      %209 = arith.select %208, %154, %204 : vector<1x8x128xi1>, vector<1x8x128xf32>
      %210 = arith.select %133, %156, %206 : vector<1x1x128xi1>, vector<1x1x128xf32>
      %211 = vector.broadcast %74 : vector<1x1x128xf32> to vector<1x8x128xf32>
      %212 = arith.mulf %211, %150 : vector<1x8x128xf32>
      %213 = arith.subf %58, %212 : vector<1x8x128xf32>
      %214 = arith.mulf %74, %151 : vector<1x1x128xf32>
      %215 = arith.subf %66, %214 : vector<1x1x128xf32>
      %216 = vector.shape_cast %141 : vector<1x1x128xi1> to vector<1x1x128xi1>
      %217 = vector.broadcast %216 : vector<1x1x128xi1> to vector<1x8x128xi1>
      %218 = arith.select %217, %154, %213 : vector<1x8x128xi1>, vector<1x8x128xf32>
      %219 = arith.select %141, %156, %215 : vector<1x1x128xi1>, vector<1x1x128xf32>
      %220 = vector.extract_strided_slice %164 {offsets = [0, 1, 0], sizes = [1, 1, 128], strides = [1, 1, 1]} : vector<1x8x128xf32> to vector<1x1x128xf32>
      %221 = vector.extract_strided_slice %173 {offsets = [0, 1, 0], sizes = [1, 1, 128], strides = [1, 1, 1]} : vector<1x8x128xf32> to vector<1x1x128xf32>
      %222 = vector.extract_strided_slice %182 {offsets = [0, 1, 0], sizes = [1, 1, 128], strides = [1, 1, 1]} : vector<1x8x128xf32> to vector<1x1x128xf32>
      %223 = vector.extract_strided_slice %191 {offsets = [0, 1, 0], sizes = [1, 1, 128], strides = [1, 1, 1]} : vector<1x8x128xf32> to vector<1x1x128xf32>
      %224 = vector.extract_strided_slice %200 {offsets = [0, 1, 0], sizes = [1, 1, 128], strides = [1, 1, 1]} : vector<1x8x128xf32> to vector<1x1x128xf32>
      %225 = vector.extract_strided_slice %209 {offsets = [0, 1, 0], sizes = [1, 1, 128], strides = [1, 1, 1]} : vector<1x8x128xf32> to vector<1x1x128xf32>
      %226 = vector.extract_strided_slice %218 {offsets = [0, 1, 0], sizes = [1, 1, 128], strides = [1, 1, 1]} : vector<1x8x128xf32> to vector<1x1x128xf32>
      %227 = math.absf %220 : vector<1x1x128xf32>
      %228 = math.absf %221 : vector<1x1x128xf32>
      %229 = math.absf %222 : vector<1x1x128xf32>
      %230 = math.absf %223 : vector<1x1x128xf32>
      %231 = math.absf %224 : vector<1x1x128xf32>
      %232 = math.absf %225 : vector<1x1x128xf32>
      %233 = math.absf %226 : vector<1x1x128xf32>
      %234 = arith.maximumf %227, %228 : vector<1x1x128xf32>
      %235 = arith.maximumf %234, %229 : vector<1x1x128xf32>
      %236 = arith.maximumf %235, %230 : vector<1x1x128xf32>
      %237 = arith.maximumf %236, %231 : vector<1x1x128xf32>
      %238 = arith.maximumf %237, %232 : vector<1x1x128xf32>
      %239 = arith.maximumf %238, %233 : vector<1x1x128xf32>
      %240 = arith.cmpf oeq, %227, %239 : vector<1x1x128xf32>
      %241 = arith.cmpf oeq, %228, %239 : vector<1x1x128xf32>
      %cst_32 = arith.constant dense<true> : vector<1x1x128xi1>
      %242 = arith.xori %240, %cst_32 : vector<1x1x128xi1>
      %243 = arith.andi %241, %242 : vector<1x1x128xi1>
      %244 = arith.ori %240, %243 : vector<1x1x128xi1>
      %245 = vector.shape_cast %243 : vector<1x1x128xi1> to vector<1x1x128xi1>
      %246 = vector.broadcast %245 : vector<1x1x128xi1> to vector<1x8x128xi1>
      %247 = arith.select %246, %173, %164 : vector<1x8x128xi1>, vector<1x8x128xf32>
      %248 = arith.select %243, %174, %165 : vector<1x1x128xi1>, vector<1x1x128xf32>
      %249 = arith.cmpf oeq, %229, %239 : vector<1x1x128xf32>
      %cst_33 = arith.constant dense<true> : vector<1x1x128xi1>
      %250 = arith.xori %244, %cst_33 : vector<1x1x128xi1>
      %251 = arith.andi %249, %250 : vector<1x1x128xi1>
      %252 = arith.ori %244, %251 : vector<1x1x128xi1>
      %253 = vector.shape_cast %251 : vector<1x1x128xi1> to vector<1x1x128xi1>
      %254 = vector.broadcast %253 : vector<1x1x128xi1> to vector<1x8x128xi1>
      %255 = arith.select %254, %182, %247 : vector<1x8x128xi1>, vector<1x8x128xf32>
      %256 = arith.select %251, %183, %248 : vector<1x1x128xi1>, vector<1x1x128xf32>
      %257 = arith.cmpf oeq, %230, %239 : vector<1x1x128xf32>
      %cst_34 = arith.constant dense<true> : vector<1x1x128xi1>
      %258 = arith.xori %252, %cst_34 : vector<1x1x128xi1>
      %259 = arith.andi %257, %258 : vector<1x1x128xi1>
      %260 = arith.ori %252, %259 : vector<1x1x128xi1>
      %261 = vector.shape_cast %259 : vector<1x1x128xi1> to vector<1x1x128xi1>
      %262 = vector.broadcast %261 : vector<1x1x128xi1> to vector<1x8x128xi1>
      %263 = arith.select %262, %191, %255 : vector<1x8x128xi1>, vector<1x8x128xf32>
      %264 = arith.select %259, %192, %256 : vector<1x1x128xi1>, vector<1x1x128xf32>
      %265 = arith.cmpf oeq, %231, %239 : vector<1x1x128xf32>
      %cst_35 = arith.constant dense<true> : vector<1x1x128xi1>
      %266 = arith.xori %260, %cst_35 : vector<1x1x128xi1>
      %267 = arith.andi %265, %266 : vector<1x1x128xi1>
      %268 = arith.ori %260, %267 : vector<1x1x128xi1>
      %269 = vector.shape_cast %267 : vector<1x1x128xi1> to vector<1x1x128xi1>
      %270 = vector.broadcast %269 : vector<1x1x128xi1> to vector<1x8x128xi1>
      %271 = arith.select %270, %200, %263 : vector<1x8x128xi1>, vector<1x8x128xf32>
      %272 = arith.select %267, %201, %264 : vector<1x1x128xi1>, vector<1x1x128xf32>
      %273 = arith.cmpf oeq, %232, %239 : vector<1x1x128xf32>
      %cst_36 = arith.constant dense<true> : vector<1x1x128xi1>
      %274 = arith.xori %268, %cst_36 : vector<1x1x128xi1>
      %275 = arith.andi %273, %274 : vector<1x1x128xi1>
      %276 = arith.ori %268, %275 : vector<1x1x128xi1>
      %277 = vector.shape_cast %275 : vector<1x1x128xi1> to vector<1x1x128xi1>
      %278 = vector.broadcast %277 : vector<1x1x128xi1> to vector<1x8x128xi1>
      %279 = arith.select %278, %209, %271 : vector<1x8x128xi1>, vector<1x8x128xf32>
      %280 = arith.select %275, %210, %272 : vector<1x1x128xi1>, vector<1x1x128xf32>
      %281 = arith.cmpf oeq, %233, %239 : vector<1x1x128xf32>
      %cst_37 = arith.constant dense<true> : vector<1x1x128xi1>
      %282 = arith.xori %276, %cst_37 : vector<1x1x128xi1>
      %283 = arith.andi %281, %282 : vector<1x1x128xi1>
      %284 = vector.shape_cast %283 : vector<1x1x128xi1> to vector<1x1x128xi1>
      %285 = vector.broadcast %284 : vector<1x1x128xi1> to vector<1x8x128xi1>
      %286 = arith.select %285, %218, %279 : vector<1x8x128xi1>, vector<1x8x128xf32>
      %287 = arith.select %283, %219, %280 : vector<1x1x128xi1>, vector<1x1x128xf32>
      %288 = vector.extract_strided_slice %286 {offsets = [0, 1, 0], sizes = [1, 1, 128], strides = [1, 1, 1]} : vector<1x8x128xf32> to vector<1x1x128xf32>
      %cst_38 = arith.constant 1.000000e+00 : f32
      %289 = vector.broadcast %cst_38 : f32 to vector<1x1x128xf32>
      %290 = arith.divf %289, %288 : vector<1x1x128xf32>
      %291 = vector.broadcast %290 : vector<1x1x128xf32> to vector<1x8x128xf32>
      %292 = arith.mulf %286, %291 : vector<1x8x128xf32>
      %293 = arith.mulf %287, %290 : vector<1x1x128xf32>
      %294 = vector.broadcast %220 : vector<1x1x128xf32> to vector<1x8x128xf32>
      %295 = arith.mulf %294, %292 : vector<1x8x128xf32>
      %296 = arith.subf %164, %295 : vector<1x8x128xf32>
      %297 = arith.mulf %220, %293 : vector<1x1x128xf32>
      %298 = arith.subf %165, %297 : vector<1x1x128xf32>
      %299 = vector.broadcast %221 : vector<1x1x128xf32> to vector<1x8x128xf32>
      %300 = arith.mulf %299, %292 : vector<1x8x128xf32>
      %301 = arith.subf %173, %300 : vector<1x8x128xf32>
      %302 = arith.mulf %221, %293 : vector<1x1x128xf32>
      %303 = arith.subf %174, %302 : vector<1x1x128xf32>
      %304 = vector.shape_cast %243 : vector<1x1x128xi1> to vector<1x1x128xi1>
      %305 = vector.broadcast %304 : vector<1x1x128xi1> to vector<1x8x128xi1>
      %306 = arith.select %305, %296, %301 : vector<1x8x128xi1>, vector<1x8x128xf32>
      %307 = arith.select %243, %298, %303 : vector<1x1x128xi1>, vector<1x1x128xf32>
      %308 = vector.broadcast %222 : vector<1x1x128xf32> to vector<1x8x128xf32>
      %309 = arith.mulf %308, %292 : vector<1x8x128xf32>
      %310 = arith.subf %182, %309 : vector<1x8x128xf32>
      %311 = arith.mulf %222, %293 : vector<1x1x128xf32>
      %312 = arith.subf %183, %311 : vector<1x1x128xf32>
      %313 = vector.shape_cast %251 : vector<1x1x128xi1> to vector<1x1x128xi1>
      %314 = vector.broadcast %313 : vector<1x1x128xi1> to vector<1x8x128xi1>
      %315 = arith.select %314, %296, %310 : vector<1x8x128xi1>, vector<1x8x128xf32>
      %316 = arith.select %251, %298, %312 : vector<1x1x128xi1>, vector<1x1x128xf32>
      %317 = vector.broadcast %223 : vector<1x1x128xf32> to vector<1x8x128xf32>
      %318 = arith.mulf %317, %292 : vector<1x8x128xf32>
      %319 = arith.subf %191, %318 : vector<1x8x128xf32>
      %320 = arith.mulf %223, %293 : vector<1x1x128xf32>
      %321 = arith.subf %192, %320 : vector<1x1x128xf32>
      %322 = vector.shape_cast %259 : vector<1x1x128xi1> to vector<1x1x128xi1>
      %323 = vector.broadcast %322 : vector<1x1x128xi1> to vector<1x8x128xi1>
      %324 = arith.select %323, %296, %319 : vector<1x8x128xi1>, vector<1x8x128xf32>
      %325 = arith.select %259, %298, %321 : vector<1x1x128xi1>, vector<1x1x128xf32>
      %326 = vector.broadcast %224 : vector<1x1x128xf32> to vector<1x8x128xf32>
      %327 = arith.mulf %326, %292 : vector<1x8x128xf32>
      %328 = arith.subf %200, %327 : vector<1x8x128xf32>
      %329 = arith.mulf %224, %293 : vector<1x1x128xf32>
      %330 = arith.subf %201, %329 : vector<1x1x128xf32>
      %331 = vector.shape_cast %267 : vector<1x1x128xi1> to vector<1x1x128xi1>
      %332 = vector.broadcast %331 : vector<1x1x128xi1> to vector<1x8x128xi1>
      %333 = arith.select %332, %296, %328 : vector<1x8x128xi1>, vector<1x8x128xf32>
      %334 = arith.select %267, %298, %330 : vector<1x1x128xi1>, vector<1x1x128xf32>
      %335 = vector.broadcast %225 : vector<1x1x128xf32> to vector<1x8x128xf32>
      %336 = arith.mulf %335, %292 : vector<1x8x128xf32>
      %337 = arith.subf %209, %336 : vector<1x8x128xf32>
      %338 = arith.mulf %225, %293 : vector<1x1x128xf32>
      %339 = arith.subf %210, %338 : vector<1x1x128xf32>
      %340 = vector.shape_cast %275 : vector<1x1x128xi1> to vector<1x1x128xi1>
      %341 = vector.broadcast %340 : vector<1x1x128xi1> to vector<1x8x128xi1>
      %342 = arith.select %341, %296, %337 : vector<1x8x128xi1>, vector<1x8x128xf32>
      %343 = arith.select %275, %298, %339 : vector<1x1x128xi1>, vector<1x1x128xf32>
      %344 = vector.broadcast %226 : vector<1x1x128xf32> to vector<1x8x128xf32>
      %345 = arith.mulf %344, %292 : vector<1x8x128xf32>
      %346 = arith.subf %218, %345 : vector<1x8x128xf32>
      %347 = arith.mulf %226, %293 : vector<1x1x128xf32>
      %348 = arith.subf %219, %347 : vector<1x1x128xf32>
      %349 = vector.shape_cast %283 : vector<1x1x128xi1> to vector<1x1x128xi1>
      %350 = vector.broadcast %349 : vector<1x1x128xi1> to vector<1x8x128xi1>
      %351 = arith.select %350, %296, %346 : vector<1x8x128xi1>, vector<1x8x128xf32>
      %352 = arith.select %283, %298, %348 : vector<1x1x128xi1>, vector<1x1x128xf32>
      %353 = vector.extract_strided_slice %150 {offsets = [0, 1, 0], sizes = [1, 1, 128], strides = [1, 1, 1]} : vector<1x8x128xf32> to vector<1x1x128xf32>
      %354 = vector.broadcast %353 : vector<1x1x128xf32> to vector<1x8x128xf32>
      %355 = arith.mulf %354, %292 : vector<1x8x128xf32>
      %356 = arith.subf %150, %355 : vector<1x8x128xf32>
      %357 = arith.mulf %353, %293 : vector<1x1x128xf32>
      %358 = arith.subf %151, %357 : vector<1x1x128xf32>
      %359 = vector.extract_strided_slice %306 {offsets = [0, 2, 0], sizes = [1, 1, 128], strides = [1, 1, 1]} : vector<1x8x128xf32> to vector<1x1x128xf32>
      %360 = vector.extract_strided_slice %315 {offsets = [0, 2, 0], sizes = [1, 1, 128], strides = [1, 1, 1]} : vector<1x8x128xf32> to vector<1x1x128xf32>
      %361 = vector.extract_strided_slice %324 {offsets = [0, 2, 0], sizes = [1, 1, 128], strides = [1, 1, 1]} : vector<1x8x128xf32> to vector<1x1x128xf32>
      %362 = vector.extract_strided_slice %333 {offsets = [0, 2, 0], sizes = [1, 1, 128], strides = [1, 1, 1]} : vector<1x8x128xf32> to vector<1x1x128xf32>
      %363 = vector.extract_strided_slice %342 {offsets = [0, 2, 0], sizes = [1, 1, 128], strides = [1, 1, 1]} : vector<1x8x128xf32> to vector<1x1x128xf32>
      %364 = vector.extract_strided_slice %351 {offsets = [0, 2, 0], sizes = [1, 1, 128], strides = [1, 1, 1]} : vector<1x8x128xf32> to vector<1x1x128xf32>
      %365 = math.absf %359 : vector<1x1x128xf32>
      %366 = math.absf %360 : vector<1x1x128xf32>
      %367 = math.absf %361 : vector<1x1x128xf32>
      %368 = math.absf %362 : vector<1x1x128xf32>
      %369 = math.absf %363 : vector<1x1x128xf32>
      %370 = math.absf %364 : vector<1x1x128xf32>
      %371 = arith.maximumf %365, %366 : vector<1x1x128xf32>
      %372 = arith.maximumf %371, %367 : vector<1x1x128xf32>
      %373 = arith.maximumf %372, %368 : vector<1x1x128xf32>
      %374 = arith.maximumf %373, %369 : vector<1x1x128xf32>
      %375 = arith.maximumf %374, %370 : vector<1x1x128xf32>
      %376 = arith.cmpf oeq, %365, %375 : vector<1x1x128xf32>
      %377 = arith.cmpf oeq, %366, %375 : vector<1x1x128xf32>
      %cst_39 = arith.constant dense<true> : vector<1x1x128xi1>
      %378 = arith.xori %376, %cst_39 : vector<1x1x128xi1>
      %379 = arith.andi %377, %378 : vector<1x1x128xi1>
      %380 = arith.ori %376, %379 : vector<1x1x128xi1>
      %381 = vector.shape_cast %379 : vector<1x1x128xi1> to vector<1x1x128xi1>
      %382 = vector.broadcast %381 : vector<1x1x128xi1> to vector<1x8x128xi1>
      %383 = arith.select %382, %315, %306 : vector<1x8x128xi1>, vector<1x8x128xf32>
      %384 = arith.select %379, %316, %307 : vector<1x1x128xi1>, vector<1x1x128xf32>
      %385 = arith.cmpf oeq, %367, %375 : vector<1x1x128xf32>
      %cst_40 = arith.constant dense<true> : vector<1x1x128xi1>
      %386 = arith.xori %380, %cst_40 : vector<1x1x128xi1>
      %387 = arith.andi %385, %386 : vector<1x1x128xi1>
      %388 = arith.ori %380, %387 : vector<1x1x128xi1>
      %389 = vector.shape_cast %387 : vector<1x1x128xi1> to vector<1x1x128xi1>
      %390 = vector.broadcast %389 : vector<1x1x128xi1> to vector<1x8x128xi1>
      %391 = arith.select %390, %324, %383 : vector<1x8x128xi1>, vector<1x8x128xf32>
      %392 = arith.select %387, %325, %384 : vector<1x1x128xi1>, vector<1x1x128xf32>
      %393 = arith.cmpf oeq, %368, %375 : vector<1x1x128xf32>
      %cst_41 = arith.constant dense<true> : vector<1x1x128xi1>
      %394 = arith.xori %388, %cst_41 : vector<1x1x128xi1>
      %395 = arith.andi %393, %394 : vector<1x1x128xi1>
      %396 = arith.ori %388, %395 : vector<1x1x128xi1>
      %397 = vector.shape_cast %395 : vector<1x1x128xi1> to vector<1x1x128xi1>
      %398 = vector.broadcast %397 : vector<1x1x128xi1> to vector<1x8x128xi1>
      %399 = arith.select %398, %333, %391 : vector<1x8x128xi1>, vector<1x8x128xf32>
      %400 = arith.select %395, %334, %392 : vector<1x1x128xi1>, vector<1x1x128xf32>
      %401 = arith.cmpf oeq, %369, %375 : vector<1x1x128xf32>
      %cst_42 = arith.constant dense<true> : vector<1x1x128xi1>
      %402 = arith.xori %396, %cst_42 : vector<1x1x128xi1>
      %403 = arith.andi %401, %402 : vector<1x1x128xi1>
      %404 = arith.ori %396, %403 : vector<1x1x128xi1>
      %405 = vector.shape_cast %403 : vector<1x1x128xi1> to vector<1x1x128xi1>
      %406 = vector.broadcast %405 : vector<1x1x128xi1> to vector<1x8x128xi1>
      %407 = arith.select %406, %342, %399 : vector<1x8x128xi1>, vector<1x8x128xf32>
      %408 = arith.select %403, %343, %400 : vector<1x1x128xi1>, vector<1x1x128xf32>
      %409 = arith.cmpf oeq, %370, %375 : vector<1x1x128xf32>
      %cst_43 = arith.constant dense<true> : vector<1x1x128xi1>
      %410 = arith.xori %404, %cst_43 : vector<1x1x128xi1>
      %411 = arith.andi %409, %410 : vector<1x1x128xi1>
      %412 = vector.shape_cast %411 : vector<1x1x128xi1> to vector<1x1x128xi1>
      %413 = vector.broadcast %412 : vector<1x1x128xi1> to vector<1x8x128xi1>
      %414 = arith.select %413, %351, %407 : vector<1x8x128xi1>, vector<1x8x128xf32>
      %415 = arith.select %411, %352, %408 : vector<1x1x128xi1>, vector<1x1x128xf32>
      %416 = vector.extract_strided_slice %414 {offsets = [0, 2, 0], sizes = [1, 1, 128], strides = [1, 1, 1]} : vector<1x8x128xf32> to vector<1x1x128xf32>
      %cst_44 = arith.constant 1.000000e+00 : f32
      %417 = vector.broadcast %cst_44 : f32 to vector<1x1x128xf32>
      %418 = arith.divf %417, %416 : vector<1x1x128xf32>
      %419 = vector.broadcast %418 : vector<1x1x128xf32> to vector<1x8x128xf32>
      %420 = arith.mulf %414, %419 : vector<1x8x128xf32>
      %421 = arith.mulf %415, %418 : vector<1x1x128xf32>
      %422 = vector.broadcast %359 : vector<1x1x128xf32> to vector<1x8x128xf32>
      %423 = arith.mulf %422, %420 : vector<1x8x128xf32>
      %424 = arith.subf %306, %423 : vector<1x8x128xf32>
      %425 = arith.mulf %359, %421 : vector<1x1x128xf32>
      %426 = arith.subf %307, %425 : vector<1x1x128xf32>
      %427 = vector.broadcast %360 : vector<1x1x128xf32> to vector<1x8x128xf32>
      %428 = arith.mulf %427, %420 : vector<1x8x128xf32>
      %429 = arith.subf %315, %428 : vector<1x8x128xf32>
      %430 = arith.mulf %360, %421 : vector<1x1x128xf32>
      %431 = arith.subf %316, %430 : vector<1x1x128xf32>
      %432 = vector.shape_cast %379 : vector<1x1x128xi1> to vector<1x1x128xi1>
      %433 = vector.broadcast %432 : vector<1x1x128xi1> to vector<1x8x128xi1>
      %434 = arith.select %433, %424, %429 : vector<1x8x128xi1>, vector<1x8x128xf32>
      %435 = arith.select %379, %426, %431 : vector<1x1x128xi1>, vector<1x1x128xf32>
      %436 = vector.broadcast %361 : vector<1x1x128xf32> to vector<1x8x128xf32>
      %437 = arith.mulf %436, %420 : vector<1x8x128xf32>
      %438 = arith.subf %324, %437 : vector<1x8x128xf32>
      %439 = arith.mulf %361, %421 : vector<1x1x128xf32>
      %440 = arith.subf %325, %439 : vector<1x1x128xf32>
      %441 = vector.shape_cast %387 : vector<1x1x128xi1> to vector<1x1x128xi1>
      %442 = vector.broadcast %441 : vector<1x1x128xi1> to vector<1x8x128xi1>
      %443 = arith.select %442, %424, %438 : vector<1x8x128xi1>, vector<1x8x128xf32>
      %444 = arith.select %387, %426, %440 : vector<1x1x128xi1>, vector<1x1x128xf32>
      %445 = vector.broadcast %362 : vector<1x1x128xf32> to vector<1x8x128xf32>
      %446 = arith.mulf %445, %420 : vector<1x8x128xf32>
      %447 = arith.subf %333, %446 : vector<1x8x128xf32>
      %448 = arith.mulf %362, %421 : vector<1x1x128xf32>
      %449 = arith.subf %334, %448 : vector<1x1x128xf32>
      %450 = vector.shape_cast %395 : vector<1x1x128xi1> to vector<1x1x128xi1>
      %451 = vector.broadcast %450 : vector<1x1x128xi1> to vector<1x8x128xi1>
      %452 = arith.select %451, %424, %447 : vector<1x8x128xi1>, vector<1x8x128xf32>
      %453 = arith.select %395, %426, %449 : vector<1x1x128xi1>, vector<1x1x128xf32>
      %454 = vector.broadcast %363 : vector<1x1x128xf32> to vector<1x8x128xf32>
      %455 = arith.mulf %454, %420 : vector<1x8x128xf32>
      %456 = arith.subf %342, %455 : vector<1x8x128xf32>
      %457 = arith.mulf %363, %421 : vector<1x1x128xf32>
      %458 = arith.subf %343, %457 : vector<1x1x128xf32>
      %459 = vector.shape_cast %403 : vector<1x1x128xi1> to vector<1x1x128xi1>
      %460 = vector.broadcast %459 : vector<1x1x128xi1> to vector<1x8x128xi1>
      %461 = arith.select %460, %424, %456 : vector<1x8x128xi1>, vector<1x8x128xf32>
      %462 = arith.select %403, %426, %458 : vector<1x1x128xi1>, vector<1x1x128xf32>
      %463 = vector.broadcast %364 : vector<1x1x128xf32> to vector<1x8x128xf32>
      %464 = arith.mulf %463, %420 : vector<1x8x128xf32>
      %465 = arith.subf %351, %464 : vector<1x8x128xf32>
      %466 = arith.mulf %364, %421 : vector<1x1x128xf32>
      %467 = arith.subf %352, %466 : vector<1x1x128xf32>
      %468 = vector.shape_cast %411 : vector<1x1x128xi1> to vector<1x1x128xi1>
      %469 = vector.broadcast %468 : vector<1x1x128xi1> to vector<1x8x128xi1>
      %470 = arith.select %469, %424, %465 : vector<1x8x128xi1>, vector<1x8x128xf32>
      %471 = arith.select %411, %426, %467 : vector<1x1x128xi1>, vector<1x1x128xf32>
      %472 = vector.extract_strided_slice %356 {offsets = [0, 2, 0], sizes = [1, 1, 128], strides = [1, 1, 1]} : vector<1x8x128xf32> to vector<1x1x128xf32>
      %473 = vector.broadcast %472 : vector<1x1x128xf32> to vector<1x8x128xf32>
      %474 = arith.mulf %473, %420 : vector<1x8x128xf32>
      %475 = arith.subf %356, %474 : vector<1x8x128xf32>
      %476 = arith.mulf %472, %421 : vector<1x1x128xf32>
      %477 = arith.subf %358, %476 : vector<1x1x128xf32>
      %478 = vector.extract_strided_slice %292 {offsets = [0, 2, 0], sizes = [1, 1, 128], strides = [1, 1, 1]} : vector<1x8x128xf32> to vector<1x1x128xf32>
      %479 = vector.broadcast %478 : vector<1x1x128xf32> to vector<1x8x128xf32>
      %480 = arith.mulf %479, %420 : vector<1x8x128xf32>
      %481 = arith.subf %292, %480 : vector<1x8x128xf32>
      %482 = arith.mulf %478, %421 : vector<1x1x128xf32>
      %483 = arith.subf %293, %482 : vector<1x1x128xf32>
      %484 = vector.extract_strided_slice %434 {offsets = [0, 3, 0], sizes = [1, 1, 128], strides = [1, 1, 1]} : vector<1x8x128xf32> to vector<1x1x128xf32>
      %485 = vector.extract_strided_slice %443 {offsets = [0, 3, 0], sizes = [1, 1, 128], strides = [1, 1, 1]} : vector<1x8x128xf32> to vector<1x1x128xf32>
      %486 = vector.extract_strided_slice %452 {offsets = [0, 3, 0], sizes = [1, 1, 128], strides = [1, 1, 1]} : vector<1x8x128xf32> to vector<1x1x128xf32>
      %487 = vector.extract_strided_slice %461 {offsets = [0, 3, 0], sizes = [1, 1, 128], strides = [1, 1, 1]} : vector<1x8x128xf32> to vector<1x1x128xf32>
      %488 = vector.extract_strided_slice %470 {offsets = [0, 3, 0], sizes = [1, 1, 128], strides = [1, 1, 1]} : vector<1x8x128xf32> to vector<1x1x128xf32>
      %489 = math.absf %484 : vector<1x1x128xf32>
      %490 = math.absf %485 : vector<1x1x128xf32>
      %491 = math.absf %486 : vector<1x1x128xf32>
      %492 = math.absf %487 : vector<1x1x128xf32>
      %493 = math.absf %488 : vector<1x1x128xf32>
      %494 = arith.maximumf %489, %490 : vector<1x1x128xf32>
      %495 = arith.maximumf %494, %491 : vector<1x1x128xf32>
      %496 = arith.maximumf %495, %492 : vector<1x1x128xf32>
      %497 = arith.maximumf %496, %493 : vector<1x1x128xf32>
      %498 = arith.cmpf oeq, %489, %497 : vector<1x1x128xf32>
      %499 = arith.cmpf oeq, %490, %497 : vector<1x1x128xf32>
      %cst_45 = arith.constant dense<true> : vector<1x1x128xi1>
      %500 = arith.xori %498, %cst_45 : vector<1x1x128xi1>
      %501 = arith.andi %499, %500 : vector<1x1x128xi1>
      %502 = arith.ori %498, %501 : vector<1x1x128xi1>
      %503 = vector.shape_cast %501 : vector<1x1x128xi1> to vector<1x1x128xi1>
      %504 = vector.broadcast %503 : vector<1x1x128xi1> to vector<1x8x128xi1>
      %505 = arith.select %504, %443, %434 : vector<1x8x128xi1>, vector<1x8x128xf32>
      %506 = arith.select %501, %444, %435 : vector<1x1x128xi1>, vector<1x1x128xf32>
      %507 = arith.cmpf oeq, %491, %497 : vector<1x1x128xf32>
      %cst_46 = arith.constant dense<true> : vector<1x1x128xi1>
      %508 = arith.xori %502, %cst_46 : vector<1x1x128xi1>
      %509 = arith.andi %507, %508 : vector<1x1x128xi1>
      %510 = arith.ori %502, %509 : vector<1x1x128xi1>
      %511 = vector.shape_cast %509 : vector<1x1x128xi1> to vector<1x1x128xi1>
      %512 = vector.broadcast %511 : vector<1x1x128xi1> to vector<1x8x128xi1>
      %513 = arith.select %512, %452, %505 : vector<1x8x128xi1>, vector<1x8x128xf32>
      %514 = arith.select %509, %453, %506 : vector<1x1x128xi1>, vector<1x1x128xf32>
      %515 = arith.cmpf oeq, %492, %497 : vector<1x1x128xf32>
      %cst_47 = arith.constant dense<true> : vector<1x1x128xi1>
      %516 = arith.xori %510, %cst_47 : vector<1x1x128xi1>
      %517 = arith.andi %515, %516 : vector<1x1x128xi1>
      %518 = arith.ori %510, %517 : vector<1x1x128xi1>
      %519 = vector.shape_cast %517 : vector<1x1x128xi1> to vector<1x1x128xi1>
      %520 = vector.broadcast %519 : vector<1x1x128xi1> to vector<1x8x128xi1>
      %521 = arith.select %520, %461, %513 : vector<1x8x128xi1>, vector<1x8x128xf32>
      %522 = arith.select %517, %462, %514 : vector<1x1x128xi1>, vector<1x1x128xf32>
      %523 = arith.cmpf oeq, %493, %497 : vector<1x1x128xf32>
      %cst_48 = arith.constant dense<true> : vector<1x1x128xi1>
      %524 = arith.xori %518, %cst_48 : vector<1x1x128xi1>
      %525 = arith.andi %523, %524 : vector<1x1x128xi1>
      %526 = vector.shape_cast %525 : vector<1x1x128xi1> to vector<1x1x128xi1>
      %527 = vector.broadcast %526 : vector<1x1x128xi1> to vector<1x8x128xi1>
      %528 = arith.select %527, %470, %521 : vector<1x8x128xi1>, vector<1x8x128xf32>
      %529 = arith.select %525, %471, %522 : vector<1x1x128xi1>, vector<1x1x128xf32>
      %530 = vector.extract_strided_slice %528 {offsets = [0, 3, 0], sizes = [1, 1, 128], strides = [1, 1, 1]} : vector<1x8x128xf32> to vector<1x1x128xf32>
      %cst_49 = arith.constant 1.000000e+00 : f32
      %531 = vector.broadcast %cst_49 : f32 to vector<1x1x128xf32>
      %532 = arith.divf %531, %530 : vector<1x1x128xf32>
      %533 = vector.broadcast %532 : vector<1x1x128xf32> to vector<1x8x128xf32>
      %534 = arith.mulf %528, %533 : vector<1x8x128xf32>
      %535 = arith.mulf %529, %532 : vector<1x1x128xf32>
      %536 = vector.broadcast %484 : vector<1x1x128xf32> to vector<1x8x128xf32>
      %537 = arith.mulf %536, %534 : vector<1x8x128xf32>
      %538 = arith.subf %434, %537 : vector<1x8x128xf32>
      %539 = arith.mulf %484, %535 : vector<1x1x128xf32>
      %540 = arith.subf %435, %539 : vector<1x1x128xf32>
      %541 = vector.broadcast %485 : vector<1x1x128xf32> to vector<1x8x128xf32>
      %542 = arith.mulf %541, %534 : vector<1x8x128xf32>
      %543 = arith.subf %443, %542 : vector<1x8x128xf32>
      %544 = arith.mulf %485, %535 : vector<1x1x128xf32>
      %545 = arith.subf %444, %544 : vector<1x1x128xf32>
      %546 = vector.shape_cast %501 : vector<1x1x128xi1> to vector<1x1x128xi1>
      %547 = vector.broadcast %546 : vector<1x1x128xi1> to vector<1x8x128xi1>
      %548 = arith.select %547, %538, %543 : vector<1x8x128xi1>, vector<1x8x128xf32>
      %549 = arith.select %501, %540, %545 : vector<1x1x128xi1>, vector<1x1x128xf32>
      %550 = vector.broadcast %486 : vector<1x1x128xf32> to vector<1x8x128xf32>
      %551 = arith.mulf %550, %534 : vector<1x8x128xf32>
      %552 = arith.subf %452, %551 : vector<1x8x128xf32>
      %553 = arith.mulf %486, %535 : vector<1x1x128xf32>
      %554 = arith.subf %453, %553 : vector<1x1x128xf32>
      %555 = vector.shape_cast %509 : vector<1x1x128xi1> to vector<1x1x128xi1>
      %556 = vector.broadcast %555 : vector<1x1x128xi1> to vector<1x8x128xi1>
      %557 = arith.select %556, %538, %552 : vector<1x8x128xi1>, vector<1x8x128xf32>
      %558 = arith.select %509, %540, %554 : vector<1x1x128xi1>, vector<1x1x128xf32>
      %559 = vector.broadcast %487 : vector<1x1x128xf32> to vector<1x8x128xf32>
      %560 = arith.mulf %559, %534 : vector<1x8x128xf32>
      %561 = arith.subf %461, %560 : vector<1x8x128xf32>
      %562 = arith.mulf %487, %535 : vector<1x1x128xf32>
      %563 = arith.subf %462, %562 : vector<1x1x128xf32>
      %564 = vector.shape_cast %517 : vector<1x1x128xi1> to vector<1x1x128xi1>
      %565 = vector.broadcast %564 : vector<1x1x128xi1> to vector<1x8x128xi1>
      %566 = arith.select %565, %538, %561 : vector<1x8x128xi1>, vector<1x8x128xf32>
      %567 = arith.select %517, %540, %563 : vector<1x1x128xi1>, vector<1x1x128xf32>
      %568 = vector.broadcast %488 : vector<1x1x128xf32> to vector<1x8x128xf32>
      %569 = arith.mulf %568, %534 : vector<1x8x128xf32>
      %570 = arith.subf %470, %569 : vector<1x8x128xf32>
      %571 = arith.mulf %488, %535 : vector<1x1x128xf32>
      %572 = arith.subf %471, %571 : vector<1x1x128xf32>
      %573 = vector.shape_cast %525 : vector<1x1x128xi1> to vector<1x1x128xi1>
      %574 = vector.broadcast %573 : vector<1x1x128xi1> to vector<1x8x128xi1>
      %575 = arith.select %574, %538, %570 : vector<1x8x128xi1>, vector<1x8x128xf32>
      %576 = arith.select %525, %540, %572 : vector<1x1x128xi1>, vector<1x1x128xf32>
      %577 = vector.extract_strided_slice %475 {offsets = [0, 3, 0], sizes = [1, 1, 128], strides = [1, 1, 1]} : vector<1x8x128xf32> to vector<1x1x128xf32>
      %578 = vector.broadcast %577 : vector<1x1x128xf32> to vector<1x8x128xf32>
      %579 = arith.mulf %578, %534 : vector<1x8x128xf32>
      %580 = arith.subf %475, %579 : vector<1x8x128xf32>
      %581 = arith.mulf %577, %535 : vector<1x1x128xf32>
      %582 = arith.subf %477, %581 : vector<1x1x128xf32>
      %583 = vector.extract_strided_slice %481 {offsets = [0, 3, 0], sizes = [1, 1, 128], strides = [1, 1, 1]} : vector<1x8x128xf32> to vector<1x1x128xf32>
      %584 = vector.broadcast %583 : vector<1x1x128xf32> to vector<1x8x128xf32>
      %585 = arith.mulf %584, %534 : vector<1x8x128xf32>
      %586 = arith.subf %481, %585 : vector<1x8x128xf32>
      %587 = arith.mulf %583, %535 : vector<1x1x128xf32>
      %588 = arith.subf %483, %587 : vector<1x1x128xf32>
      %589 = vector.extract_strided_slice %420 {offsets = [0, 3, 0], sizes = [1, 1, 128], strides = [1, 1, 1]} : vector<1x8x128xf32> to vector<1x1x128xf32>
      %590 = vector.broadcast %589 : vector<1x1x128xf32> to vector<1x8x128xf32>
      %591 = arith.mulf %590, %534 : vector<1x8x128xf32>
      %592 = arith.subf %420, %591 : vector<1x8x128xf32>
      %593 = arith.mulf %589, %535 : vector<1x1x128xf32>
      %594 = arith.subf %421, %593 : vector<1x1x128xf32>
      %595 = vector.extract_strided_slice %548 {offsets = [0, 4, 0], sizes = [1, 1, 128], strides = [1, 1, 1]} : vector<1x8x128xf32> to vector<1x1x128xf32>
      %596 = vector.extract_strided_slice %557 {offsets = [0, 4, 0], sizes = [1, 1, 128], strides = [1, 1, 1]} : vector<1x8x128xf32> to vector<1x1x128xf32>
      %597 = vector.extract_strided_slice %566 {offsets = [0, 4, 0], sizes = [1, 1, 128], strides = [1, 1, 1]} : vector<1x8x128xf32> to vector<1x1x128xf32>
      %598 = vector.extract_strided_slice %575 {offsets = [0, 4, 0], sizes = [1, 1, 128], strides = [1, 1, 1]} : vector<1x8x128xf32> to vector<1x1x128xf32>
      %599 = math.absf %595 : vector<1x1x128xf32>
      %600 = math.absf %596 : vector<1x1x128xf32>
      %601 = math.absf %597 : vector<1x1x128xf32>
      %602 = math.absf %598 : vector<1x1x128xf32>
      %603 = arith.maximumf %599, %600 : vector<1x1x128xf32>
      %604 = arith.maximumf %603, %601 : vector<1x1x128xf32>
      %605 = arith.maximumf %604, %602 : vector<1x1x128xf32>
      %606 = arith.cmpf oeq, %599, %605 : vector<1x1x128xf32>
      %607 = arith.cmpf oeq, %600, %605 : vector<1x1x128xf32>
      %cst_50 = arith.constant dense<true> : vector<1x1x128xi1>
      %608 = arith.xori %606, %cst_50 : vector<1x1x128xi1>
      %609 = arith.andi %607, %608 : vector<1x1x128xi1>
      %610 = arith.ori %606, %609 : vector<1x1x128xi1>
      %611 = vector.shape_cast %609 : vector<1x1x128xi1> to vector<1x1x128xi1>
      %612 = vector.broadcast %611 : vector<1x1x128xi1> to vector<1x8x128xi1>
      %613 = arith.select %612, %557, %548 : vector<1x8x128xi1>, vector<1x8x128xf32>
      %614 = arith.select %609, %558, %549 : vector<1x1x128xi1>, vector<1x1x128xf32>
      %615 = arith.cmpf oeq, %601, %605 : vector<1x1x128xf32>
      %cst_51 = arith.constant dense<true> : vector<1x1x128xi1>
      %616 = arith.xori %610, %cst_51 : vector<1x1x128xi1>
      %617 = arith.andi %615, %616 : vector<1x1x128xi1>
      %618 = arith.ori %610, %617 : vector<1x1x128xi1>
      %619 = vector.shape_cast %617 : vector<1x1x128xi1> to vector<1x1x128xi1>
      %620 = vector.broadcast %619 : vector<1x1x128xi1> to vector<1x8x128xi1>
      %621 = arith.select %620, %566, %613 : vector<1x8x128xi1>, vector<1x8x128xf32>
      %622 = arith.select %617, %567, %614 : vector<1x1x128xi1>, vector<1x1x128xf32>
      %623 = arith.cmpf oeq, %602, %605 : vector<1x1x128xf32>
      %cst_52 = arith.constant dense<true> : vector<1x1x128xi1>
      %624 = arith.xori %618, %cst_52 : vector<1x1x128xi1>
      %625 = arith.andi %623, %624 : vector<1x1x128xi1>
      %626 = vector.shape_cast %625 : vector<1x1x128xi1> to vector<1x1x128xi1>
      %627 = vector.broadcast %626 : vector<1x1x128xi1> to vector<1x8x128xi1>
      %628 = arith.select %627, %575, %621 : vector<1x8x128xi1>, vector<1x8x128xf32>
      %629 = arith.select %625, %576, %622 : vector<1x1x128xi1>, vector<1x1x128xf32>
      %630 = vector.extract_strided_slice %628 {offsets = [0, 4, 0], sizes = [1, 1, 128], strides = [1, 1, 1]} : vector<1x8x128xf32> to vector<1x1x128xf32>
      %cst_53 = arith.constant 1.000000e+00 : f32
      %631 = vector.broadcast %cst_53 : f32 to vector<1x1x128xf32>
      %632 = arith.divf %631, %630 : vector<1x1x128xf32>
      %633 = vector.broadcast %632 : vector<1x1x128xf32> to vector<1x8x128xf32>
      %634 = arith.mulf %628, %633 : vector<1x8x128xf32>
      %635 = arith.mulf %629, %632 : vector<1x1x128xf32>
      %636 = vector.broadcast %595 : vector<1x1x128xf32> to vector<1x8x128xf32>
      %637 = arith.mulf %636, %634 : vector<1x8x128xf32>
      %638 = arith.subf %548, %637 : vector<1x8x128xf32>
      %639 = arith.mulf %595, %635 : vector<1x1x128xf32>
      %640 = arith.subf %549, %639 : vector<1x1x128xf32>
      %641 = vector.broadcast %596 : vector<1x1x128xf32> to vector<1x8x128xf32>
      %642 = arith.mulf %641, %634 : vector<1x8x128xf32>
      %643 = arith.subf %557, %642 : vector<1x8x128xf32>
      %644 = arith.mulf %596, %635 : vector<1x1x128xf32>
      %645 = arith.subf %558, %644 : vector<1x1x128xf32>
      %646 = vector.shape_cast %609 : vector<1x1x128xi1> to vector<1x1x128xi1>
      %647 = vector.broadcast %646 : vector<1x1x128xi1> to vector<1x8x128xi1>
      %648 = arith.select %647, %638, %643 : vector<1x8x128xi1>, vector<1x8x128xf32>
      %649 = arith.select %609, %640, %645 : vector<1x1x128xi1>, vector<1x1x128xf32>
      %650 = vector.broadcast %597 : vector<1x1x128xf32> to vector<1x8x128xf32>
      %651 = arith.mulf %650, %634 : vector<1x8x128xf32>
      %652 = arith.subf %566, %651 : vector<1x8x128xf32>
      %653 = arith.mulf %597, %635 : vector<1x1x128xf32>
      %654 = arith.subf %567, %653 : vector<1x1x128xf32>
      %655 = vector.shape_cast %617 : vector<1x1x128xi1> to vector<1x1x128xi1>
      %656 = vector.broadcast %655 : vector<1x1x128xi1> to vector<1x8x128xi1>
      %657 = arith.select %656, %638, %652 : vector<1x8x128xi1>, vector<1x8x128xf32>
      %658 = arith.select %617, %640, %654 : vector<1x1x128xi1>, vector<1x1x128xf32>
      %659 = vector.broadcast %598 : vector<1x1x128xf32> to vector<1x8x128xf32>
      %660 = arith.mulf %659, %634 : vector<1x8x128xf32>
      %661 = arith.subf %575, %660 : vector<1x8x128xf32>
      %662 = arith.mulf %598, %635 : vector<1x1x128xf32>
      %663 = arith.subf %576, %662 : vector<1x1x128xf32>
      %664 = vector.shape_cast %625 : vector<1x1x128xi1> to vector<1x1x128xi1>
      %665 = vector.broadcast %664 : vector<1x1x128xi1> to vector<1x8x128xi1>
      %666 = arith.select %665, %638, %661 : vector<1x8x128xi1>, vector<1x8x128xf32>
      %667 = arith.select %625, %640, %663 : vector<1x1x128xi1>, vector<1x1x128xf32>
      %668 = vector.extract_strided_slice %580 {offsets = [0, 4, 0], sizes = [1, 1, 128], strides = [1, 1, 1]} : vector<1x8x128xf32> to vector<1x1x128xf32>
      %669 = vector.broadcast %668 : vector<1x1x128xf32> to vector<1x8x128xf32>
      %670 = arith.mulf %669, %634 : vector<1x8x128xf32>
      %671 = arith.subf %580, %670 : vector<1x8x128xf32>
      %672 = arith.mulf %668, %635 : vector<1x1x128xf32>
      %673 = arith.subf %582, %672 : vector<1x1x128xf32>
      %674 = vector.extract_strided_slice %586 {offsets = [0, 4, 0], sizes = [1, 1, 128], strides = [1, 1, 1]} : vector<1x8x128xf32> to vector<1x1x128xf32>
      %675 = vector.broadcast %674 : vector<1x1x128xf32> to vector<1x8x128xf32>
      %676 = arith.mulf %675, %634 : vector<1x8x128xf32>
      %677 = arith.subf %586, %676 : vector<1x8x128xf32>
      %678 = arith.mulf %674, %635 : vector<1x1x128xf32>
      %679 = arith.subf %588, %678 : vector<1x1x128xf32>
      %680 = vector.extract_strided_slice %592 {offsets = [0, 4, 0], sizes = [1, 1, 128], strides = [1, 1, 1]} : vector<1x8x128xf32> to vector<1x1x128xf32>
      %681 = vector.broadcast %680 : vector<1x1x128xf32> to vector<1x8x128xf32>
      %682 = arith.mulf %681, %634 : vector<1x8x128xf32>
      %683 = arith.subf %592, %682 : vector<1x8x128xf32>
      %684 = arith.mulf %680, %635 : vector<1x1x128xf32>
      %685 = arith.subf %594, %684 : vector<1x1x128xf32>
      %686 = vector.extract_strided_slice %534 {offsets = [0, 4, 0], sizes = [1, 1, 128], strides = [1, 1, 1]} : vector<1x8x128xf32> to vector<1x1x128xf32>
      %687 = vector.broadcast %686 : vector<1x1x128xf32> to vector<1x8x128xf32>
      %688 = arith.mulf %687, %634 : vector<1x8x128xf32>
      %689 = arith.subf %534, %688 : vector<1x8x128xf32>
      %690 = arith.mulf %686, %635 : vector<1x1x128xf32>
      %691 = arith.subf %535, %690 : vector<1x1x128xf32>
      %692 = vector.extract_strided_slice %648 {offsets = [0, 5, 0], sizes = [1, 1, 128], strides = [1, 1, 1]} : vector<1x8x128xf32> to vector<1x1x128xf32>
      %693 = vector.extract_strided_slice %657 {offsets = [0, 5, 0], sizes = [1, 1, 128], strides = [1, 1, 1]} : vector<1x8x128xf32> to vector<1x1x128xf32>
      %694 = vector.extract_strided_slice %666 {offsets = [0, 5, 0], sizes = [1, 1, 128], strides = [1, 1, 1]} : vector<1x8x128xf32> to vector<1x1x128xf32>
      %695 = math.absf %692 : vector<1x1x128xf32>
      %696 = math.absf %693 : vector<1x1x128xf32>
      %697 = math.absf %694 : vector<1x1x128xf32>
      %698 = arith.maximumf %695, %696 : vector<1x1x128xf32>
      %699 = arith.maximumf %698, %697 : vector<1x1x128xf32>
      %700 = arith.cmpf oeq, %695, %699 : vector<1x1x128xf32>
      %701 = arith.cmpf oeq, %696, %699 : vector<1x1x128xf32>
      %cst_54 = arith.constant dense<true> : vector<1x1x128xi1>
      %702 = arith.xori %700, %cst_54 : vector<1x1x128xi1>
      %703 = arith.andi %701, %702 : vector<1x1x128xi1>
      %704 = arith.ori %700, %703 : vector<1x1x128xi1>
      %705 = vector.shape_cast %703 : vector<1x1x128xi1> to vector<1x1x128xi1>
      %706 = vector.broadcast %705 : vector<1x1x128xi1> to vector<1x8x128xi1>
      %707 = arith.select %706, %657, %648 : vector<1x8x128xi1>, vector<1x8x128xf32>
      %708 = arith.select %703, %658, %649 : vector<1x1x128xi1>, vector<1x1x128xf32>
      %709 = arith.cmpf oeq, %697, %699 : vector<1x1x128xf32>
      %cst_55 = arith.constant dense<true> : vector<1x1x128xi1>
      %710 = arith.xori %704, %cst_55 : vector<1x1x128xi1>
      %711 = arith.andi %709, %710 : vector<1x1x128xi1>
      %712 = vector.shape_cast %711 : vector<1x1x128xi1> to vector<1x1x128xi1>
      %713 = vector.broadcast %712 : vector<1x1x128xi1> to vector<1x8x128xi1>
      %714 = arith.select %713, %666, %707 : vector<1x8x128xi1>, vector<1x8x128xf32>
      %715 = arith.select %711, %667, %708 : vector<1x1x128xi1>, vector<1x1x128xf32>
      %716 = vector.extract_strided_slice %714 {offsets = [0, 5, 0], sizes = [1, 1, 128], strides = [1, 1, 1]} : vector<1x8x128xf32> to vector<1x1x128xf32>
      %cst_56 = arith.constant 1.000000e+00 : f32
      %717 = vector.broadcast %cst_56 : f32 to vector<1x1x128xf32>
      %718 = arith.divf %717, %716 : vector<1x1x128xf32>
      %719 = vector.broadcast %718 : vector<1x1x128xf32> to vector<1x8x128xf32>
      %720 = arith.mulf %714, %719 : vector<1x8x128xf32>
      %721 = arith.mulf %715, %718 : vector<1x1x128xf32>
      %722 = vector.broadcast %692 : vector<1x1x128xf32> to vector<1x8x128xf32>
      %723 = arith.mulf %722, %720 : vector<1x8x128xf32>
      %724 = arith.subf %648, %723 : vector<1x8x128xf32>
      %725 = arith.mulf %692, %721 : vector<1x1x128xf32>
      %726 = arith.subf %649, %725 : vector<1x1x128xf32>
      %727 = vector.broadcast %693 : vector<1x1x128xf32> to vector<1x8x128xf32>
      %728 = arith.mulf %727, %720 : vector<1x8x128xf32>
      %729 = arith.subf %657, %728 : vector<1x8x128xf32>
      %730 = arith.mulf %693, %721 : vector<1x1x128xf32>
      %731 = arith.subf %658, %730 : vector<1x1x128xf32>
      %732 = vector.shape_cast %703 : vector<1x1x128xi1> to vector<1x1x128xi1>
      %733 = vector.broadcast %732 : vector<1x1x128xi1> to vector<1x8x128xi1>
      %734 = arith.select %733, %724, %729 : vector<1x8x128xi1>, vector<1x8x128xf32>
      %735 = arith.select %703, %726, %731 : vector<1x1x128xi1>, vector<1x1x128xf32>
      %736 = vector.broadcast %694 : vector<1x1x128xf32> to vector<1x8x128xf32>
      %737 = arith.mulf %736, %720 : vector<1x8x128xf32>
      %738 = arith.subf %666, %737 : vector<1x8x128xf32>
      %739 = arith.mulf %694, %721 : vector<1x1x128xf32>
      %740 = arith.subf %667, %739 : vector<1x1x128xf32>
      %741 = vector.shape_cast %711 : vector<1x1x128xi1> to vector<1x1x128xi1>
      %742 = vector.broadcast %741 : vector<1x1x128xi1> to vector<1x8x128xi1>
      %743 = arith.select %742, %724, %738 : vector<1x8x128xi1>, vector<1x8x128xf32>
      %744 = arith.select %711, %726, %740 : vector<1x1x128xi1>, vector<1x1x128xf32>
      %745 = vector.extract_strided_slice %671 {offsets = [0, 5, 0], sizes = [1, 1, 128], strides = [1, 1, 1]} : vector<1x8x128xf32> to vector<1x1x128xf32>
      %746 = vector.broadcast %745 : vector<1x1x128xf32> to vector<1x8x128xf32>
      %747 = arith.mulf %746, %720 : vector<1x8x128xf32>
      %748 = arith.subf %671, %747 : vector<1x8x128xf32>
      %749 = arith.mulf %745, %721 : vector<1x1x128xf32>
      %750 = arith.subf %673, %749 : vector<1x1x128xf32>
      %751 = vector.extract_strided_slice %677 {offsets = [0, 5, 0], sizes = [1, 1, 128], strides = [1, 1, 1]} : vector<1x8x128xf32> to vector<1x1x128xf32>
      %752 = vector.broadcast %751 : vector<1x1x128xf32> to vector<1x8x128xf32>
      %753 = arith.mulf %752, %720 : vector<1x8x128xf32>
      %754 = arith.subf %677, %753 : vector<1x8x128xf32>
      %755 = arith.mulf %751, %721 : vector<1x1x128xf32>
      %756 = arith.subf %679, %755 : vector<1x1x128xf32>
      %757 = vector.extract_strided_slice %683 {offsets = [0, 5, 0], sizes = [1, 1, 128], strides = [1, 1, 1]} : vector<1x8x128xf32> to vector<1x1x128xf32>
      %758 = vector.broadcast %757 : vector<1x1x128xf32> to vector<1x8x128xf32>
      %759 = arith.mulf %758, %720 : vector<1x8x128xf32>
      %760 = arith.subf %683, %759 : vector<1x8x128xf32>
      %761 = arith.mulf %757, %721 : vector<1x1x128xf32>
      %762 = arith.subf %685, %761 : vector<1x1x128xf32>
      %763 = vector.extract_strided_slice %689 {offsets = [0, 5, 0], sizes = [1, 1, 128], strides = [1, 1, 1]} : vector<1x8x128xf32> to vector<1x1x128xf32>
      %764 = vector.broadcast %763 : vector<1x1x128xf32> to vector<1x8x128xf32>
      %765 = arith.mulf %764, %720 : vector<1x8x128xf32>
      %766 = arith.subf %689, %765 : vector<1x8x128xf32>
      %767 = arith.mulf %763, %721 : vector<1x1x128xf32>
      %768 = arith.subf %691, %767 : vector<1x1x128xf32>
      %769 = vector.extract_strided_slice %634 {offsets = [0, 5, 0], sizes = [1, 1, 128], strides = [1, 1, 1]} : vector<1x8x128xf32> to vector<1x1x128xf32>
      %770 = vector.broadcast %769 : vector<1x1x128xf32> to vector<1x8x128xf32>
      %771 = arith.mulf %770, %720 : vector<1x8x128xf32>
      %772 = arith.subf %634, %771 : vector<1x8x128xf32>
      %773 = arith.mulf %769, %721 : vector<1x1x128xf32>
      %774 = arith.subf %635, %773 : vector<1x1x128xf32>
      %775 = vector.extract_strided_slice %734 {offsets = [0, 6, 0], sizes = [1, 1, 128], strides = [1, 1, 1]} : vector<1x8x128xf32> to vector<1x1x128xf32>
      %776 = vector.extract_strided_slice %743 {offsets = [0, 6, 0], sizes = [1, 1, 128], strides = [1, 1, 1]} : vector<1x8x128xf32> to vector<1x1x128xf32>
      %777 = math.absf %775 : vector<1x1x128xf32>
      %778 = math.absf %776 : vector<1x1x128xf32>
      %779 = arith.maximumf %777, %778 : vector<1x1x128xf32>
      %780 = arith.cmpf oeq, %777, %779 : vector<1x1x128xf32>
      %781 = arith.cmpf oeq, %778, %779 : vector<1x1x128xf32>
      %cst_57 = arith.constant dense<true> : vector<1x1x128xi1>
      %782 = arith.xori %780, %cst_57 : vector<1x1x128xi1>
      %783 = arith.andi %781, %782 : vector<1x1x128xi1>
      %784 = vector.shape_cast %783 : vector<1x1x128xi1> to vector<1x1x128xi1>
      %785 = vector.broadcast %784 : vector<1x1x128xi1> to vector<1x8x128xi1>
      %786 = arith.select %785, %743, %734 : vector<1x8x128xi1>, vector<1x8x128xf32>
      %787 = arith.select %783, %744, %735 : vector<1x1x128xi1>, vector<1x1x128xf32>
      %788 = vector.extract_strided_slice %786 {offsets = [0, 6, 0], sizes = [1, 1, 128], strides = [1, 1, 1]} : vector<1x8x128xf32> to vector<1x1x128xf32>
      %cst_58 = arith.constant 1.000000e+00 : f32
      %789 = vector.broadcast %cst_58 : f32 to vector<1x1x128xf32>
      %790 = arith.divf %789, %788 : vector<1x1x128xf32>
      %791 = vector.broadcast %790 : vector<1x1x128xf32> to vector<1x8x128xf32>
      %792 = arith.mulf %786, %791 : vector<1x8x128xf32>
      %793 = arith.mulf %787, %790 : vector<1x1x128xf32>
      %794 = vector.broadcast %775 : vector<1x1x128xf32> to vector<1x8x128xf32>
      %795 = arith.mulf %794, %792 : vector<1x8x128xf32>
      %796 = arith.subf %734, %795 : vector<1x8x128xf32>
      %797 = arith.mulf %775, %793 : vector<1x1x128xf32>
      %798 = arith.subf %735, %797 : vector<1x1x128xf32>
      %799 = vector.broadcast %776 : vector<1x1x128xf32> to vector<1x8x128xf32>
      %800 = arith.mulf %799, %792 : vector<1x8x128xf32>
      %801 = arith.subf %743, %800 : vector<1x8x128xf32>
      %802 = arith.mulf %776, %793 : vector<1x1x128xf32>
      %803 = arith.subf %744, %802 : vector<1x1x128xf32>
      %804 = vector.shape_cast %783 : vector<1x1x128xi1> to vector<1x1x128xi1>
      %805 = vector.broadcast %804 : vector<1x1x128xi1> to vector<1x8x128xi1>
      %806 = arith.select %805, %796, %801 : vector<1x8x128xi1>, vector<1x8x128xf32>
      %807 = arith.select %783, %798, %803 : vector<1x1x128xi1>, vector<1x1x128xf32>
      %808 = vector.extract_strided_slice %748 {offsets = [0, 6, 0], sizes = [1, 1, 128], strides = [1, 1, 1]} : vector<1x8x128xf32> to vector<1x1x128xf32>
      %809 = vector.broadcast %808 : vector<1x1x128xf32> to vector<1x8x128xf32>
      %810 = arith.mulf %809, %792 : vector<1x8x128xf32>
      %811 = arith.subf %748, %810 : vector<1x8x128xf32>
      %812 = arith.mulf %808, %793 : vector<1x1x128xf32>
      %813 = arith.subf %750, %812 : vector<1x1x128xf32>
      %814 = vector.extract_strided_slice %754 {offsets = [0, 6, 0], sizes = [1, 1, 128], strides = [1, 1, 1]} : vector<1x8x128xf32> to vector<1x1x128xf32>
      %815 = vector.broadcast %814 : vector<1x1x128xf32> to vector<1x8x128xf32>
      %816 = arith.mulf %815, %792 : vector<1x8x128xf32>
      %817 = arith.subf %754, %816 : vector<1x8x128xf32>
      %818 = arith.mulf %814, %793 : vector<1x1x128xf32>
      %819 = arith.subf %756, %818 : vector<1x1x128xf32>
      %820 = vector.extract_strided_slice %760 {offsets = [0, 6, 0], sizes = [1, 1, 128], strides = [1, 1, 1]} : vector<1x8x128xf32> to vector<1x1x128xf32>
      %821 = vector.broadcast %820 : vector<1x1x128xf32> to vector<1x8x128xf32>
      %822 = arith.mulf %821, %792 : vector<1x8x128xf32>
      %823 = arith.subf %760, %822 : vector<1x8x128xf32>
      %824 = arith.mulf %820, %793 : vector<1x1x128xf32>
      %825 = arith.subf %762, %824 : vector<1x1x128xf32>
      %826 = vector.extract_strided_slice %766 {offsets = [0, 6, 0], sizes = [1, 1, 128], strides = [1, 1, 1]} : vector<1x8x128xf32> to vector<1x1x128xf32>
      %827 = vector.broadcast %826 : vector<1x1x128xf32> to vector<1x8x128xf32>
      %828 = arith.mulf %827, %792 : vector<1x8x128xf32>
      %829 = arith.subf %766, %828 : vector<1x8x128xf32>
      %830 = arith.mulf %826, %793 : vector<1x1x128xf32>
      %831 = arith.subf %768, %830 : vector<1x1x128xf32>
      %832 = vector.extract_strided_slice %772 {offsets = [0, 6, 0], sizes = [1, 1, 128], strides = [1, 1, 1]} : vector<1x8x128xf32> to vector<1x1x128xf32>
      %833 = vector.broadcast %832 : vector<1x1x128xf32> to vector<1x8x128xf32>
      %834 = arith.mulf %833, %792 : vector<1x8x128xf32>
      %835 = arith.subf %772, %834 : vector<1x8x128xf32>
      %836 = arith.mulf %832, %793 : vector<1x1x128xf32>
      %837 = arith.subf %774, %836 : vector<1x1x128xf32>
      %838 = vector.extract_strided_slice %720 {offsets = [0, 6, 0], sizes = [1, 1, 128], strides = [1, 1, 1]} : vector<1x8x128xf32> to vector<1x1x128xf32>
      %839 = vector.broadcast %838 : vector<1x1x128xf32> to vector<1x8x128xf32>
      %840 = arith.mulf %839, %792 : vector<1x8x128xf32>
      %841 = arith.subf %720, %840 : vector<1x8x128xf32>
      %842 = arith.mulf %838, %793 : vector<1x1x128xf32>
      %843 = arith.subf %721, %842 : vector<1x1x128xf32>
      %844 = vector.extract_strided_slice %806 {offsets = [0, 7, 0], sizes = [1, 1, 128], strides = [1, 1, 1]} : vector<1x8x128xf32> to vector<1x1x128xf32>
      %cst_59 = arith.constant 1.000000e+00 : f32
      %845 = vector.broadcast %cst_59 : f32 to vector<1x1x128xf32>
      %846 = arith.divf %845, %844 : vector<1x1x128xf32>
      %847 = arith.mulf %807, %846 : vector<1x1x128xf32>
      %848 = vector.extract_strided_slice %811 {offsets = [0, 7, 0], sizes = [1, 1, 128], strides = [1, 1, 1]} : vector<1x8x128xf32> to vector<1x1x128xf32>
      %849 = arith.mulf %848, %847 : vector<1x1x128xf32>
      %850 = arith.subf %813, %849 : vector<1x1x128xf32>
      %851 = vector.extract_strided_slice %817 {offsets = [0, 7, 0], sizes = [1, 1, 128], strides = [1, 1, 1]} : vector<1x8x128xf32> to vector<1x1x128xf32>
      %852 = arith.mulf %851, %847 : vector<1x1x128xf32>
      %853 = arith.subf %819, %852 : vector<1x1x128xf32>
      %854 = vector.extract_strided_slice %823 {offsets = [0, 7, 0], sizes = [1, 1, 128], strides = [1, 1, 1]} : vector<1x8x128xf32> to vector<1x1x128xf32>
      %855 = arith.mulf %854, %847 : vector<1x1x128xf32>
      %856 = arith.subf %825, %855 : vector<1x1x128xf32>
      %857 = vector.extract_strided_slice %829 {offsets = [0, 7, 0], sizes = [1, 1, 128], strides = [1, 1, 1]} : vector<1x8x128xf32> to vector<1x1x128xf32>
      %858 = arith.mulf %857, %847 : vector<1x1x128xf32>
      %859 = arith.subf %831, %858 : vector<1x1x128xf32>
      %860 = vector.extract_strided_slice %835 {offsets = [0, 7, 0], sizes = [1, 1, 128], strides = [1, 1, 1]} : vector<1x8x128xf32> to vector<1x1x128xf32>
      %861 = arith.mulf %860, %847 : vector<1x1x128xf32>
      %862 = arith.subf %837, %861 : vector<1x1x128xf32>
      %863 = vector.extract_strided_slice %841 {offsets = [0, 7, 0], sizes = [1, 1, 128], strides = [1, 1, 1]} : vector<1x8x128xf32> to vector<1x1x128xf32>
      %864 = arith.mulf %863, %847 : vector<1x1x128xf32>
      %865 = arith.subf %843, %864 : vector<1x1x128xf32>
      %866 = vector.extract_strided_slice %792 {offsets = [0, 7, 0], sizes = [1, 1, 128], strides = [1, 1, 1]} : vector<1x8x128xf32> to vector<1x1x128xf32>
      %867 = arith.mulf %866, %847 : vector<1x1x128xf32>
      %868 = arith.subf %793, %867 : vector<1x1x128xf32>
      %c0_60 = arith.constant 0 : index
      %c0_61 = arith.constant 0 : index
      %c0_62 = arith.constant 0 : index
      %869 = vector.load %arg6[%c0_60, %c0_61, %c0_62] : memref<8x1x128xf32, #tpu.memory_space<vmem>>, vector<1x1x128xf32>
      tpu.vector_store %arg6[%c0_60, %c0_61, %c0_62], %850 {strides = array<i32>} : memref<8x1x128xf32, #tpu.memory_space<vmem>>, vector<1x1x128xf32>,
      %c1 = arith.constant 1 : index
      %c0_63 = arith.constant 0 : index
      %c0_64 = arith.constant 0 : index
      %870 = vector.load %arg6[%c1, %c0_63, %c0_64] : memref<8x1x128xf32, #tpu.memory_space<vmem>>, vector<1x1x128xf32>
      tpu.vector_store %arg6[%c1, %c0_63, %c0_64], %853 {strides = array<i32>} : memref<8x1x128xf32, #tpu.memory_space<vmem>>, vector<1x1x128xf32>,
      %c2 = arith.constant 2 : index
      %c0_65 = arith.constant 0 : index
      %c0_66 = arith.constant 0 : index
      %871 = vector.load %arg6[%c2, %c0_65, %c0_66] : memref<8x1x128xf32, #tpu.memory_space<vmem>>, vector<1x1x128xf32>
      tpu.vector_store %arg6[%c2, %c0_65, %c0_66], %856 {strides = array<i32>} : memref<8x1x128xf32, #tpu.memory_space<vmem>>, vector<1x1x128xf32>,
      %c3 = arith.constant 3 : index
      %c0_67 = arith.constant 0 : index
      %c0_68 = arith.constant 0 : index
      %872 = vector.load %arg6[%c3, %c0_67, %c0_68] : memref<8x1x128xf32, #tpu.memory_space<vmem>>, vector<1x1x128xf32>
      tpu.vector_store %arg6[%c3, %c0_67, %c0_68], %859 {strides = array<i32>} : memref<8x1x128xf32, #tpu.memory_space<vmem>>, vector<1x1x128xf32>,
      %c4 = arith.constant 4 : index
      %c0_69 = arith.constant 0 : index
      %c0_70 = arith.constant 0 : index
      %873 = vector.load %arg6[%c4, %c0_69, %c0_70] : memref<8x1x128xf32, #tpu.memory_space<vmem>>, vector<1x1x128xf32>
      tpu.vector_store %arg6[%c4, %c0_69, %c0_70], %862 {strides = array<i32>} : memref<8x1x128xf32, #tpu.memory_space<vmem>>, vector<1x1x128xf32>,
      %c5 = arith.constant 5 : index
      %c0_71 = arith.constant 0 : index
      %c0_72 = arith.constant 0 : index
      %874 = vector.load %arg6[%c5, %c0_71, %c0_72] : memref<8x1x128xf32, #tpu.memory_space<vmem>>, vector<1x1x128xf32>
      tpu.vector_store %arg6[%c5, %c0_71, %c0_72], %865 {strides = array<i32>} : memref<8x1x128xf32, #tpu.memory_space<vmem>>, vector<1x1x128xf32>,
      %c6 = arith.constant 6 : index
      %c0_73 = arith.constant 0 : index
      %c0_74 = arith.constant 0 : index
      %875 = vector.load %arg6[%c6, %c0_73, %c0_74] : memref<8x1x128xf32, #tpu.memory_space<vmem>>, vector<1x1x128xf32>
      tpu.vector_store %arg6[%c6, %c0_73, %c0_74], %868 {strides = array<i32>} : memref<8x1x128xf32, #tpu.memory_space<vmem>>, vector<1x1x128xf32>,
      %c7 = arith.constant 7 : index
      %c0_75 = arith.constant 0 : index
      %c0_76 = arith.constant 0 : index
      %876 = vector.load %arg6[%c7, %c0_75, %c0_76] : memref<8x1x128xf32, #tpu.memory_space<vmem>>, vector<1x1x128xf32>
      tpu.vector_store %arg6[%c7, %c0_75, %c0_76], %847 {strides = array<i32>} : memref<8x1x128xf32, #tpu.memory_space<vmem>>, vector<1x1x128xf32>,
    } else {
    }
    %c0 = arith.constant 0 : index
    %c0_1 = arith.constant 0 : index
    %c0_2 = arith.constant 0 : index
    %3 = vector.load %arg6[%c0, %c0_1, %c0_2] : memref<8x1x128xf32, #tpu.memory_space<vmem>>, vector<8x1x128xf32>
    %c0_3 = arith.constant 0 : index
    %c0_4 = arith.constant 0 : index
    %c0_5 = arith.constant 0 : index
    %4 = vector.load %arg4[%c0_3, %c0_4, %c0_5] : memref<8x8x128xf32, #tpu.memory_space<vmem>>, vector<8x8x128xf32>
    %5 = vector.broadcast %3 : vector<8x1x128xf32> to vector<8x8x128xf32>
    %6 = arith.mulf %5, %4 : vector<8x8x128xf32>
    %cst = arith.constant dense<0.000000e+00> : vector<8x128xf32>
    %7 = vector.multi_reduction <add>, %6, %cst [0] : vector<8x8x128xf32> to vector<8x128xf32>
    %c0_6 = arith.constant 0 : index
    %c0_7 = arith.constant 0 : index
    %8 = vector.load %arg5[%c0_6, %c0_7] : memref<8x128xf32, #tpu.memory_space<vmem>>, vector<8x128xf32>
    tpu.vector_store %arg5[%c0_6, %c0_7], %7 {strides = array<i32>} : memref<8x128xf32, #tpu.memory_space<vmem>>, vector<8x128xf32>,
    return
  }
  func.func @transform_0(%arg0: i32, %arg1: i32) -> (i32, i32, i32) {
    %c0_i32 = arith.constant 0 : i32
    %c0_i32_0 = arith.constant 0 : i32
    %c0_i32_1 = arith.constant 0 : i32
    return %c0_i32, %c0_i32_0, %arg0 : i32, i32, i32
  }
  func.func @transform_1(%arg0: i32, %arg1: i32) -> (i32, i32, i32) {
    %c0_i32 = arith.constant 0 : i32
    %c0_i32_0 = arith.constant 0 : i32
    %c0_i32_1 = arith.constant 0 : i32
    return %c0_i32, %c0_i32_0, %arg0 : i32, i32, i32
  }
  func.func @transform_2(%arg0: i32, %arg1: i32) -> (i32, i32, i32) {
    %c0_i32 = arith.constant 0 : i32
    %c0_i32_0 = arith.constant 0 : i32
    return %c0_i32, %arg1, %arg0 : i32, i32, i32
  }
  func.func @transform_3(%arg0: i32, %arg1: i32) -> (i32, i32) {
    %c0_i32 = arith.constant 0 : i32
    return %arg1, %arg0 : i32, i32
  }
}

</mosaic_0001>

<bundles_post_ra>
// kernel: tpu_custom_call.1
= control target key start
LH: loop header
LB: loop body
LE: loop exit
PB: predicated region body
PF: predicated region fallthrough
CT: control target
= control target key end

     0   :  { %8 = vsyncpa [#allocation4], 0  ;;  %s3689_s0 = inlined_call_operand.hbm [shape: f32[8,2,128], index: 0, kind: input, shape index: {}]   ;;  %s3690_s1 = inlined_call_operand.hbm [shape: f32[2,8,128], index: 1, kind: input, shape index: {}]   ;;  %s3691_s2 = inlined_call_operand.hbm [shape: f32[8,8,128], index: 2, kind: input, shape index: {}]   ;;  %s3692_s3 = inlined_call_operand.hbm [shape: f32[8,128], index: 3, kind: output, shape index: {}]  }
   0x1   :  { %9 = vsyncpa [#allocation7], 0 }
   0x2   :  { %10 = vsyncpa [#allocation5], 0  ;;  %s1906_s12 = smov [#allocation6]   ;;  %s1812_s16 = scalar_lea.hbm %s3690_s1, 256 }
   0x3   :  { %s28_s13 = sshll.u32 %s1906_s12, 4  ;;  %p1813_p0 = scmp.ne.s32.totalorder %s3690_s1, %s1812_s16  ;;  %s29_s13 = int_to_ptr.vmem [resolvable:$true] %s28_s13 }
   0x4   :  { %p1816_p1 = scmp.lt.u32.totalorder %s1812_s16, %s3690_s1 }
   0x6   :  { %p1818_p2 = pnand %p1816_p1, %p1813_p0 }
   0x8   :  { %1821 = shalt.err (!%p1818_p2)
}
   0x9   :  { %s1822_s21 = scalar_lea.vmem %s29_s13, 256  ;;  %p1827_p4 = scmp.lt.s32.totalorder %s29_s13, %s29_s13 }
   0xa   :  { %p1823_p3 = scmp.ne.s32.totalorder %s29_s13, %s1822_s21  ;;  %p1828_p5 = scmp.lt.s32.totalorder %s1822_s21, %s1822_s21 }
   0xc   :  { %p1829_p6 = por %p1828_p5, %p1827_p4 }
   0xe   :  { %p1830_p7 = pnand %p1829_p6, %p1823_p3 }
  0x10   :  { %1833 = shalt.err (!%p1830_p7)
}
  0x11   :  { %s1907_s22 = smov 128   ;;  %s1908_s23 = smov 8  }
  0x12   :  { %34 = dma.hbm_to_vmem [thread:$0]  %s3690_s1, 256, %s29_s13, [#allocation7], %s1907_s22, %s1907_s22, %s1908_s23  }
  0x13   :  { %s1909_s26 = smov [#allocation3]   ;;  %s1834_s30 = scalar_lea.hbm %s3689_s0, 256 }
  0x14   :  { %s16_s27 = sshll.u32 %s1909_s26, 4  ;;  %p1835_p8 = scmp.ne.s32.totalorder %s3689_s0, %s1834_s30  ;;  %s17_s27 = int_to_ptr.vmem [resolvable:$true] %s16_s27 }
  0x15   :  { %p1838_p9 = scmp.lt.u32.totalorder %s1834_s30, %s3689_s0 }
  0x17   :  { %p1840_p10 = pnand %p1838_p9, %p1835_p8 }
  0x19   :  { %1843 = shalt.err (!%p1840_p10)
}
  0x1a   :  { %s1844_s8 = scalar_lea.vmem %s17_s27, 256  ;;  %p1849_p12 = scmp.lt.s32.totalorder %s17_s27, %s17_s27 }
  0x1b   :  { %p1845_p11 = scmp.ne.s32.totalorder %s17_s27, %s1844_s8  ;;  %p1850_p13 = scmp.lt.s32.totalorder %s1844_s8, %s1844_s8 }
  0x1d   :  { %p1851_p0 = por %p1850_p13, %p1849_p12 }
  0x1f   :  { %p1852_p1 = pnand %p1851_p0, %p1845_p11 }
  0x21   :  { %1855 = shalt.err (!%p1852_p1)
}
  0x22   :  { %s1910_s1 = smov 32   ;;  %s1911_s9 = smov 2  }
  0x23   :  { %22 = dma.hbm_to_vmem [thread:$0]  %s3689_s0, 256, %s17_s27, [#allocation4], %s1910_s1, %s1910_s1, %s1911_s9  }
  0x24   :  { %s1912_s12 = smov [#allocation8]   ;;  %s1856_s16 = scalar_lea.hbm %s3691_s2, 1024 }
  0x25   :  { %s40_s13 = sshll.u32 %s1912_s12, 4  ;;  %p1857_p2 = scmp.ne.s32.totalorder %s3691_s2, %s1856_s16  ;;  %s41_s13 = int_to_ptr.vmem [resolvable:$true] %s40_s13 }
  0x26   :  { %p1860_p3 = scmp.lt.u32.totalorder %s1856_s16, %s3691_s2 }
  0x28   :  { %p1862_p4 = pnand %p1860_p3, %p1857_p2 }
  0x2a   :  { %1865 = shalt.err (!%p1862_p4)
}
  0x2b   :  { %s1866_s21 = scalar_lea.vmem %s41_s13, 1024  ;;  %p1871_p6 = scmp.lt.s32.totalorder %s41_s13, %s41_s13 }
  0x2c   :  { %p1867_p5 = scmp.ne.s32.totalorder %s41_s13, %s1866_s21  ;;  %p1872_p7 = scmp.lt.s32.totalorder %s1866_s21, %s1866_s21 }
  0x2e   :  { %p1873_p8 = por %p1872_p7, %p1871_p6 }
  0x30   :  { %p1874_p9 = pnand %p1873_p8, %p1867_p5 }
  0x32   :  { %1877 = shalt.err (!%p1874_p9)
}
  0x33   :  { %46 = dma.hbm_to_vmem [thread:$0]  %s3691_s2, 1024, %s41_s13, [#allocation7], %s1907_s22, %s1907_s22, %s1908_s23  }
  0x34   :  { %1900 = dma.done.wait [#allocation4], 256  }
  0x35   :  { %1901 = vsyncadd [#allocation4], 4294967040 }
  0x36   :  { %1902 = dma.done.wait [#allocation7], 1280  }
  0x37   :  { %1903 = vsyncadd [#allocation7], 4294966016  ;;  %v70_v0 = vlaneseq  ;;  %v1986_v4 = vld [vmem:[#allocation3] sm:$0x3]  ;;  %v1988_v5 = vld [vmem:[#allocation3 + $0x2] sm:$0x3] }
  0x38   :  { %v1990_v6 = vld [vmem:[#allocation3 + $0x4] sm:$0x3]  ;;  %v1992_v7 = vld [vmem:[#allocation3 + $0x6] sm:$0x3]  ;;  %v1994_v8 = vld [vmem:[#allocation3 + $0x8] sm:$0x3] }
  0x39   :  { %v1978_v1 = vshrl.u32 %v70_v0, 7  ;;  %v1996_v9 = vld [vmem:[#allocation3 + $0xa] sm:$0x3]  ;;  %v2004_v13 = vld [vmem:[#allocation3 + $0xc] sm:$0x3]  ;;  %v68_v15 = vld [vmem:[#allocation6] sm:$0xff] }
  0x3a   :  { %v2006_v14 = vld [vmem:[#allocation3 + $0xe] sm:$0x3]  ;;  %v69_v23 = vld [vmem:[#allocation6 + $0x8] sm:$0xff]  ;;  %s1915_s2 = smov [#allocation9]  }
  0x3b   :  { %v1981_v2 = vsub.s32 0, %v1978_v1  ;;  %v1984_v3 = vsub.s32 1, %v1978_v1  ;;  %s1736_s22 = sshll.u32 %s1915_s2, 4  ;;  %s1737_s22 = int_to_ptr.vmem [resolvable:$true] %s1736_s22 }
  0x3c   :  { %s1878_s23 = scalar_lea.vmem %s1737_s22, 128  ;;  %p1883_p11 = scmp.lt.s32.totalorder %s1737_s22, %s1737_s22 }
  0x3d   :  { %v73_v10 = vrot.slane %v1986_v4, %v1981_v2  ;;  %v77_v11 = vrot.slane %v1988_v5, %v1981_v2  ;;  %v81_v12 = vrot.slane %v1990_v6, %v1981_v2  ;;  %v85_v16 = vrot.slane %v1992_v7, %v1981_v2  ;;  %p1879_p10 = scmp.ne.s32.totalorder %s1737_s22, %s1878_s23  ;;  %p1884_p12 = scmp.lt.s32.totalorder %s1878_s23, %s1878_s23 }
  0x3e   :  { %v89_v17 = vrot.slane %v1994_v8, %v1981_v2  ;;  %v93_v18 = vrot.slane %v1996_v9, %v1981_v2  ;;  %v97_v19 = vrot.slane %v2004_v13, %v1981_v2  ;;  %v101_v20 = vrot.slane %v2006_v14, %v1981_v2 }
  0x3f   :  { %v113_v21 = vrot.slane %v1986_v4, %v1984_v3  ;;  %v117_v22 = vrot.slane %v1988_v5, %v1984_v3  ;;  %v102_v24 = vsub.f32 %v73_v10, %v68_v15  ;;  %v103_v25 = vsub.f32 %v77_v11, %v68_v15  ;;  %p1885_p13 = por %p1884_p12, %p1883_p11 }
  0x40   :  { %v104_v26 = vsub.f32 %v81_v12, %v68_v15  ;;  %v105_v27 = vsub.f32 %v85_v16, %v68_v15  ;;  %v106_v28 = vsub.f32 %v89_v17, %v68_v15  ;;  %v107_v29 = vsub.f32 %v93_v18, %v68_v15 }
  0x41   :  { %v121_v30 = vrot.slane %v1990_v6, %v1984_v3  ;;  %v125_v31 = vrot.slane %v1992_v7, %v1984_v3  ;;  %v129_v32 = vrot.slane %v1994_v8, %v1984_v3  ;;  %v133_v33 = vrot.slane %v1996_v9, %v1984_v3  ;;  %p1886_p0 = pnand %p1885_p13, %p1879_p10 }
  0x42   :  { %v137_v34 = vrot.slane %v2004_v13, %v1984_v3  ;;  %v141_v35 = vrot.slane %v2006_v14, %v1984_v3  ;;  %v142_v36 = vsub.f32 %v113_v21, %v69_v23  ;;  %v143_v37 = vsub.f32 %v117_v22, %v69_v23 }
  0x43   :  { %v144_v38 = vsub.f32 %v121_v30, %v69_v23  ;;  %v145_v39 = vsub.f32 %v125_v31, %v69_v23  ;;  %v108_v40 = vsub.f32 %v97_v19, %v68_v15  ;;  %v146_v41 = vsub.f32 %v129_v32, %v69_v23 }
  0x44   :  { %v147_v42 = vsub.f32 %v133_v33, %v69_v23  ;;  %v148_v43 = vsub.f32 %v137_v34, %v69_v23  ;;  %v109_v44 = vsub.f32 %v101_v20, %v68_v15  ;;  %v150_v45 = vmul.f32 %v102_v24, %v102_v24 }
  0x45   :  { %v151_v46 = vmul.f32 %v103_v25, %v103_v25  ;;  %v152_v47 = vmul.f32 %v104_v26, %v104_v26  ;;  %v149_v48 = vsub.f32 %v141_v35, %v69_v23  ;;  %v153_v49 = vmul.f32 %v105_v27, %v105_v27 }
  0x46   :  { %v154_v50 = vmul.f32 %v106_v28, %v106_v28  ;;  %v155_v51 = vmul.f32 %v107_v29, %v107_v29  ;;  %v158_v52 = vmul.f32 %v142_v36, %v142_v36  ;;  %v159_v53 = vmul.f32 %v143_v37, %v143_v37 }
  0x47   :  { %v160_v54 = vmul.f32 %v144_v38, %v144_v38  ;;  %v161_v55 = vmul.f32 %v145_v39, %v145_v39  ;;  %v156_v56 = vmul.f32 %v108_v40, %v108_v40  ;;  %v162_v57 = vmul.f32 %v146_v41, %v146_v41 }
  0x48   :  { %v163_v58 = vmul.f32 %v147_v42, %v147_v42  ;;  %v164_v59 = vmul.f32 %v148_v43, %v148_v43  ;;  %v2034_v60 = vadd.f32 %v158_v52, %v150_v45  ;;  %v2036_v61 = vadd.f32 %v159_v53, %v151_v46 }
  0x49   :  { %v2038_v62 = vadd.f32 %v160_v54, %v152_v47  ;;  %v157_v63 = vmul.f32 %v109_v44, %v109_v44  ;;  %v165_v0 = vmul.f32 %v149_v48, %v149_v48  ;;  %v2040_v10 = vadd.f32 %v161_v55, %v153_v49 }
  0x4a   :  { %v2042_v11 = vadd.f32 %v162_v57, %v154_v50  ;;  %vm174_vm0 = vcmp.gt.f32.partialorder %v2034_v60, 0.0  ;;  %v2045_v12 = vadd.f32 %v163_v58, %v155_v51  ;;  %v2047_v15 = vadd.f32 %v164_v59, %v156_v56 }
  0x4b   :  { %vm175_vm1 = vcmp.gt.f32.partialorder %v2036_v61, 0.0  ;;  %vm176_vm2 = vcmp.gt.f32.partialorder %v2038_v62, 0.0  ;;  %v2051_v16 = vadd.f32 %v165_v0, %v157_v63  ;;  %vm177_vm3 = vcmp.gt.f32.partialorder %v2040_v10, 0.0 }
  0x4c   :  { %v182_v17 = vsel %vm174_vm0, %v2034_v60, 1.0  ;;  %vm178_vm4 = vcmp.gt.f32.partialorder %v2042_v11, 0.0  ;;  %v183_v18 = vsel %vm175_vm1, %v2036_v61, 1.0  ;;  %vm179_vm5 = vcmp.gt.f32.partialorder %v2045_v12, 0.0 }
  0x4d   :  { %vm180_vm6 = vcmp.gt.f32.partialorder %v2047_v15, 0.0  ;;  %v184_v19 = vsel %vm176_vm2, %v2038_v62, 1.0  ;;  %v185_v20 = vsel %vm177_vm3, %v2040_v10, 1.0  ;;  %1764 = vlog2.f32 %v182_v17 }
  0x4e   :  { %v230_v21 = vmul.f32 %v1986_v4, %v1986_v4  ;;  %v231_v22 = vmul.f32 %v1988_v5, %v1988_v5  ;;  %vm181_vm7 = vcmp.gt.f32.partialorder %v2051_v16, 0.0  ;;  %v186_v23 = vsel %vm178_vm4, %v2042_v11, 1.0 }
  0x4f   :  { %1766 = vlog2.f32 %v183_v18  ;;  %v232_v24 = vmul.f32 %v1990_v6, %v1990_v6  ;;  %v187_v25 = vsel %vm179_vm5, %v2045_v12, 1.0  ;;  %v188_v4 = vsel %vm180_vm6, %v2047_v15, 1.0 }
  0x50   :  { %1768 = vlog2.f32 %v184_v19  ;;  %v233_v5 = vmul.f32 %v1992_v7, %v1992_v7  ;;  %v246_v26 = vrot.slane %v230_v21, 1  ;;  %v189_v27 = vsel %vm181_vm7, %v2051_v16, 1.0 }
  0x51   :  { %1770 = vlog2.f32 %v185_v20  ;;  %v247_v6 = vrot.slane %v231_v22, 1  ;;  %v248_v28 = vrot.slane %v232_v24, 1  ;;  %v234_v29 = vmul.f32 %v1994_v8, %v1994_v8 }
  0x52   :  { %1772 = vlog2.f32 %v186_v23  ;;  %v190_v30 = vmul.f32 0.5, %v2034_v60  ;;  %v249_v31 = vrot.slane %v233_v5, 1  ;;  %v2093_v32 = vadd.f32 %v246_v26, %v230_v21 }
  0x53   :  { %1774 = vlog2.f32 %v187_v25  ;;  %v191_v7 = vmul.f32 0.5, %v2036_v61  ;;  %v235_v33 = vmul.f32 %v1996_v9, %v1996_v9  ;;  %v236_v34 = vmul.f32 %v2004_v13, %v2004_v13 }
  0x54   :  { %1776 = vlog2.f32 %v188_v4  ;;  %v2100_v35 = vadd.f32 %v247_v6, %v231_v22  ;;  %v192_v36 = vmul.f32 0.5, %v2038_v62  ;;  %v193_v8 = vmul.f32 0.5, %v2040_v10 }
  0x55   :  { %1778 = vlog2.f32 %v189_v27  ;;  %v237_v37 = vmul.f32 %v2006_v14, %v2006_v14  ;;  %v2106_v38 = vadd.f32 %v248_v28, %v232_v24  ;;  %v194_v40 = vmul.f32 0.5, %v2042_v11 }
  0x56   :  { %v195_v41 = vmul.f32 0.5, %v2045_v12  ;;  %v196_v9 = vmul.f32 0.5, %v2047_v15  ;;  %v250_v42 = vrot.slane %v234_v29, 1  ;;  %v197_v43 = vmul.f32 0.5, %v2051_v16 }
  0x57   :  { %v1765_v39 = vpop.eup %1764  ;;  %v2112_v45 = vadd.f32 %v249_v31, %v233_v5  ;;  %vm270_vm8 = vcmp.gt.f32.partialorder %v2093_v32, 0.0  ;;  %v251_v47 = vrot.slane %v235_v33, 1  ;;  %v252_v48 = vrot.slane %v236_v34, 1 }
  0x58   :  { %v199_v44 = vmul.f32 0.6931472, %v1765_v39  ;;  %vm271_vm9 = vcmp.gt.f32.partialorder %v2100_v35, 0.0  ;;  %v253_v52 = vrot.slane %v237_v37, 1  ;;  %vm272_vm10 = vcmp.gt.f32.partialorder %v2106_v38, 0.0 }
  0x59   :  { %v1767_v13 = vpop.eup %1766  ;;  %v2117_v56 = vadd.f32 %v250_v42, %v234_v29  ;;  %v278_v57 = vsel %vm270_vm8, %v2093_v32, 1.0  ;;  %vm273_vm11 = vcmp.gt.f32.partialorder %v2112_v45, 0.0  ;;  %v279_v0 = vsel %vm271_vm9, %v2100_v35, 1.0 }
  0x5a   :  { %v1769_v46 = vpop.eup %1768  ;;  %v201_v14 = vmul.f32 0.6931472, %v1767_v13  ;;  %v214_v51 = vmul.f32 %v199_v44, %v190_v30  ;;  %v280_v21 = vsel %vm272_vm10, %v2106_v38, 1.0  ;;  %v2137_v24 = vadd.f32 %v251_v47, %v235_v33 }
  0x5b   :  { %v1771_v49 = vpop.eup %1770  ;;  %v203_v50 = vmul.f32 0.6931472, %v1769_v46  ;;  %v2139_v25 = vadd.f32 %v252_v48, %v236_v34  ;;  %1780 = vlog2.f32 %v278_v57  ;;  %vm274_vm12 = vcmp.gt.f32.partialorder %v2117_v56, 0.0 }
  0x5c   :  { %v1773_v53 = vpop.eup %1772  ;;  %v205_v54 = vmul.f32 0.6931472, %v1771_v49  ;;  %v215_v55 = vmul.f32 %v201_v14, %v191_v7  ;;  %v2128_v20 = vsel %vm174_vm0, %v214_v51, 0.0  ;;  %1782 = vlog2.f32 %v279_v0 }
  0x5d   :  { %v1775_v58 = vpop.eup %1774  ;;  %v207_v59 = vmul.f32 0.6931472, %v1773_v53  ;;  %v216_v63 = vmul.f32 %v203_v50, %v192_v36  ;;  %v281_v61 = vsel %vm273_vm11, %v2112_v45, 1.0  ;;  %1784 = vlog2.f32 %v280_v21 }
  0x5e   :  { %v1777_v17 = vpop.eup %1776  ;;  %v209_v18 = vmul.f32 0.6931472, %v1775_v58  ;;  %v217_v19 = vmul.f32 %v205_v54, %v193_v8  ;;  %v2135_v23 = vsel %vm175_vm1, %v215_v55, 0.0  ;;  %v326_v26 = vand.u32 2147483647, %v2128_v20 }
  0x5f   :  { %v1779_v22 = vpop.eup %1778  ;;  %v211_v4 = vmul.f32 0.6931472, %v1777_v17  ;;  %v218_v5 = vmul.f32 %v207_v59, %v194_v40  ;;  %v2143_v60 = vsel %vm176_vm2, %v216_v63, 0.0  ;;  %v327_v62 = vand.u32 2147483647, %v2135_v23 }
  0x60   :  { %v213_v27 = vmul.f32 0.6931472, %v1779_v22  ;;  %v219_v6 = vmul.f32 %v209_v18, %v195_v41  ;;  %v2152_v28 = vsel %vm177_vm3, %v217_v19, 0.0  ;;  %vm275_vm13 = vcmp.gt.f32.partialorder %v2137_v24, 0.0 }
  0x61   :  { %v328_v29 = vand.u32 2147483647, %v2143_v60  ;;  %v220_v30 = vmul.f32 %v211_v4, %v196_v9  ;;  %v2159_v31 = vsel %vm178_vm4, %v218_v5, 0.0  ;;  %v282_v7 = vsel %vm274_vm12, %v2117_v56, 1.0 }
  0x62   :  { %1786 = vlog2.f32 %v281_v61  ;;  %v2164_v33 = vadd.f32 %v253_v52, %v237_v37  ;;  %v329_v10 = vand.u32 2147483647, %v2152_v28  ;;  %v334_v34 = vmax.f32 %v326_v26, %v327_v62 }
  0x63   :  { %v221_v36 = vmul.f32 %v213_v27, %v197_v43  ;;  %v2169_v8 = vsel %vm179_vm5, %v219_v6, 0.0  ;;  %vm276_vm14 = vcmp.gt.f32.partialorder %v2139_v25, 0.0  ;;  %v283_v11 = vsel %vm275_vm13, %v2137_v24, 1.0 }
  0x64   :  { %1788 = vlog2.f32 %v282_v7  ;;  %v330_v39 = vand.u32 2147483647, %v2159_v31  ;;  %v335_v40 = vmax.f32 %v334_v34, %v328_v29  ;;  %v2178_v37 = vsel %vm180_vm6, %v220_v30, 0.0 }
  0x65   :  { %v1781_v41 = vpop.eup %1780  ;;  %vm277_vm15 = vcmp.gt.f32.partialorder %v2164_v33, 0.0  ;;  %v284_v12 = vsel %vm276_vm14, %v2139_v25, 1.0  ;;  %v331_v9 = vand.u32 2147483647, %v2169_v8  ;;  %v2189_v43 = vsel %vm181_vm7, %v221_v36, 0.0 }
  0x66   :  { %v336_v42 = vmax.f32 %v335_v40, %v329_v10  ;;  %v1783_v13 = vpop.eup %1782  ;;  %v286_v15 = vmul.f32 0.5, %v2093_v32  ;;  %v287_v44 = vmul.f32 0.5, %v2100_v35  ;;  %1790 = vlog2.f32 %v283_v11 }
  0x67   :  { %v1785_v46 = vpop.eup %1784  ;;  %v295_v14 = vmul.f32 0.6931472, %v1781_v41  ;;  %v297_v47 = vmul.f32 0.6931472, %v1783_v13  ;;  %v332_v48 = vand.u32 2147483647, %v2178_v37  ;;  %1792 = vlog2.f32 %v284_v12 }
  0x68   :  { %v337_v49 = vmax.f32 %v336_v42, %v330_v39  ;;  %v285_v50 = vsel %vm277_vm15, %v2164_v33, 1.0  ;;  %v333_v16 = vand.u32 2147483647, %v2189_v43  ;;  %v288_v53 = vmul.f32 0.5, %v2106_v38 }
  0x69   :  { %v299_v54 = vmul.f32 0.6931472, %v1785_v46  ;;  %v310_v55 = vmul.f32 %v295_v14, %v286_v15  ;;  %v311_v57 = vmul.f32 %v297_v47, %v287_v44  ;;  %1794 = vlog2.f32 %v285_v50 }
  0x6a   :  { %v338_v51 = vmax.f32 %v337_v49, %v331_v9  ;;  %v289_v63 = vmul.f32 0.5, %v2112_v45  ;;  %v290_v5 = vmul.f32 0.5, %v2117_v56  ;;  %vm1913_vm2 = vmmov 1  }
  0x6b   :  { %v312_v18 = vmul.f32 %v299_v54, %v288_v53  ;;  %v2212_v19 = vsel %vm270_vm8, %v310_v55, 0.0  ;;  %v2216_v21 = vsel %vm271_vm9, %v311_v57, 0.0  ;;  %v1914_v27 = vmov 0  }
  0x6c   :  { %v1787_v52 = vpop.eup %1786  ;;  %v339_v58 = vmax.f32 %v338_v51, %v332_v48  ;;  %v291_v38 = vmul.f32 0.5, %v2137_v24  ;;  %v292_v42 = vmul.f32 0.5, %v2139_v25  ;;  %v293_v56 = vmul.f32 0.5, %v2164_v33 }
  0x6d   :  { %v301_v0 = vmul.f32 0.6931472, %v1787_v52  ;;  %v3709_v55 = vmov 0  ;;  %v3715_v22 = vmov 0 }
  0x6e   :  { %v1789_v59 = vpop.eup %1788  ;;  %v2208_v17 = vmax.f32 %v339_v58, %v333_v16 }
  0x6f   :  { %v303_v61 = vmul.f32 0.6931472, %v1789_v59  ;;  %v313_v32 = vmul.f32 %v301_v0, %v289_v63 }
  0x70   :  { %vm2219_vm0 = vcmp.eq.f32.partialorder %v326_v26, %v2208_v17  ;;  %vm342_vm1 = vcmp.eq.f32.partialorder %v327_v62, %v2208_v17  ;;  %v1791_v4 = vpop.eup %1790  ;;  %vm354_vm5 = vcmp.eq.f32.partialorder %v328_v29, %v2208_v17  ;;  %v2235_v26 = vsel %vm272_vm10, %v312_v18, 0.0 }
  0x71   :  { %vm343_vm3 = vmxor %vm2219_vm0, %vm1913_vm2  ;;  %v1793_v29 = vpop.eup %1792  ;;  %v305_v30 = vmul.f32 0.6931472, %v1791_v4  ;;  %v314_v34 = vmul.f32 %v303_v61, %v290_v5  ;;  %vm366_vm9 = vcmp.eq.f32.partialorder %v329_v10, %v2208_v17  ;;  %v2260_v11 = vsel %vm273_vm11, %v313_v32, 0.0 }
  0x72   :  { %vm2228_vm4 = vmand %vm342_vm1, %vm343_vm3  ;;  %v307_v13 = vmul.f32 0.6931472, %v1793_v29  ;;  %vm378_vm3 = vcmp.eq.f32.partialorder %v330_v39, %v2208_v17 }
  0x73   :  { %vm345_vm6 = vmor %vm2219_vm0, %vm2228_vm4  ;;  %v346_v6 = vsel %vm2228_vm4, 1, %v1914_v27  ;;  %v353_v62 = vsel %vm2228_vm4, %v2216_v21, %v2212_v19  ;;  %v1795_v10 = vpop.eup %1794  ;;  %v315_v46 = vmul.f32 %v305_v30, %v291_v38  ;;  %v2296_v47 = vsel %vm274_vm12, %v314_v34, 0.0 }
  0x74   :  { %v350_v7 = vrot.slane %v346_v6, %v1981_v2  ;;  %vm355_vm7 = vmxor %vm345_vm6, %vm1913_vm2  ;;  %v309_v51 = vmul.f32 0.6931472, %v1795_v10  ;;  %v316_v54 = vmul.f32 %v307_v13, %v292_v42 }
  0x75   :  { %vm2251_vm8 = vmand %vm354_vm5, %vm355_vm7  ;;  %v2327_v57 = vsel %vm275_vm13, %v315_v46, 0.0 }
  0x76   :  { %vm2262_vm10 = vcmp.eq.s32.totalorder %v350_v7, 1  ;;  %vm2268_vm0 = vmor %vm345_vm6, %vm2251_vm8  ;;  %v358_v12 = vsel %vm2251_vm8, 1, %v1914_v27  ;;  %v365_v45 = vsel %vm2251_vm8, %v2235_v26, %v353_v62  ;;  %v317_v18 = vmul.f32 %v309_v51, %v293_v56 }
  0x77   :  { %v352_v15 = vsel %vm2262_vm10, %v2135_v23, %v2128_v20  ;;  %v362_v44 = vrot.slane %v358_v12, %v1981_v2  ;;  %vm367_vm11 = vmxor %vm2268_vm0, %vm1913_vm2  ;;  %v2361_v4 = vsel %vm276_vm14, %v316_v54, 0.0  ;;  %v464_v56 = vrot.slane %v2152_v28, %v1981_v2 }
  0x78   :  { %vm2287_vm1 = vmand %vm366_vm9, %vm367_vm11  ;;  %vm390_vm9 = vcmp.eq.f32.partialorder %v331_v9, %v2208_v17  ;;  %v2391_v62 = vsel %vm277_vm15, %v317_v18, 0.0  ;;  %v474_v51 = vrot.slane %v2159_v31, %v1981_v2  ;;  %v504_v54 = vrot.slane %v2189_v43, %v1981_v2 }
  0x79   :  { %vm2298_vm5 = vcmp.eq.s32.totalorder %v362_v44, 1  ;;  %vm369_vm6 = vmor %vm2268_vm0, %vm2287_vm1  ;;  %v370_v50 = vsel %vm2287_vm1, 1, %v1914_v27  ;;  %v377_v39 = vsel %vm2287_vm1, %v2260_v11, %v365_v45  ;;  %v444_v44 = vrot.slane %v2135_v23, %v1981_v2 }
  0x7a   :  { %v364_v52 = vsel %vm2298_vm5, %v2143_v60, %v352_v15  ;;  %v374_v53 = vrot.slane %v370_v50, %v1981_v2  ;;  %vm379_vm12 = vmxor %vm369_vm6, %vm1913_vm2  ;;  %v436_v15 = vrot.slane %v2128_v20, %v1981_v2 }
  0x7b   :  { %vm2318_vm7 = vmand %vm378_vm3, %vm379_vm12 }
  0x7c   :  { %v3710_v55 = vsel %vm2318_vm7, 4294967295, %v3709_v55  ;;  %vm2329_vm0 = vcmp.eq.s32.totalorder %v374_v53, 1  ;;  %vm2335_vm11 = vmor %vm369_vm6, %vm2318_vm7  ;;  %v382_v63 = vsel %vm2318_vm7, 1, %v1914_v27  ;;  %v389_v24 = vsel %vm2318_vm7, %v2296_v47, %v377_v39 }
  0x7d   :  { %v376_v9 = vsel %vm2329_vm0, %v2152_v28, %v364_v52  ;;  %v386_v0 = vrot.slane %v382_v63, %v1981_v2  ;;  %vm391_vm13 = vmxor %vm2335_vm11, %vm1913_vm2  ;;  %vm402_vm6 = vcmp.eq.f32.partialorder %v332_v48, %v2208_v17  ;;  %v454_v39 = vrot.slane %v2143_v60, %v1981_v2 }
  0x7e   :  { %vm2352_vm3 = vmand %vm390_vm9, %vm391_vm13  ;;  %v484_v52 = vrot.slane %v2169_v8, %v1981_v2  ;;  %v494_v53 = vrot.slane %v2178_v37, %v1981_v2 }
  0x7f   :  { %v3716_v22 = vsel %vm2352_vm3, 4294967295, %v3715_v22  ;;  %vm2363_vm12 = vcmp.eq.s32.totalorder %v386_v0, 1  ;;  %vm393_vm9 = vmor %vm2335_vm11, %vm2352_vm3  ;;  %v394_v61 = vsel %vm2352_vm3, 1, %v1914_v27  ;;  %v401_v48 = vsel %vm2352_vm3, %v2327_v57, %v389_v24 }
  0x80   :  { %v388_v25 = vsel %vm2363_vm12, %v2159_v31, %v376_v9  ;;  %v398_v32 = vrot.slane %v394_v61, %v1981_v2  ;;  %vm403_vm14 = vmxor %vm393_vm9, %vm1913_vm2  ;;  %vm414_vm11 = vcmp.eq.f32.partialorder %v333_v16, %v2208_v17 }
  0x81   :  { %vm2382_vm13 = vmand %vm402_vm6, %vm403_vm14 }
  0x82   :  { %vm2393_vm3 = vcmp.eq.s32.totalorder %v398_v32, 1  ;;  %vm405_vm7 = vmor %vm393_vm9, %vm2382_vm13  ;;  %v406_v38 = vsel %vm2382_vm13, 1, %v1914_v27  ;;  %v413_v30 = vsel %vm2382_vm13, %v2361_v4, %v401_v48 }
  0x83   :  { %v400_v33 = vsel %vm2393_vm3, %v2169_v8, %v388_v25  ;;  %v410_v16 = vrot.slane %v406_v38, %v1981_v2  ;;  %vm415_vm15 = vmxor %vm405_vm7, %vm1913_vm2 }
  0x84   :  { %vm2410_vm6 = vmand %vm414_vm11, %vm415_vm15 }
  0x85   :  { %vm2414_vm9 = vcmp.eq.s32.totalorder %v410_v16, 1  ;;  %v417_v34 = vsel %vm2410_vm6, 1, %v1914_v27  ;;  %v424_v41 = vsel %vm2410_vm6, %v2391_v62, %v413_v30 }
  0x86   :  { %v412_v12 = vsel %vm2414_vm9, %v2178_v37, %v400_v33  ;;  %v421_v45 = vrot.slane %v417_v34, %v1981_v2 }
  0x88   :  { %vm2428_vm7 = vcmp.eq.s32.totalorder %v421_v45, 1 }
  0x89   :  { %v423_v42 = vsel %vm2428_vm7, %v2189_v43, %v412_v12 }
  0x8a   :  { %1796 = vrcp.f32 %v423_v42 }
  0x94   :  { %v1797_v13 = vpop.eup %1796 }
  0x95   :  { %v430_v46 = vrot.slane %v1797_v13, %v1981_v2  ;;  %v2440_v50 = vmul.f32 %v1797_v13, %v424_v41 }
  0x97   :  { %v2454_v59 = vmul.f32 %v430_v46, %v423_v42  ;;  %v439_v63 = vmul.f32 %v2440_v50, %v2128_v20  ;;  %v447_v24 = vmul.f32 %v2440_v50, %v2135_v23  ;;  %v457_v9 = vmul.f32 %v2440_v50, %v2143_v60 }
  0x98   :  { %v467_v0 = vmul.f32 %v2440_v50, %v2152_v28  ;;  %v477_v18 = vmul.f32 %v2440_v50, %v2159_v31  ;;  %v487_v2 = vmul.f32 %v2440_v50, %v2169_v8  ;;  %v497_v61 = vmul.f32 %v2440_v50, %v2178_v37 }
  0x99   :  { %v437_v48 = vmul.f32 %v436_v15, %v2454_v59  ;;  %v440_v25 = vsub.f32 %v2212_v19, %v439_v63  ;;  %v445_v32 = vmul.f32 %v444_v44, %v2454_v59  ;;  %v448_v38 = vsub.f32 %v2216_v21, %v447_v24 }
  0x9a   :  { %v455_v30 = vmul.f32 %v454_v39, %v2454_v59  ;;  %v458_v33 = vsub.f32 %v2235_v26, %v457_v9  ;;  %v465_v16 = vmul.f32 %v464_v56, %v2454_v59  ;;  %v468_v34 = vsub.f32 %v2260_v11, %v467_v0 }
  0x9b   :  { %v438_v41 = vsub.f32 %v2128_v20, %v437_v48  ;;  %v446_v12 = vsub.f32 %v2135_v23, %v445_v32  ;;  %v2482_v45 = vsel %vm2228_vm4, %v440_v25, %v448_v38  ;;  %v475_v19 = vmul.f32 %v474_v51, %v2454_v59 }
  0x9c   :  { %v456_v21 = vsub.f32 %v2143_v60, %v455_v30  ;;  %v2488_v42 = vsel %vm2251_vm8, %v440_v25, %v458_v33  ;;  %v466_v26 = vsub.f32 %v2152_v28, %v465_v16  ;;  %v2493_v11 = vsel %vm2287_vm1, %v440_v25, %v468_v34 }
  0x9d   :  { %v2497_v20 = vsel %vm2262_vm10, %v438_v41, %v446_v12  ;;  %v476_v23 = vsub.f32 %v2159_v31, %v475_v19  ;;  %v478_v35 = vsub.f32 %v2296_v47, %v477_v18  ;;  %v485_v60 = vmul.f32 %v484_v52, %v2454_v59 }
  0x9e   :  { %v2504_v36 = vsel %vm2298_vm5, %v438_v41, %v456_v21  ;;  %v2508_v28 = vsel %vm2329_vm0, %v438_v41, %v466_v26  ;;  %v488_v14 = vsub.f32 %v2327_v57, %v487_v2  ;;  %v495_v40 = vmul.f32 %v494_v53, %v2454_v59 }
  0x9f   :  { %v2514_v13 = vsel %vm2363_vm12, %v438_v41, %v476_v23  ;;  %vm3729_vm4 = vnez %v3710_v55  ;;  %v486_v47 = vsub.f32 %v2169_v8, %v485_v60  ;;  %v498_v49 = vsub.f32 %v2361_v4, %v497_v61 }
  0xa0   :  { %v2518_v31 = vsel %vm3729_vm4, %v440_v25, %v478_v35  ;;  %vm3730_vm8 = vnez %v3716_v22  ;;  %v496_v57 = vsub.f32 %v2178_v37, %v495_v40  ;;  %v505_v15 = vmul.f32 %v504_v54, %v2454_v59 }
  0xa1   :  { %v2524_v58 = vsel %vm3730_vm8, %v440_v25, %v488_v14  ;;  %v507_v5 = vmul.f32 %v2440_v50, %v2189_v43  ;;  %v2532_v55 = vsel %vm2382_vm13, %v440_v25, %v498_v49  ;;  %v511_v44 = vand.u32 2147483647, %v2497_v20 }
  0xa2   :  { %v512_v8 = vand.u32 2147483647, %v2504_v36  ;;  %v2538_v22 = vsel %vm2393_vm3, %v438_v41, %v486_v47  ;;  %v506_v4 = vsub.f32 %v2189_v43, %v505_v15  ;;  %v513_v46 = vand.u32 2147483647, %v2508_v28 }
  0xa3   :  { %v508_v37 = vsub.f32 %v2391_v62, %v507_v5  ;;  %v514_v39 = vand.u32 2147483647, %v2514_v13  ;;  %v2546_v6 = vsel %vm2414_vm9, %v438_v41, %v496_v57  ;;  %v515_v29 = vand.u32 2147483647, %v2538_v22 }
  0xa4   :  { %v518_v56 = vmax.f32 %v511_v44, %v512_v8  ;;  %v2555_v43 = vsel %vm2428_vm7, %v438_v41, %v506_v4  ;;  %v516_v62 = vand.u32 2147483647, %v2546_v6  ;;  %v537_v9 = vrot.slane %v2488_v42, 7 }
  0xa5   :  { %v2550_v51 = vsel %vm2410_vm6, %v440_v25, %v508_v37  ;;  %v517_v54 = vand.u32 2147483647, %v2555_v43  ;;  %v540_v17 = vrot.slane %v2482_v45, 7  ;;  %v555_v18 = vrot.slane %v2493_v11, 7 }
  0xa6   :  { %v519_v52 = vmax.f32 %v518_v56, %v513_v46  ;;  %v570_v32 = vrot.slane %v2518_v31, 7  ;;  %v585_v19 = vrot.slane %v2524_v58, 7  ;;  %v600_v40 = vrot.slane %v2532_v55, 7 }
  0xa7   :  { %v614_v4 = vrot.slane %v2550_v51, 7  ;;  %v690_v30 = vrot.slane %v2538_v22, %v1984_v3 }
  0xa8   :  { %v520_v53 = vmax.f32 %v519_v52, %v514_v39 }
  0xaa   :  { %v521_v63 = vmax.f32 %v520_v53, %v515_v29 }
  0xac   :  { %v522_v7 = vmax.f32 %v521_v63, %v516_v62 }
  0xae   :  { %v523_v24 = vmax.f32 %v522_v7, %v517_v54 }
  0xb0   :  { %vm2561_vm10 = vcmp.eq.f32.partialorder %v511_v44, %v523_v24  ;;  %vm525_vm1 = vcmp.eq.f32.partialorder %v512_v8, %v523_v24  ;;  %vm543_vm3 = vcmp.eq.f32.partialorder %v513_v46, %v523_v24  ;;  %vm558_vm11 = vcmp.eq.f32.partialorder %v514_v39, %v523_v24 }
  0xb1   :  { %vm526_vm5 = vmxor %vm2561_vm10, %vm1913_vm2  ;;  %vm573_vm4 = vcmp.eq.f32.partialorder %v515_v29, %v523_v24 }
  0xb2   :  { %vm2568_vm0 = vmand %vm525_vm1, %vm526_vm5 }
  0xb3   :  { %vm528_vm12 = vmor %vm2561_vm10, %vm2568_vm0  ;;  %v529_v2 = vsel %vm2568_vm0, 1, %v1914_v27  ;;  %v542_v61 = vsel %vm2568_vm0, %v537_v9, %v540_v17 }
  0xb4   :  { %v533_v48 = vrot.slane %v529_v2, %v1984_v3  ;;  %vm544_vm14 = vmxor %vm528_vm12, %vm1913_vm2  ;;  %v628_v2 = vrot.slane %v2497_v20, %v1984_v3 }
  0xb5   :  { %vm2584_vm13 = vmand %vm543_vm3, %vm544_vm14  ;;  %vm588_vm3 = vcmp.eq.f32.partialorder %v516_v62, %v523_v24 }
  0xb6   :  { %vm2589_vm15 = vcmp.eq.s32.totalorder %v533_v48, 1  ;;  %vm2595_vm6 = vmor %vm528_vm12, %vm2584_vm13  ;;  %v547_v33 = vsel %vm2584_vm13, 1, %v1914_v27  ;;  %v557_v16 = vsel %vm2584_vm13, %v555_v18, %v542_v61  ;;  %v639_v61 = vrot.slane %v2504_v36, %v1984_v3 }
  0xb7   :  { %v535_v34 = vsel %vm2589_vm15, %v2504_v36, %v2497_v20  ;;  %v551_v41 = vrot.slane %v547_v33, %v1984_v3  ;;  %vm559_vm9 = vmxor %vm2595_vm6, %vm1913_vm2  ;;  %v658_v48 = vrot.slane %v2508_v28, %v1984_v3 }
  0xb8   :  { %vm2612_vm7 = vmand %vm558_vm11, %vm559_vm9  ;;  %vm603_vm9 = vcmp.eq.f32.partialorder %v517_v54, %v523_v24  ;;  %v2824_v24 = vsub.s32 2, %v1978_v1 }
  0xb9   :  { %vm2617_vm8 = vcmp.eq.s32.totalorder %v551_v41, 1  ;;  %vm561_vm10 = vmor %vm2595_vm6, %vm2612_vm7  ;;  %v562_v26 = vsel %vm2612_vm7, 1, %v1914_v27  ;;  %v572_v23 = vsel %vm2612_vm7, %v570_v32, %v557_v16  ;;  %v674_v32 = vrot.slane %v2514_v13, %v1984_v3 }
  0xba   :  { %v553_v35 = vsel %vm2617_vm8, %v2508_v28, %v535_v34  ;;  %v566_v60 = vrot.slane %v562_v26, %v1984_v3  ;;  %vm574_vm1 = vmxor %vm561_vm10, %vm1913_vm2 }
  0xbb   :  { %vm2635_vm5 = vmand %vm573_vm4, %vm574_vm1 }
  0xbc   :  { %vm2640_vm12 = vcmp.eq.s32.totalorder %v566_v60, 1  ;;  %vm2646_vm14 = vmor %vm561_vm10, %vm2635_vm5  ;;  %v577_v57 = vsel %vm2635_vm5, 1, %v1914_v27  ;;  %v587_v15 = vsel %vm2635_vm5, %v585_v19, %v572_v23  ;;  %v706_v23 = vrot.slane %v2546_v6, %v1984_v3 }
  0xbd   :  { %v568_v5 = vsel %vm2640_vm12, %v2514_v13, %v553_v35  ;;  %v581_v44 = vrot.slane %v577_v57, %v1984_v3  ;;  %vm589_vm11 = vmxor %vm2646_vm14, %vm1913_vm2  ;;  %v722_v35 = vrot.slane %v2555_v43, %v1984_v3 }
  0xbe   :  { %vm2662_vm6 = vmand %vm588_vm3, %vm589_vm11 }
  0xbf   :  { %vm2667_vm4 = vcmp.eq.s32.totalorder %v581_v44, 1  ;;  %vm591_vm10 = vmor %vm2646_vm14, %vm2662_vm6  ;;  %v592_v46 = vsel %vm2662_vm6, 1, %v1914_v27  ;;  %v602_v39 = vsel %vm2662_vm6, %v600_v40, %v587_v15 }
  0xc0   :  { %v583_v56 = vsel %vm2667_vm4, %v2538_v22, %v568_v5  ;;  %v596_v29 = vrot.slane %v592_v46, %v1984_v3  ;;  %vm604_vm1 = vmxor %vm591_vm10, %vm1913_vm2 }
  0xc1   :  { %vm2685_vm3 = vmand %vm603_vm9, %vm604_vm1 }
  0xc2   :  { %vm2689_vm14 = vcmp.eq.s32.totalorder %v596_v29, 1  ;;  %v606_v53 = vsel %vm2685_vm3, 1, %v1914_v27  ;;  %v616_v54 = vsel %vm2685_vm3, %v614_v4, %v602_v39 }
  0xc3   :  { %v598_v63 = vsel %vm2689_vm14, %v2546_v6, %v583_v56  ;;  %v610_v7 = vrot.slane %v606_v53, %v1984_v3 }
  0xc5   :  { %vm2702_vm11 = vcmp.eq.s32.totalorder %v610_v7, 1 }
  0xc6   :  { %v612_v9 = vsel %vm2702_vm11, %v2555_v43, %v598_v63 }
  0xc7   :  { %1798 = vrcp.f32 %v612_v9 }
  0xd1   :  { %v1799_v17 = vpop.eup %1798 }
  0xd2   :  { %v622_v0 = vrot.slane %v1799_v17, %v1984_v3  ;;  %v2710_v18 = vmul.f32 %v1799_v17, %v616_v54 }
  0xd4   :  { %v2722_v33 = vmul.f32 %v622_v0, %v612_v9  ;;  %v631_v16 = vmul.f32 %v2710_v18, %v2497_v20  ;;  %v642_v34 = vmul.f32 %v2710_v18, %v2504_v36  ;;  %v661_v41 = vmul.f32 %v2710_v18, %v2508_v28 }
  0xd5   :  { %v677_v19 = vmul.f32 %v2710_v18, %v2514_v13  ;;  %v693_v26 = vmul.f32 %v2710_v18, %v2538_v22  ;;  %v709_v63 = vmul.f32 %v2710_v18, %v2546_v6  ;;  %v725_v7 = vmul.f32 %v2710_v18, %v2555_v43 }
  0xd6   :  { %v629_v60 = vmul.f32 %v628_v2, %v2722_v33  ;;  %v633_v40 = vrot.slane %v631_v16, 1  ;;  %v640_v49 = vmul.f32 %v639_v61, %v2722_v33  ;;  %v644_v57 = vrot.slane %v642_v34, 1 }
  0xd7   :  { %v659_v15 = vmul.f32 %v658_v48, %v2722_v33  ;;  %v663_v5 = vrot.slane %v661_v41, 1  ;;  %v675_v44 = vmul.f32 %v674_v32, %v2722_v33  ;;  %v679_v4 = vrot.slane %v677_v19, 1 }
  0xd8   :  { %v630_v46 = vsub.f32 %v2497_v20, %v629_v60  ;;  %v635_v39 = vsub.f32 %v2482_v45, %v633_v40  ;;  %v641_v56 = vsub.f32 %v2504_v36, %v640_v49  ;;  %v646_v29 = vsub.f32 %v2488_v42, %v644_v57 }
  0xd9   :  { %v665_v53 = vsub.f32 %v2493_v11, %v663_v5  ;;  %v681_v54 = vsub.f32 %v2518_v31, %v679_v4  ;;  %v660_v20 = vsub.f32 %v2508_v28, %v659_v15  ;;  %v691_v45 = vmul.f32 %v690_v30, %v2722_v33 }
  0xda   :  { %v649_v9 = vrot.slane %v635_v39, 7  ;;  %v652_v17 = vrot.slane %v646_v29, 7  ;;  %v2756_v36 = vsel %vm2589_vm15, %v630_v46, %v641_v56  ;;  %v676_v11 = vsub.f32 %v2514_v13, %v675_v44 }
  0xdb   :  { %v668_v42 = vrot.slane %v665_v53, 7  ;;  %v684_v31 = vrot.slane %v681_v54, 7  ;;  %v692_v2 = vsub.f32 %v2538_v22, %v691_v45  ;;  %v695_v61 = vrot.slane %v693_v26, 1 }
  0xdc   :  { %v2761_v0 = vsel %vm2568_vm0, %v649_v9, %v652_v17  ;;  %v707_v48 = vmul.f32 %v706_v23, %v2722_v33  ;;  %v711_v32 = vrot.slane %v709_v63, 1  ;;  %v723_v13 = vmul.f32 %v722_v35, %v2722_v33 }
  0xdd   :  { %v2767_v28 = vsel %vm2584_vm13, %v649_v9, %v668_v42  ;;  %v2771_v38 = vsel %vm2612_vm7, %v649_v9, %v684_v31  ;;  %v697_v10 = vsub.f32 %v2524_v58, %v695_v61  ;;  %v727_v30 = vrot.slane %v725_v7, 1 }
  0xde   :  { %v2777_v22 = vsel %vm2617_vm8, %v630_v46, %v660_v20  ;;  %v2781_v16 = vsel %vm2640_vm12, %v630_v46, %v676_v11  ;;  %v708_v25 = vsub.f32 %v2546_v6, %v707_v48  ;;  %v713_v12 = vsub.f32 %v2532_v55, %v711_v32 }
  0xdf   :  { %v700_v34 = vrot.slane %v697_v10, 7  ;;  %v729_v41 = vsub.f32 %v2550_v51, %v727_v30  ;;  %v746_v19 = vand.u32 2147483647, %v2756_v36  ;;  %v2789_v58 = vsel %vm2667_vm4, %v630_v46, %v692_v2 }
  0xe0   :  { %v716_v21 = vrot.slane %v713_v12, 7  ;;  %v724_v26 = vsub.f32 %v2555_v43, %v723_v13  ;;  %v747_v6 = vand.u32 2147483647, %v2777_v22  ;;  %v748_v55 = vand.u32 2147483647, %v2781_v16 }
  0xe1   :  { %v2794_v47 = vsel %vm2635_vm5, %v649_v9, %v700_v34  ;;  %v732_v23 = vrot.slane %v729_v41, 7  ;;  %v2800_v51 = vsel %vm2689_vm14, %v630_v46, %v708_v25  ;;  %v749_v14 = vand.u32 2147483647, %v2789_v58 }
  0xe2   :  { %v2804_v37 = vsel %vm2662_vm6, %v649_v9, %v716_v21  ;;  %v752_v35 = vmax.f32 %v746_v19, %v747_v6  ;;  %v2813_v60 = vsel %vm2702_vm11, %v630_v46, %v724_v26  ;;  %v750_v40 = vand.u32 2147483647, %v2800_v51 }
  0xe3   :  { %v2808_v43 = vsel %vm2685_vm3, %v649_v9, %v732_v23  ;;  %v751_v49 = vand.u32 2147483647, %v2813_v60  ;;  %v770_v5 = vrot.slane %v2767_v28, 7  ;;  %v773_v52 = vrot.slane %v2761_v0, 7 }
  0xe4   :  { %v753_v62 = vmax.f32 %v752_v35, %v748_v55  ;;  %v788_v46 = vrot.slane %v2771_v38, 7  ;;  %v803_v54 = vrot.slane %v2794_v47, 7  ;;  %v818_v11 = vrot.slane %v2804_v37, 7 }
  0xe5   :  { %v832_v10 = vrot.slane %v2808_v43, 7  ;;  %v876_v44 = vrot.slane %v2781_v16, %v2824_v24  ;;  %v3051_v13 = vsub.s32 3, %v1978_v1 }
  0xe6   :  { %v754_v57 = vmax.f32 %v753_v62, %v749_v14 }
  0xe8   :  { %v755_v8 = vmax.f32 %v754_v57, %v750_v40 }
  0xea   :  { %v756_v15 = vmax.f32 %v755_v8, %v751_v49 }
  0xec   :  { %vm2819_vm0 = vcmp.eq.f32.partialorder %v746_v19, %v756_v15  ;;  %vm758_vm13 = vcmp.eq.f32.partialorder %v747_v6, %v756_v15  ;;  %vm776_vm8 = vcmp.eq.f32.partialorder %v748_v55, %v756_v15  ;;  %vm791_vm9 = vcmp.eq.f32.partialorder %v749_v14, %v756_v15 }
  0xed   :  { %vm759_vm15 = vmxor %vm2819_vm0, %vm1913_vm2  ;;  %vm806_vm14 = vcmp.eq.f32.partialorder %v750_v40, %v756_v15  ;;  %v738_v40 = vrot.slane %v2454_v59, %v1984_v3  ;;  %v892_v3 = vrot.slane %v2789_v58, %v2824_v24 }
  0xee   :  { %vm2829_vm7 = vmand %vm758_vm13, %vm759_vm15 }
  0xef   :  { %vm761_vm5 = vmor %vm2819_vm0, %vm2829_vm7  ;;  %v762_v39 = vsel %vm2829_vm7, 1, %v1914_v27  ;;  %v775_v56 = vsel %vm2829_vm7, %v770_v5, %v773_v52  ;;  %v739_v62 = vmul.f32 %v738_v40, %v2722_v33  ;;  %v846_v5 = vrot.slane %v2756_v36, %v2824_v24 }
  0xf0   :  { %v766_v29 = vrot.slane %v762_v39, %v2824_v24  ;;  %vm777_vm12 = vmxor %vm761_vm5, %vm1913_vm2  ;;  %v857_v52 = vrot.slane %v2777_v22, %v2824_v24 }
  0xf1   :  { %vm2845_vm6 = vmand %vm776_vm8, %vm777_vm12  ;;  %vm821_vm8 = vcmp.eq.f32.partialorder %v751_v49, %v756_v15  ;;  %v2945_v57 = vsub.f32 %v2454_v59, %v739_v62 }
  0xf2   :  { %vm2850_vm4 = vcmp.eq.s32.totalorder %v766_v29, 1  ;;  %vm2856_vm10 = vmor %vm761_vm5, %vm2845_vm6  ;;  %v780_v9 = vsel %vm2845_vm6, 1, %v1914_v27  ;;  %v790_v17 = vsel %vm2845_vm6, %v788_v46, %v775_v56  ;;  %v908_v46 = vrot.slane %v2800_v51, %v2824_v24 }
  0xf3   :  { %v768_v20 = vsel %vm2850_vm4, %v2777_v22, %v2756_v36  ;;  %v784_v45 = vrot.slane %v780_v9, %v2824_v24  ;;  %vm792_vm1 = vmxor %vm2856_vm10, %vm1913_vm2 }
  0xf4   :  { %vm2873_vm3 = vmand %vm791_vm9, %vm792_vm1 }
  0xf5   :  { %vm2878_vm11 = vcmp.eq.s32.totalorder %v784_v45, 1  ;;  %vm794_vm0 = vmor %vm2856_vm10, %vm2873_vm3  ;;  %v795_v2 = vsel %vm2873_vm3, 1, %v1914_v27  ;;  %v805_v61 = vsel %vm2873_vm3, %v803_v54, %v790_v17  ;;  %v924_v17 = vrot.slane %v2813_v60, %v2824_v24 }
  0xf6   :  { %v786_v48 = vsel %vm2878_vm11, %v2781_v16, %v768_v20  ;;  %v799_v32 = vrot.slane %v795_v2, %v2824_v24  ;;  %vm807_vm13 = vmxor %vm794_vm0, %vm1913_vm2  ;;  %v940_v20 = vrot.slane %v2945_v57, %v2824_v24 }
  0xf7   :  { %vm2896_vm15 = vmand %vm806_vm14, %vm807_vm13 }
  0xf8   :  { %vm2901_vm5 = vcmp.eq.s32.totalorder %v799_v32, 1  ;;  %vm809_vm12 = vmor %vm794_vm0, %vm2896_vm15  ;;  %v810_v25 = vsel %vm2896_vm15, 1, %v1914_v27  ;;  %v820_v12 = vsel %vm2896_vm15, %v818_v11, %v805_v61 }
  0xf9   :  { %v801_v34 = vsel %vm2901_vm5, %v2789_v58, %v786_v48  ;;  %v814_v41 = vrot.slane %v810_v25, %v2824_v24  ;;  %vm822_vm9 = vmxor %vm809_vm12, %vm1913_vm2 }
  0xfa   :  { %vm2917_vm10 = vmand %vm821_vm8, %vm822_vm9 }
  0xfb   :  { %vm2921_vm1 = vcmp.eq.s32.totalorder %v814_v41, 1  ;;  %v824_v26 = vsel %vm2917_vm10, 1, %v1914_v27  ;;  %v834_v23 = vsel %vm2917_vm10, %v832_v10, %v820_v12 }
  0xfc   :  { %v816_v6 = vsel %vm2921_vm1, %v2800_v51, %v801_v34  ;;  %v828_v55 = vrot.slane %v824_v26, %v2824_v24 }
  0xfe   :  { %vm2934_vm14 = vcmp.eq.s32.totalorder %v828_v55, 1 }
  0xff   :  { %v830_v35 = vsel %vm2934_vm14, %v2813_v60, %v816_v6 }
 0x100   :  { %1800 = vrcp.f32 %v830_v35 }
 0x10a   :  { %v1801_v49 = vpop.eup %1800 }
 0x10b   :  { %v840_v8 = vrot.slane %v1801_v49, %v2824_v24  ;;  %v2948_v15 = vmul.f32 %v1801_v49, %v834_v23 }
 0x10d   :  { %v2960_v39 = vmul.f32 %v840_v8, %v830_v35  ;;  %v849_v56 = vmul.f32 %v2948_v15, %v2756_v36  ;;  %v860_v29 = vmul.f32 %v2948_v15, %v2777_v22  ;;  %v879_v54 = vmul.f32 %v2948_v15, %v2781_v16 }
 0x10e   :  { %v895_v7 = vmul.f32 %v2948_v15, %v2789_v58  ;;  %v911_v9 = vmul.f32 %v2948_v15, %v2800_v51  ;;  %v927_v55 = vmul.f32 %v2948_v15, %v2813_v60  ;;  %v951_v35 = vrot.slane %v2722_v33, %v2824_v24 }
 0x10f   :  { %v847_v45 = vmul.f32 %v846_v5, %v2960_v39  ;;  %v851_v11 = vrot.slane %v849_v56, 1  ;;  %v858_v2 = vmul.f32 %v857_v52, %v2960_v39  ;;  %v862_v61 = vrot.slane %v860_v29, 1 }
 0x110   :  { %v877_v48 = vmul.f32 %v876_v44, %v2960_v39  ;;  %v881_v32 = vrot.slane %v879_v54, 1  ;;  %v893_v10 = vmul.f32 %v892_v3, %v2960_v39  ;;  %v897_v25 = vrot.slane %v895_v7, 1 }
 0x111   :  { %v848_v12 = vsub.f32 %v2756_v36, %v847_v45  ;;  %v853_v34 = vsub.f32 %v2761_v0, %v851_v11  ;;  %v859_v41 = vsub.f32 %v2777_v22, %v858_v2  ;;  %v864_v26 = vsub.f32 %v2767_v28, %v862_v61 }
 0x112   :  { %v883_v23 = vsub.f32 %v2771_v38, %v881_v32  ;;  %v899_v6 = vsub.f32 %v2794_v47, %v897_v25  ;;  %v878_v36 = vsub.f32 %v2781_v16, %v877_v48  ;;  %v909_v0 = vmul.f32 %v908_v46, %v2960_v39 }
 0x113   :  { %v867_v40 = vrot.slane %v853_v34, 7  ;;  %v870_v62 = vrot.slane %v864_v26, 7  ;;  %v2994_v22 = vsel %vm2850_vm4, %v848_v12, %v859_v41  ;;  %v894_v38 = vsub.f32 %v2789_v58, %v893_v10 }
 0x114   :  { %v886_v28 = vrot.slane %v883_v23, 7  ;;  %v902_v47 = vrot.slane %v899_v6, 7  ;;  %v910_v24 = vsub.f32 %v2800_v51, %v909_v0  ;;  %v913_v8 = vrot.slane %v911_v9, 1 }
 0x115   :  { %v2999_v49 = vsel %vm2829_vm7, %v867_v40, %v870_v62  ;;  %v925_v5 = vmul.f32 %v924_v17, %v2960_v39  ;;  %v929_v52 = vrot.slane %v927_v55, 1  ;;  %v941_v58 = vmul.f32 %v940_v20, %v2960_v39 }
 0x116   :  { %v3005_v16 = vsel %vm2845_vm6, %v867_v40, %v886_v28  ;;  %v3009_v63 = vsel %vm2873_vm3, %v867_v40, %v902_v47  ;;  %v3014_v4 = vsel %vm2878_vm11, %v848_v12, %v878_v36  ;;  %v915_v51 = vsub.f32 %v2804_v37, %v913_v8 }
 0x117   :  { %v926_v44 = vsub.f32 %v2813_v60, %v925_v5  ;;  %v3020_v53 = vsel %vm2901_vm5, %v848_v12, %v894_v38  ;;  %v931_v3 = vsub.f32 %v2808_v43, %v929_v52  ;;  %v952_v42 = vmul.f32 %v951_v35, %v2960_v39 }
 0x118   :  { %v3026_v46 = vsel %vm2921_vm1, %v848_v12, %v910_v24  ;;  %v918_v56 = vrot.slane %v915_v51, 7  ;;  %v959_v31 = vand.u32 2147483647, %v2994_v22  ;;  %v3030_v37 = vsub.f32 %v2945_v57, %v941_v58 }
 0x119   :  { %v934_v29 = vrot.slane %v931_v3, 7  ;;  %v960_v60 = vand.u32 2147483647, %v3014_v4  ;;  %v3039_v43 = vsel %vm2934_vm14, %v848_v12, %v926_v44  ;;  %v3042_v21 = vsub.f32 %v2722_v33, %v952_v42 }
 0x11a   :  { %v3035_v30 = vsel %vm2896_vm15, %v867_v40, %v918_v56  ;;  %v961_v54 = vand.u32 2147483647, %v3020_v53  ;;  %v962_v9 = vand.u32 2147483647, %v3026_v46  ;;  %v963_v20 = vand.u32 2147483647, %v3039_v43 }
 0x11b   :  { %v3047_v7 = vsel %vm2917_vm10, %v867_v40, %v934_v29  ;;  %v964_v17 = vmax.f32 %v959_v31, %v960_v60  ;;  %v1120_v45 = vrot.slane %v3030_v37, %v3051_v13  ;;  %v1131_v11 = vrot.slane %v3042_v21, %v3051_v13 }
 0x11c   :  { %v1142_v19 = vrot.slane %v2960_v39, %v3051_v13  ;;  %v981_v48 = vrot.slane %v3005_v16, 7  ;;  %v984_v32 = vrot.slane %v2999_v49, 7  ;;  %v999_v12 = vrot.slane %v3009_v63, 7 }
 0x11d   :  { %v965_v14 = vmax.f32 %v964_v17, %v961_v54  ;;  %v1014_v6 = vrot.slane %v3035_v30, 7  ;;  %v1028_v38 = vrot.slane %v3047_v7, 7  ;;  %v1042_v17 = vrot.slane %v2994_v22, %v3051_v13 }
 0x11f   :  { %v966_v2 = vmax.f32 %v965_v14, %v962_v9  ;;  %v1072_v14 = vrot.slane %v3020_v53, %v3051_v13 }
 0x121   :  { %v967_v61 = vmax.f32 %v966_v2, %v963_v20  ;;  %v1088_v2 = vrot.slane %v3026_v46, %v3051_v13 }
 0x123   :  { %vm3062_vm7 = vcmp.eq.f32.partialorder %v959_v31, %v967_v61  ;;  %vm969_vm6 = vcmp.eq.f32.partialorder %v960_v60, %v967_v61  ;;  %vm987_vm11 = vcmp.eq.f32.partialorder %v961_v54, %v967_v61  ;;  %vm1002_vm8 = vcmp.eq.f32.partialorder %v962_v9, %v967_v61 }
 0x124   :  { %vm970_vm4 = vmxor %vm3062_vm7, %vm1913_vm2  ;;  %vm1017_vm1 = vcmp.eq.f32.partialorder %v963_v20, %v967_v61  ;;  %v1053_v20 = vrot.slane %v3014_v4, %v3051_v13  ;;  %v1104_v61 = vrot.slane %v3039_v43, %v3051_v13 }
 0x125   :  { %vm3069_vm3 = vmand %vm969_vm6, %vm970_vm4 }
 0x126   :  { %vm972_vm0 = vmor %vm3062_vm7, %vm3069_vm3  ;;  %v973_v34 = vsel %vm3069_vm3, 1, %v1914_v27  ;;  %v986_v41 = vsel %vm3069_vm3, %v981_v48, %v984_v32 }
 0x127   :  { %v977_v26 = vrot.slane %v973_v34, %v3051_v13  ;;  %vm988_vm13 = vmxor %vm972_vm0, %vm1913_vm2 }
 0x128   :  { %vm3085_vm15 = vmand %vm987_vm11, %vm988_vm13 }
 0x129   :  { %vm3090_vm5 = vcmp.eq.s32.totalorder %v977_v26, 1  ;;  %vm3096_vm12 = vmor %vm972_vm0, %vm3085_vm15  ;;  %v991_v40 = vsel %vm3085_vm15, 1, %v1914_v27  ;;  %v1001_v62 = vsel %vm3085_vm15, %v999_v12, %v986_v41 }
 0x12a   :  { %v979_v36 = vsel %vm3090_vm5, %v3014_v4, %v2994_v22  ;;  %v995_v0 = vrot.slane %v991_v40, %v3051_v13  ;;  %vm1003_vm9 = vmxor %vm3096_vm12, %vm1913_vm2 }
 0x12b   :  { %vm3113_vm10 = vmand %vm1002_vm8, %vm1003_vm9 }
 0x12c   :  { %vm3118_vm14 = vcmp.eq.s32.totalorder %v995_v0, 1  ;;  %vm1005_vm7 = vmor %vm3096_vm12, %vm3113_vm10  ;;  %v1006_v24 = vsel %vm3113_vm10, 1, %v1914_v27  ;;  %v1016_v8 = vsel %vm3113_vm10, %v1014_v6, %v1001_v62 }
 0x12d   :  { %v997_v5 = vsel %vm3118_vm14, %v3020_v53, %v979_v36  ;;  %v1010_v52 = vrot.slane %v1006_v24, %v3051_v13  ;;  %vm1018_vm6 = vmxor %vm1005_vm7, %vm1913_vm2 }
 0x12e   :  { %vm3136_vm4 = vmand %vm1017_vm1, %vm1018_vm6 }
 0x12f   :  { %vm3140_vm11 = vcmp.eq.s32.totalorder %v1010_v52, 1  ;;  %v1020_v44 = vsel %vm3136_vm4, 1, %v1914_v27  ;;  %v1030_v3 = vsel %vm3136_vm4, %v1028_v38, %v1016_v8 }
 0x130   :  { %v1012_v42 = vsel %vm3140_vm11, %v3026_v46, %v997_v5  ;;  %v1024_v56 = vrot.slane %v1020_v44, %v3051_v13 }
 0x132   :  { %vm3153_vm0 = vcmp.eq.s32.totalorder %v1024_v56, 1 }
 0x133   :  { %v1026_v29 = vsel %vm3153_vm0, %v3039_v43, %v1012_v42 }
 0x134   :  { %1802 = vrcp.f32 %v1026_v29 }
 0x13e   :  { %v1803_v60 = vpop.eup %1802 }
 0x13f   :  { %v1036_v54 = vrot.slane %v1803_v60, %v3051_v13  ;;  %v3161_v9 = vmul.f32 %v1803_v60, %v1030_v3 }
 0x141   :  { %v3173_v48 = vmul.f32 %v1036_v54, %v1026_v29  ;;  %v1045_v32 = vmul.f32 %v3161_v9, %v2994_v22  ;;  %v1056_v10 = vmul.f32 %v3161_v9, %v3014_v4  ;;  %v1075_v12 = vmul.f32 %v3161_v9, %v3020_v53 }
 0x142   :  { %v1091_v34 = vmul.f32 %v3161_v9, %v3026_v46  ;;  %v1107_v41 = vmul.f32 %v3161_v9, %v3039_v43  ;;  %v3187_v26 = vmul.f32 %v3161_v9, %v3030_v37  ;;  %v3191_v6 = vmul.f32 %v3161_v9, %v3042_v21 }
 0x143   :  { %v1043_v35 = vmul.f32 %v1042_v17, %v3173_v48  ;;  %v1047_v40 = vrot.slane %v1045_v32, 1  ;;  %v1054_v62 = vmul.f32 %v1053_v20, %v3173_v48  ;;  %v1058_v36 = vrot.slane %v1056_v10, 1 }
 0x144   :  { %v1073_v0 = vmul.f32 %v1072_v14, %v3173_v48  ;;  %v1077_v38 = vrot.slane %v1075_v12, 1  ;;  %v1089_v24 = vmul.f32 %v1088_v2, %v3173_v48  ;;  %v1093_v8 = vrot.slane %v1091_v34, 1 }
 0x145   :  { %v1044_v5 = vsub.f32 %v2994_v22, %v1043_v35  ;;  %v1049_v52 = vsub.f32 %v2999_v49, %v1047_v40  ;;  %v1055_v44 = vsub.f32 %v3014_v4, %v1054_v62  ;;  %v1060_v3 = vsub.f32 %v3005_v16, %v1058_v36 }
 0x146   :  { %v1074_v42 = vsub.f32 %v3020_v53, %v1073_v0  ;;  %v1079_v56 = vsub.f32 %v3009_v63, %v1077_v38  ;;  %v1095_v29 = vsub.f32 %v3035_v30, %v1093_v8  ;;  %v1090_v17 = vsub.f32 %v3026_v46, %v1089_v24 }
 0x147   :  { %v1063_v60 = vrot.slane %v1049_v52, 7  ;;  %v1066_v54 = vrot.slane %v1060_v3, 7  ;;  %v1105_v20 = vmul.f32 %v1104_v61, %v3173_v48  ;;  %v3208_v22 = vsel %vm3090_vm5, %v1044_v5, %v1055_v44 }
 0x148   :  { %v1082_v49 = vrot.slane %v1079_v56, 7  ;;  %v1098_v4 = vrot.slane %v1095_v29, 7  ;;  %v1109_v53 = vrot.slane %v1107_v41, 1  ;;  %v1121_v46 = vmul.f32 %v1120_v45, %v3173_v48 }
 0x149   :  { %v3212_v16 = vsel %vm3069_vm3, %v1063_v60, %v1066_v54  ;;  %v1106_v63 = vsub.f32 %v3039_v43, %v1105_v20  ;;  %v3221_v30 = vsel %vm3118_vm14, %v1044_v5, %v1074_v42  ;;  %v1132_v43 = vmul.f32 %v1131_v11, %v3173_v48 }
 0x14a   :  { %v3225_v55 = vsel %vm3085_vm15, %v1063_v60, %v1082_v49  ;;  %v3229_v25 = vsel %vm3113_vm10, %v1063_v60, %v1098_v4  ;;  %v3237_v45 = vsel %vm3140_vm11, %v1044_v5, %v1090_v17  ;;  %v1111_v47 = vsub.f32 %v3047_v7, %v1109_v53 }
 0x14b   :  { %v3241_v14 = vsub.f32 %v3030_v37, %v1121_v46  ;;  %v3245_v23 = vsel %vm3153_vm0, %v1044_v5, %v1106_v63  ;;  %v3248_v28 = vsub.f32 %v3042_v21, %v1132_v43  ;;  %v1143_v11 = vmul.f32 %v1142_v19, %v3173_v48 }
 0x14c   :  { %v3256_v51 = vmul.f32 %v3161_v9, %v2960_v39  ;;  %v1114_v7 = vrot.slane %v1111_v47, 7  ;;  %v1150_v37 = vand.u32 2147483647, %v3208_v22  ;;  %v1151_v2 = vand.u32 2147483647, %v3221_v30 }
 0x14d   :  { %v3261_v31 = vsub.f32 %v2960_v39, %v1143_v11  ;;  %v1152_v21 = vand.u32 2147483647, %v3237_v45  ;;  %v1153_v13 = vand.u32 2147483647, %v3245_v23  ;;  %v3270_v32 = vsub.s32 4, %v1978_v1 }
 0x14e   :  { %v3266_v61 = vsel %vm3136_vm4, %v1063_v60, %v1114_v7  ;;  %v1154_v19 = vmax.f32 %v1150_v37, %v1151_v2  ;;  %v1170_v35 = vrot.slane %v3225_v55, 7  ;;  %v1173_v40 = vrot.slane %v3212_v16, 7 }
 0x14f   :  { %v1278_v12 = vrot.slane %v3241_v14, %v3270_v32  ;;  %v1289_v39 = vrot.slane %v3248_v28, %v3270_v32  ;;  %v1300_v34 = vrot.slane %v3261_v31, %v3270_v32  ;;  %v1311_v58 = vrot.slane %v3173_v48, %v3270_v32 }
 0x150   :  { %v1155_v10 = vmax.f32 %v1154_v19, %v1152_v21  ;;  %v1188_v0 = vrot.slane %v3229_v25, 7  ;;  %v1202_v52 = vrot.slane %v3266_v61, 7  ;;  %v741_v60 = vmul.f32 %v2710_v18, %v2454_v59 }
 0x151   :  { %v943_v53 = vmul.f32 %v2948_v15, %v2945_v57  ;;  %v954_v47 = vmul.f32 %v2948_v15, %v2722_v33  ;;  %v1147_v19 = vrot.slane %v3256_v51, 1  ;;  %v1227_v33 = vrot.slane %v3221_v30, %v3270_v32 }
 0x152   :  { %v1156_v41 = vmax.f32 %v1155_v10, %v1153_v13  ;;  %v743_v63 = vrot.slane %v741_v60, 1 }
 0x153   :  { %v945_v7 = vrot.slane %v943_v53, 2 }
 0x154   :  { %vm3282_vm3 = vcmp.eq.f32.partialorder %v1150_v37, %v1156_v41  ;;  %vm1158_vm13 = vcmp.eq.f32.partialorder %v1151_v2, %v1156_v41  ;;  %vm1176_vm5 = vcmp.eq.f32.partialorder %v1152_v21, %v1156_v41  ;;  %vm1191_vm1 = vcmp.eq.f32.partialorder %v1153_v13, %v1156_v41 }
 0x155   :  { %vm1159_vm15 = vmxor %vm3282_vm3, %vm1913_vm2  ;;  %v745_v11 = vsub.f32 %v2440_v50, %v743_v63  ;;  %v956_v37 = vrot.slane %v954_v47, 1  ;;  %v1125_v21 = vrot.slane %v3187_v26, 3  ;;  %v1136_v13 = vrot.slane %v3191_v6, 2 }
 0x156   :  { %vm3289_vm8 = vmand %vm1158_vm13, %vm1159_vm15  ;;  %v1216_v50 = vrot.slane %v3208_v22, %v3270_v32  ;;  %v1149_v26 = vsub.f32 %v2948_v15, %v1147_v19  ;;  %v1262_v6 = vrot.slane %v3245_v23, %v3270_v32 }
 0x157   :  { %vm1161_vm12 = vmor %vm3282_vm3, %vm3289_vm8  ;;  %v1162_v38 = vsel %vm3289_vm8, 1, %v1914_v27  ;;  %v1175_v24 = vsel %vm3289_vm8, %v1170_v35, %v1173_v40  ;;  %v947_v2 = vsub.f32 %v745_v11, %v945_v7  ;;  %v958_v57 = vsub.f32 %v2710_v18, %v956_v37 }
 0x158   :  { %v1166_v8 = vrot.slane %v1162_v38, %v3270_v32  ;;  %vm1177_vm9 = vmxor %vm1161_vm12, %vm1913_vm2  ;;  %v1246_v18 = vrot.slane %v3237_v45, %v3270_v32 }
 0x159   :  { %vm3305_vm10 = vmand %vm1176_vm5, %vm1177_vm9  ;;  %v1127_v41 = vsub.f32 %v947_v2, %v1125_v21  ;;  %v1138_v62 = vsub.f32 %v958_v57, %v1136_v13 }
 0x15a   :  { %vm3310_vm14 = vcmp.eq.s32.totalorder %v1166_v8, 1  ;;  %vm1179_vm7 = vmor %vm1161_vm12, %vm3305_vm10  ;;  %v1180_v3 = vsel %vm3305_vm10, 1, %v1914_v27  ;;  %v1190_v42 = vsel %vm3305_vm10, %v1188_v0, %v1175_v24 }
 0x15b   :  { %v1168_v56 = vsel %vm3310_vm14, %v3221_v30, %v3208_v22  ;;  %v1184_v29 = vrot.slane %v1180_v3, %v3270_v32  ;;  %vm1192_vm6 = vmxor %vm1179_vm7, %vm1913_vm2 }
 0x15c   :  { %vm3329_vm4 = vmand %vm1191_vm1, %vm1192_vm6 }
 0x15d   :  { %vm3333_vm11 = vcmp.eq.s32.totalorder %v1184_v29, 1  ;;  %v1194_v20 = vsel %vm3329_vm4, 1, %v1914_v27  ;;  %v1204_v49 = vsel %vm3329_vm4, %v1202_v52, %v1190_v42 }
 0x15e   :  { %v1186_v4 = vsel %vm3333_vm11, %v3237_v45, %v1168_v56  ;;  %v1198_v59 = vrot.slane %v1194_v20, %v3270_v32 }
 0x160   :  { %vm3348_vm0 = vcmp.eq.s32.totalorder %v1198_v59, 1 }
 0x161   :  { %v1200_v43 = vsel %vm3348_vm0, %v3245_v23, %v1186_v4 }
 0x162   :  { %1804 = vrcp.f32 %v1200_v43 }
 0x16c   :  { %v1805_v10 = vpop.eup %1804 }
 0x16d   :  { %v1210_v35 = vrot.slane %v1805_v10, %v3270_v32  ;;  %v3363_v40 = vmul.f32 %v1805_v10, %v1204_v49 }
 0x16f   :  { %v3374_v51 = vmul.f32 %v1210_v35, %v1200_v43  ;;  %v1219_v0 = vmul.f32 %v3363_v40, %v3208_v22  ;;  %v1230_v38 = vmul.f32 %v3363_v40, %v3221_v30  ;;  %v1249_v24 = vmul.f32 %v3363_v40, %v3237_v45 }
 0x170   :  { %v1265_v15 = vmul.f32 %v3363_v40, %v3245_v23  ;;  %v1281_v8 = vmul.f32 %v3363_v40, %v3241_v14  ;;  %v1292_v52 = vmul.f32 %v3363_v40, %v3248_v28  ;;  %v1303_v3 = vmul.f32 %v3363_v40, %v3261_v31 }
 0x171   :  { %v1217_v42 = vmul.f32 %v1216_v50, %v3374_v51  ;;  %v1221_v56 = vrot.slane %v1219_v0, 1  ;;  %v1228_v29 = vmul.f32 %v1227_v33, %v3374_v51  ;;  %v1232_v60 = vrot.slane %v1230_v38, 1 }
 0x172   :  { %v1247_v20 = vmul.f32 %v1246_v18, %v3374_v51  ;;  %v1251_v49 = vrot.slane %v1249_v24, 1  ;;  %v1263_v4 = vmul.f32 %v1262_v6, %v3374_v51  ;;  %v1267_v59 = vrot.slane %v1265_v15, 1 }
 0x173   :  { %v1218_v63 = vsub.f32 %v3208_v22, %v1217_v42  ;;  %v1223_v53 = vsub.f32 %v3212_v16, %v1221_v56  ;;  %v1229_v43 = vsub.f32 %v3221_v30, %v1228_v29  ;;  %v1234_v47 = vsub.f32 %v3225_v55, %v1232_v60 }
 0x174   :  { %v1248_v11 = vsub.f32 %v3237_v45, %v1247_v20  ;;  %v1253_v7 = vsub.f32 %v3229_v25, %v1251_v49  ;;  %v1264_v37 = vsub.f32 %v3245_v23, %v1263_v4  ;;  %v1269_v2 = vsub.f32 %v3266_v61, %v1267_v59 }
 0x175   :  { %v3404_v21 = vsel %vm3310_vm14, %v1218_v63, %v1229_v43  ;;  %v1237_v57 = vrot.slane %v1223_v53, 7  ;;  %v1240_v22 = vrot.slane %v1234_v47, 7  ;;  %v1279_v16 = vmul.f32 %v1278_v12, %v3374_v51 }
 0x176   :  { %v3412_v30 = vsel %vm3333_vm11, %v1218_v63, %v1248_v11  ;;  %v1256_v55 = vrot.slane %v1253_v7, 7  ;;  %v3416_v25 = vsel %vm3348_vm0, %v1218_v63, %v1264_v37  ;;  %v1272_v45 = vrot.slane %v1269_v2, 7 }
 0x177   :  { %v3420_v23 = vsel %vm3289_vm8, %v1237_v57, %v1240_v22  ;;  %v3423_v61 = vsub.f32 %v3241_v14, %v1279_v16  ;;  %v1283_v44 = vrot.slane %v1281_v8, 4  ;;  %v1290_v12 = vmul.f32 %v1289_v39, %v3374_v51 }
 0x178   :  { %v3431_v17 = vsel %vm3305_vm10, %v1237_v57, %v1256_v55  ;;  %v3435_v46 = vsel %vm3329_vm4, %v1237_v57, %v1272_v45  ;;  %v1294_v36 = vrot.slane %v1292_v52, 3  ;;  %v1301_v14 = vmul.f32 %v1300_v34, %v3374_v51 }
 0x179   :  { %v3441_v13 = vsub.f32 %v1127_v41, %v1283_v44  ;;  %v3444_v19 = vsub.f32 %v3248_v28, %v1290_v12  ;;  %v1305_v39 = vrot.slane %v1303_v3, 2  ;;  %v1312_v5 = vmul.f32 %v1311_v58, %v3374_v51 }
 0x17a   :  { %v3450_v54 = vsub.f32 %v1138_v62, %v1294_v36  ;;  %v3453_v10 = vsub.f32 %v3261_v31, %v1301_v14  ;;  %v1314_v35 = vmul.f32 %v3363_v40, %v3173_v48  ;;  %v1319_v34 = vand.u32 2147483647, %v3404_v21 }
 0x17b   :  { %v3458_v41 = vsub.f32 %v1149_v26, %v1305_v39  ;;  %v3461_v28 = vsub.f32 %v3173_v48, %v1312_v5  ;;  %v1320_v50 = vand.u32 2147483647, %v3412_v30  ;;  %v1321_v32 = vand.u32 2147483647, %v3416_v25 }
 0x17c   :  { %v1316_v58 = vrot.slane %v1314_v35, 1  ;;  %v3466_v62 = vsub.s32 5, %v1978_v1  ;;  %v1337_v6 = vrot.slane %v3431_v17, 7  ;;  %v1340_v48 = vrot.slane %v3420_v23, 7 }
 0x17d   :  { %v1322_v33 = vmax.f32 %v1319_v34, %v1320_v50 }
 0x17e   :  { %v3469_v31 = vsub.f32 %v3161_v9, %v1316_v58  ;;  %v1458_v26 = vrot.slane %v3374_v51, %v3466_v62  ;;  %v1354_v9 = vrot.slane %v3435_v46, 7  ;;  %v1368_v63 = vrot.slane %v3404_v21, %v3466_v62 }
 0x17f   :  { %v1323_v18 = vmax.f32 %v1322_v33, %v1321_v32  ;;  %v1379_v53 = vrot.slane %v3412_v30, %v3466_v62  ;;  %v1398_v43 = vrot.slane %v3416_v25, %v3466_v62 }
 0x181   :  { %vm1324_vm3 = vcmp.eq.f32.partialorder %v1319_v34, %v1323_v18  ;;  %vm1325_vm13 = vcmp.eq.f32.partialorder %v1320_v50, %v1323_v18  ;;  %vm1343_vm5 = vcmp.eq.f32.partialorder %v1321_v32, %v1323_v18 }
 0x182   :  { %vm1326_vm15 = vmxor %vm1324_vm3, %vm1913_vm2 }
 0x183   :  { %vm3476_vm8 = vmand %vm1325_vm13, %vm1326_vm15 }
 0x184   :  { %vm1328_vm12 = vmor %vm1324_vm3, %vm3476_vm8  ;;  %v1329_v38 = vsel %vm3476_vm8, 1, %v1914_v27  ;;  %v1342_v24 = vsel %vm3476_vm8, %v1337_v6, %v1340_v48 }
 0x185   :  { %v1333_v15 = vrot.slane %v1329_v38, %v3466_v62  ;;  %vm1344_vm9 = vmxor %vm1328_vm12, %vm1913_vm2 }
 0x186   :  { %vm3490_vm10 = vmand %vm1343_vm5, %vm1344_vm9 }
 0x187   :  { %vm3494_vm1 = vcmp.eq.s32.totalorder %v1333_v15, 1  ;;  %v1346_v3 = vsel %vm3490_vm10, 1, %v1914_v27  ;;  %v1356_v42 = vsel %vm3490_vm10, %v1354_v9, %v1342_v24 }
 0x188   :  { %v1335_v56 = vsel %vm3494_vm1, %v3412_v30, %v3404_v21  ;;  %v1350_v29 = vrot.slane %v1346_v3, %v3466_v62 }
 0x18a   :  { %vm3508_vm14 = vcmp.eq.s32.totalorder %v1350_v29, 1 }
 0x18b   :  { %v1352_v20 = vsel %vm3508_vm14, %v3416_v25, %v1335_v56 }
 0x18c   :  { %1806 = vrcp.f32 %v1352_v20 }
 0x196   :  { %v1807_v49 = vpop.eup %1806 }
 0x197   :  { %v1362_v4 = vrot.slane %v1807_v49, %v3466_v62  ;;  %v3516_v59 = vmul.f32 %v1807_v49, %v1356_v42  ;;  %v1414_v49 = vrot.slane %v3423_v61, %v3466_v62 }
 0x199   :  { %v3524_v47 = vmul.f32 %v1362_v4, %v1352_v20  ;;  %v1371_v11 = vmul.f32 %v3516_v59, %v3404_v21  ;;  %v1382_v7 = vmul.f32 %v3516_v59, %v3412_v30  ;;  %v1401_v37 = vmul.f32 %v3516_v59, %v3416_v25 }
 0x19a   :  { %v1417_v2 = vmul.f32 %v3516_v59, %v3423_v61  ;;  %v1428_v57 = vmul.f32 %v3516_v59, %v3444_v19  ;;  %v1439_v22 = vmul.f32 %v3516_v59, %v3453_v10  ;;  %v1450_v16 = vmul.f32 %v3516_v59, %v3461_v28 }
 0x19b   :  { %v1369_v55 = vmul.f32 %v1368_v63, %v3524_v47  ;;  %v1373_v45 = vrot.slane %v1371_v11, 1  ;;  %v1380_v44 = vmul.f32 %v1379_v53, %v3524_v47  ;;  %v1384_v12 = vrot.slane %v1382_v7, 1 }
 0x19c   :  { %v1399_v36 = vmul.f32 %v1398_v43, %v3524_v47  ;;  %v1403_v14 = vrot.slane %v1401_v37, 1  ;;  %v1419_v39 = vrot.slane %v1417_v2, 5  ;;  %v1430_v9 = vrot.slane %v1428_v57, 4 }
 0x19d   :  { %v1370_v5 = vsub.f32 %v3404_v21, %v1369_v55  ;;  %v1375_v35 = vsub.f32 %v3420_v23, %v1373_v45  ;;  %v1381_v34 = vsub.f32 %v3412_v30, %v1380_v44  ;;  %v1386_v50 = vsub.f32 %v3431_v17, %v1384_v12 }
 0x19e   :  { %v1400_v32 = vsub.f32 %v3416_v25, %v1399_v36  ;;  %v1405_v58 = vsub.f32 %v3435_v46, %v1403_v14  ;;  %v3550_v33 = vsub.f32 %v3441_v13, %v1419_v39  ;;  %v1441_v25 = vrot.slane %v1439_v22, 3 }
 0x19f   :  { %v1389_v18 = vrot.slane %v1375_v35, 7  ;;  %v1392_v6 = vrot.slane %v1386_v50, 7  ;;  %v3554_v21 = vsel %vm3494_vm1, %v1370_v5, %v1381_v34  ;;  %v1432_v46 = vsub.f32 %v3450_v54, %v1430_v9 }
 0x1a0   :  { %v1408_v48 = vrot.slane %v1405_v58, 7  ;;  %v3560_v23 = vsel %vm3508_vm14, %v1370_v5, %v1400_v32  ;;  %v1452_v13 = vrot.slane %v1450_v16, 2  ;;  %v3566_v38 = vsub.f32 %v3458_v41, %v1441_v25 }
 0x1a1   :  { %v1394_v30 = vsel %vm3476_vm8, %v1389_v18, %v1392_v6  ;;  %v1459_v0 = vmul.f32 %v1458_v26, %v3524_v47  ;;  %v1461_v24 = vmul.f32 %v3516_v59, %v3374_v51  ;;  %v1466_v8 = vand.u32 2147483647, %v3554_v21 }
 0x1a2   :  { %v1410_v17 = vsel %vm3490_vm10, %v1389_v18, %v1408_v48  ;;  %v3575_v15 = vsub.f32 %v3469_v31, %v1452_v13  ;;  %v1467_v52 = vand.u32 2147483647, %v3560_v23  ;;  %v1484_v29 = vrot.slane %v1394_v30, 7 }
 0x1a3   :  { %v3580_v54 = vsub.f32 %v3374_v51, %v1459_v0  ;;  %v1463_v41 = vrot.slane %v1461_v24, 1  ;;  %v1481_v56 = vrot.slane %v1410_v17, 7  ;;  %v3584_v26 = vsub.s32 6, %v1978_v1 }
 0x1a4   :  { %v1468_v3 = vmax.f32 %v1466_v8, %v1467_v52  ;;  %v1436_v4 = vrot.slane %v3453_v10, %v3466_v62  ;;  %v1447_v63 = vrot.slane %v3461_v28, %v3466_v62  ;;  %v1415_v53 = vmul.f32 %v1414_v49, %v3524_v47 }
 0x1a5   :  { %v1465_v42 = vsub.f32 %v3363_v40, %v1463_v41  ;;  %v1498_v16 = vrot.slane %v3554_v21, %v3584_v26 }
 0x1a6   :  { %vm1469_vm7 = vcmp.eq.f32.partialorder %v1466_v8, %v1468_v3  ;;  %vm1470_vm6 = vcmp.eq.f32.partialorder %v1467_v52, %v1468_v3  ;;  %v1437_v11 = vmul.f32 %v1436_v4, %v3524_v47  ;;  %v1448_v7 = vmul.f32 %v1447_v63, %v3524_v47 }
 0x1a7   :  { %vm1471_vm4 = vmxor %vm1469_vm7, %vm1913_vm2  ;;  %v3618_v2 = vsub.f32 %v3423_v61, %v1415_v53 }
 0x1a8   :  { %vm3587_vm11 = vmand %vm1470_vm6, %vm1471_vm4  ;;  %v1438_v45 = vsub.f32 %v3453_v10, %v1437_v11  ;;  %v1449_v44 = vsub.f32 %v3461_v28, %v1448_v7 }
 0x1a9   :  { %v1473_v51 = vsel %vm3587_vm11, 1, %v1914_v27  ;;  %v1486_v40 = vsel %vm3587_vm11, %v1481_v56, %v1484_v29  ;;  %v1425_v27 = vrot.slane %v3444_v19, %v3466_v62  ;;  %v1509_v62 = vrot.slane %v3560_v23, %v3584_v26 }
 0x1aa   :  { %v1477_v60 = vrot.slane %v1473_v51, %v3584_v26  ;;  %v1550_v31 = vrot.slane %v1438_v45, %v3584_v26 }
 0x1ab   :  { %v1426_v43 = vmul.f32 %v1425_v27, %v3524_v47 }
 0x1ac   :  { %vm3597_vm0 = vcmp.eq.s32.totalorder %v1477_v60, 1 }
 0x1ad   :  { %v1479_v1 = vsel %vm3597_vm0, %v3560_v23, %v3554_v21  ;;  %v1427_v55 = vsub.f32 %v3444_v19, %v1426_v43 }
 0x1ae   :  { %1808 = vrcp.f32 %v1479_v1 }
 0x1af   :  { %v1539_v51 = vrot.slane %v1427_v55, %v3584_v26 }
 0x1b8   :  { %v1809_v37 = vpop.eup %1808 }
 0x1b9   :  { %v1492_v57 = vrot.slane %v1809_v37, %v3584_v26  ;;  %v3621_v22 = vmul.f32 %v1809_v37, %v1486_v40  ;;  %v1561_v40 = vrot.slane %v1449_v44, %v3584_v26 }
 0x1bb   :  { %v3630_v12 = vmul.f32 %v1492_v57, %v1479_v1  ;;  %v1501_v61 = vmul.f32 %v3621_v22, %v3554_v21  ;;  %v1512_v36 = vmul.f32 %v3621_v22, %v3560_v23  ;;  %v1531_v14 = vmul.f32 %v3621_v22, %v3618_v2 }
 0x1bc   :  { %v1542_v39 = vmul.f32 %v3621_v22, %v1427_v55  ;;  %v1553_v5 = vmul.f32 %v3621_v22, %v1438_v45  ;;  %v1564_v19 = vmul.f32 %v3621_v22, %v1449_v44  ;;  %v1575_v10 = vmul.f32 %v3621_v22, %v3580_v54 }
 0x1bd   :  { %v1499_v28 = vmul.f32 %v1498_v16, %v3630_v12  ;;  %v1503_v35 = vrot.slane %v1501_v61, 1  ;;  %v1510_v34 = vmul.f32 %v1509_v62, %v3630_v12  ;;  %v1514_v50 = vrot.slane %v1512_v36, 1 }
 0x1be   :  { %v1533_v32 = vrot.slane %v1531_v14, 6  ;;  %v1544_v58 = vrot.slane %v1542_v39, 5  ;;  %v1555_v52 = vrot.slane %v1553_v5, 4  ;;  %v1566_v41 = vrot.slane %v1564_v19, 3 }
 0x1bf   :  { %v1500_v18 = vsub.f32 %v3554_v21, %v1499_v28  ;;  %v1505_v6 = vsub.f32 %v1394_v30, %v1503_v35  ;;  %v1511_v48 = vsub.f32 %v3560_v23, %v1510_v34  ;;  %v1516_v9 = vsub.f32 %v1410_v17, %v1514_v50 }
 0x1c0   :  { %v1535_v25 = vsub.f32 %v3550_v33, %v1533_v32  ;;  %v1546_v13 = vsub.f32 %v1432_v46, %v1544_v58  ;;  %v1577_v56 = vrot.slane %v1575_v10, 2  ;;  %v1557_v21 = vsub.f32 %v3566_v38, %v1555_v52 }
 0x1c1   :  { %v1519_v0 = vrot.slane %v1505_v6, 7  ;;  %v1522_v24 = vrot.slane %v1516_v9, 7  ;;  %v1517_v8 = vsel %vm3597_vm0, %v1500_v18, %v1511_v48  ;;  %v1568_v30 = vsub.f32 %v3575_v15, %v1566_v41  ;;  %v1659_v18 = vld [vmem:[#allocation8 + $0x8] sm:$0xff]  ;;  %v1660_v6 = vld [vmem:[#allocation8 + $0x10] sm:$0xff]  ;;  %v1661_v48 = vld [vmem:[#allocation8 + $0x18] sm:$0xff] }
 0x1c2   :  { %v1579_v23 = vsub.f32 %v1465_v42, %v1577_v56  ;;  %v1586_v33 = vmul.f32 %v3621_v22, %v3524_v47  ;;  %1810 = vrcp.f32 %v1517_v8  ;;  %v1528_v46 = vrot.slane %v3618_v2, %v3584_v26 }
 0x1c3   :  { %v1524_v3 = vsel %vm3587_vm11, %v1519_v0, %v1522_v24  ;;  %v1572_v38 = vrot.slane %v3580_v54, %v3584_v26  ;;  %v1583_v15 = vrot.slane %v3524_v47, %v3584_v26  ;;  %v1540_v60 = vmul.f32 %v1539_v51, %v3630_v12 }
 0x1c4   :  { %v1588_v17 = vrot.slane %v1586_v33, 1  ;;  %v1529_v42 = vmul.f32 %v1528_v46, %v3630_v12  ;;  %v1551_v20 = vmul.f32 %v1550_v31, %v3630_v12  ;;  %v1664_v46 = vld [vmem:[#allocation8 + $0x30] sm:$0xff] }
 0x1c5   :  { %v1573_v49 = vmul.f32 %v1572_v38, %v3630_v12  ;;  %v1584_v27 = vmul.f32 %v1583_v15, %v3630_v12  ;;  %v1541_v53 = vsub.f32 %v1427_v55, %v1540_v60 }
 0x1c6   :  { %v1590_v29 = vsub.f32 %v3516_v59, %v1588_v17  ;;  %v1562_v59 = vmul.f32 %v1561_v40, %v3630_v12  ;;  %v1530_v63 = vsub.f32 %v3618_v2, %v1529_v42  ;;  %v1552_v43 = vsub.f32 %v1438_v45, %v1551_v20  ;;  %v1665_v40 = vld [vmem:[#allocation8 + $0x38] sm:$0xff] }
 0x1c7   :  { %v1574_v7 = vsub.f32 %v3580_v54, %v1573_v49  ;;  %v1585_v37 = vsub.f32 %v3524_v47, %v1584_v27 }
 0x1c8   :  { %v1563_v11 = vsub.f32 %v1449_v44, %v1562_v59 }
 0x1cc   :  { %v1811_v1 = vpop.eup %1810 }
 0x1cd   :  { %v1594_v4 = vrot.slane %v1811_v1, 1 }
 0x1cf   :  { %v1596_v26 = vmul.f32 %v1594_v4, %v1524_v3 }
 0x1d1   :  { %v1598_v57 = vrot.slane %v1596_v26, 7  ;;  %1649 = vst [vmem:[#allocation2 + $0x1] sm:$0x40] %v1596_v26 }
 0x1d3   :  { %v1600_v16 = vmul.f32 %v1598_v57, %v1530_v63  ;;  %v1605_v62 = vmul.f32 %v1598_v57, %v1541_v53  ;;  %v1610_v61 = vmul.f32 %v1598_v57, %v1552_v43  ;;  %v1615_v36 = vmul.f32 %v1598_v57, %v1563_v11 }
 0x1d4   :  { %v1620_v14 = vmul.f32 %v1598_v57, %v1574_v7  ;;  %v1625_v39 = vmul.f32 %v1598_v57, %v1585_v37  ;;  %v1630_v5 = vmul.f32 %v1598_v57, %v3630_v12  ;;  %v1658_v12 = vld [vmem:[#allocation8] sm:$0xff] }
 0x1d5   :  { %v1602_v19 = vrot.slane %v1600_v16, 7  ;;  %v1607_v2 = vrot.slane %v1605_v62, 6  ;;  %v1612_v55 = vrot.slane %v1610_v61, 5  ;;  %v1617_v45 = vrot.slane %v1615_v36, 4 }
 0x1d6   :  { %v1622_v44 = vrot.slane %v1620_v14, 3  ;;  %v1627_v10 = vrot.slane %v1625_v39, 2  ;;  %v1632_v28 = vrot.slane %v1630_v5, 1 }
 0x1d7   :  { %v1604_v54 = vsub.f32 %v1535_v25, %v1602_v19  ;;  %v1609_v35 = vsub.f32 %v1546_v13, %v1607_v2  ;;  %v1614_v47 = vsub.f32 %v1557_v21, %v1612_v55  ;;  %v1619_v34 = vsub.f32 %v1568_v30, %v1617_v45  ;;  %v1663_v30 = vld [vmem:[#allocation8 + $0x28] sm:$0xff] }
 0x1d8   :  { %v1624_v50 = vsub.f32 %v1579_v23, %v1622_v44  ;;  %v1629_v32 = vsub.f32 %v1590_v29, %v1627_v10  ;;  %v1634_v58 = vsub.f32 %v3621_v22, %v1632_v28  ;;  %v1662_v22 = vld [vmem:[#allocation8 + $0x20] sm:$0xff]  ;;  %v1753_v31 = vld [vmem:[#allocation2 + $0x7] ss:$0 sm:$0xff] }
 0x1d9   :  { %1635 = vst [vmem:[#allocation2] sm:$0x1] %v1604_v54  ;;  %1637 = vst [vmem:[#allocation2] sm:$0x2] %v1609_v35  ;;  %v1721_v42 = vmul.f32 %v1753_v31, %v1665_v40 }
 0x1da   :  { %1639 = vst [vmem:[#allocation2] sm:$0x4] %v1614_v47  ;;  %1641 = vst [vmem:[#allocation2] sm:$0x8] %v1619_v34 }
 0x1db   :  { %1643 = vst [vmem:[#allocation2] sm:$0x10] %v1624_v50  ;;  %1645 = vst [vmem:[#allocation2] sm:$0x20] %v1629_v32 }
 0x1dc   :  { %1647 = vst [vmem:[#allocation2] sm:$0x40] %v1634_v58 }
 0x1e0   :  { %v1746_v9 = vld [vmem:[#allocation2] ss:$0 sm:$0xff]  ;;  %v1747_v25 = vld [vmem:[#allocation2 + $0x1] ss:$0 sm:$0xff] }
 0x1e1   :  { %v1748_v13 = vld [vmem:[#allocation2 + $0x2] ss:$0 sm:$0xff]  ;;  %v1749_v0 = vld [vmem:[#allocation2 + $0x3] ss:$0 sm:$0xff]  ;;  %v1714_v24 = vmul.f32 %v1746_v9, %v1658_v12  ;;  %v1715_v8 = vmul.f32 %v1747_v25, %v1659_v18 }
 0x1e2   :  { %v1716_v52 = vmul.f32 %v1748_v13, %v1660_v6  ;;  %v1750_v41 = vld [vmem:[#allocation2 + $0x4] ss:$0 sm:$0xff]  ;;  %v1717_v3 = vmul.f32 %v1749_v0, %v1661_v48  ;;  %v1751_v21 = vld [vmem:[#allocation2 + $0x5] ss:$0 sm:$0xff] }
 0x1e3   :  { %v1722_v56 = vadd.f32 %v1715_v8, %v1714_v24  ;;  %v1718_v23 = vmul.f32 %v1750_v41, %v1662_v22  ;;  %v1752_v17 = vld [vmem:[#allocation2 + $0x6] ss:$0 sm:$0xff]  ;;  %v1719_v29 = vmul.f32 %v1751_v21, %v1663_v30 }
 0x1e4   :  { %v1720_v38 = vmul.f32 %v1752_v17, %v1664_v46 }
 0x1e5   :  { %v1723_v33 = vadd.f32 %v1722_v56, %v1716_v52 }
 0x1e7   :  { %v1724_v51 = vadd.f32 %v1723_v33, %v1717_v3 }
 0x1e9   :  { %v1725_v15 = vadd.f32 %v1724_v51, %v1718_v23 }
 0x1eb   :  { %v1726_v60 = vadd.f32 %v1725_v15, %v1719_v29 }
 0x1ed   :  { %v1727_v20 = vadd.f32 %v1726_v60, %v1720_v38 }
 0x1ef   :  { %v1728_v59 = vadd.f32 %v1727_v20, %v1721_v42 }
 0x1f1   :  { %1729 = vst [vmem:[#allocation9] sm:$0xff] %v1728_v59 }
 0x1f2   :  { %1889 = shalt.err (!%p1886_p0)
}
 0x1f3   :  { %s1890_s27 = scalar_lea.hbm %s3692_s3, 128 }
 0x1f4   :  { %p1891_p1 = scmp.ne.s32.totalorder %s3692_s3, %s1890_s27  ;;  %p1894_p2 = scmp.lt.u32.totalorder %s1890_s27, %s3692_s3 }
 0x1f6   :  { %p1896_p3 = pnand %p1894_p2, %p1891_p1 }
 0x1f8   :  { %1899 = shalt.err (!%p1896_p3)
}
 0x1f9   :  { %1739 = dma.vmem_to_hbm [thread:$0]  %s1737_s22, 128, %s3692_s3, [#allocation5]  }
 0x1fa   :  { %1904 = dma.done.wait [#allocation5], 128  }
 0x1fb   :  { %1905 = vsyncadd [#allocation5], 4294967168 }
 0x1fc   :  { %1743 = vsyncpa [#allocation4], 1 }
 0x1fd   :  { %1744 = vsyncpa [#allocation7], 1 }
 0x1fe   :  { %1745 = vsyncpa [#allocation5], 1 }

</bundles_post_ra>
